<compile_context>
chip_gen: v5e
topology: v5e:2x2
jax: 0.10.0
libtpu: 0.0.40
codegen_flags: <defaults>
</compile_context>

<pallas_src>
import functools
import math

import jax
import jax.numpy as jnp
from jax.experimental import pallas as pl
from jax.experimental.pallas import tpu as pltpu


# ---------------------------------------------------------------------------
# Activations (static selection; DownSampleFuse uses 'leaky' = LeakyReLU(0.1))
# ---------------------------------------------------------------------------
def _mish(y):
    # mish(y) = y * tanh(softplus(y)) with a single transcendental:
    # tanh(softplus(y)) = ((1 + e^y)^2 - 1) / ((1 + e^y)^2 + 1)
    t = 1.0 + jnp.exp(jnp.minimum(y, 20.0))
    t2 = t * t
    m = y * (t2 - 1.0) * pl.reciprocal(t2 + 1.0, approx=True)
    return jnp.where(y > 20.0, y, m)


def _activate(y, act):
    if act == 'leaky':
        return jnp.maximum(y, 0.1 * y)      # LeakyReLU(0.1): one vmul + vmax
    if act == 'mish':
        return _mish(y)
    return y


# Stride-2 3x3 tap -> (parity plane, start offset) lookup for the parity-split,
# top/left zero-bordered input layout built by the wrapper.
_PAR = (1, 0, 1)   # row/col parity of tap offset i in {0, 1, 2}
_ST = (0, 1, 1)    # start index inside the (Ho+1 / Wo+1) padded plane


# ---------------------------------------------------------------------------
# Fused DownSampleFuse kernel (one grid step = one batch element)
#   refs = (x_par, xl, w_ds, b_ds, w_y, w_xl, b_pc0,
#           [w_cv_i, b_cv_i, w_pc_i, b_pc_i] * n_blocks,
#           o_ref, pad_scratch)
# ---------------------------------------------------------------------------
def _dsf_kernel(*refs, n_blocks, act, shortcut, Ho, Wo, c1, c2, c3):
    (x_ref, xl_ref, w_ds_ref, b_ds_ref,
     w_y_ref, w_xl_ref, b_pc0_ref) = refs[:7]
    blk_refs = refs[7:7 + 4 * n_blocks]
    o_ref = refs[7 + 4 * n_blocks]
    pad_ref = refs[8 + 4 * n_blocks]

    R = Ho * Wo

    # --- downsample: 3x3 stride-2 conv; im2col built in VMEM from the 4
    #     parity planes (no 9x-expanded HBM patch tensor) ---------------------
    planes = [x_ref[0, p] for p in range(4)]          # 4 x (Ho+1, Wo+1, c1) bf16
    cols = [planes[_PAR[i] * 2 + _PAR[j]][_ST[i]:_ST[i] + Ho,
                                          _ST[j]:_ST[j] + Wo, :]
            for i in range(3) for j in range(3)]
    p_ds = jnp.concatenate(cols, axis=-1).reshape(R, 9 * c1)       # bf16
    y = _activate(jnp.dot(p_ds, w_ds_ref[...],
                          preferred_element_type=jnp.float32) + b_ds_ref[...],
                  act)                                             # (R, c3) f32

    # --- route cat([y, x_l], ch) + fuse.pc 1x1 conv as two accumulating
    #     matmuls (no f32 concat intermediate, x_l stays bf16) ----------------
    xl2d = xl_ref[0].reshape(R, c2)                                # bf16
    h = _activate(jnp.dot(y.astype(jnp.bfloat16), w_y_ref[...],
                          preferred_element_type=jnp.float32)
                  + jnp.dot(xl2d, w_xl_ref[...],
                            preferred_element_type=jnp.float32)
                  + b_pc0_ref[...],
                  act)                                             # (R, c3) f32

    # bf16 zero-padded scratch for the stride-1 3x3 convs. Re-zeroed every grid
    # step (safe under megacore/parallel execution); only the interior is
    # rewritten inside the block loop so the border stays zero.
    pad_ref[...] = jnp.zeros((Ho + 2, Wo + 2, c3), jnp.bfloat16)

    # --- fuse.m: n x InvResB( 3x3 c3 -> e*c3 , 1x1 e*c3 -> c3 ) --------------
    for b in range(n_blocks):
        w_cv_ref, b_cv_ref, w_pc_ref, b_pc_ref = blk_refs[4 * b:4 * b + 4]

        # in-VMEM bf16 im2col: write interior once, read 9 shifted windows
        pad_ref[1:Ho + 1, 1:Wo + 1, :] = (
            h.astype(jnp.bfloat16).reshape(Ho, Wo, c3))
        # TODO(synk): for c3 >= 128 switch to 9 accumulating K=c3 matmuls over
        #             shifted views instead of a materialized (R, 9*c3) patch.
        pcols = [pad_ref[i:i + Ho, j:j + Wo, :]
                 for i in range(3) for j in range(3)]
        patches = jnp.concatenate(pcols, axis=-1).reshape(R, 9 * c3)   # bf16

        g = _activate(jnp.dot(patches, w_cv_ref[...],
                              preferred_element_type=jnp.float32)
                      + b_cv_ref[...], act)                        # (R, e*c3)
        hn = _activate(jnp.dot(g.astype(jnp.bfloat16), w_pc_ref[...],
                               preferred_element_type=jnp.float32)
                       + b_pc_ref[...], act)                       # (R, c3)
        h = h + hn if shortcut else hn

    # (c3, R) is the lane-dense choice while c3 < 128.
    # TODO(synk): for c3 >= 128 write (R, c3) directly and drop the transpose.
    o_ref[0] = h.T.astype(o_ref.dtype)


def _const_index_map(n, *, nd):
    return (0,) * nd


# ---------------------------------------------------------------------------
# Wrapper: NCHW in / NCHW out, builds the single batch-tiled pallas_call
# ---------------------------------------------------------------------------
def downsample_fuse_forward(params, x_nchw, xl_nchw, *, stride=2, n=2,
                            act='leaky', shortcut=False):
    assert stride == 2, "kernel implements the module's default stride=2"
    N, c1, H, W = x_nchw.shape
    _, c2, Hl, Wl = xl_nchw.shape
    assert H % 2 == 0 and W % 2 == 0
    Ho, Wo = H // 2, W // 2                  # k=3, pad=autopad(3)=1, stride=2
    assert (Ho, Wo) == (Hl, Wl), "x_l spatial size must match downsample(x)"
    c3 = params['downsample'][0].shape[-1]

    # NCHW -> NHWC, split the two spatial parities, add one zero row/col at the
    # top/left: x_par[n, pr*2+pc, 1+a, 1+b, :] = x[n, :, 2a+pr, 2b+pc].
    # This is the only input rearrangement done outside the kernel (~1.26x the
    # input size, vs the previous 9x im2col tensor).
    x_nhwc = jnp.transpose(x_nchw, (0, 2, 3, 1))
    x_par = x_nhwc.reshape(N, Ho, 2, Wo, 2, c1)
    x_par = jnp.transpose(x_par, (0, 2, 4, 1, 3, 5)).reshape(N, 4, Ho, Wo, c1)
    x_par = jnp.pad(x_par, ((0, 0), (0, 0), (1, 0), (1, 0), (0, 0)))
    x_par = x_par.astype(jnp.bfloat16)                     # (N, 4, Ho+1, Wo+1, c1)

    xl_nhwc = jnp.transpose(xl_nchw, (0, 2, 3, 1)).astype(jnp.bfloat16)

    # Split the fuse.pc 1x1 weight along its input-channel (K) axis so the
    # route concat becomes two accumulating matmuls in-kernel.
    w_pc0, b_pc0 = params['fuse_pc']
    w_y, w_xl = w_pc0[:c3], w_pc0[c3:]

    inputs = [x_par, xl_nhwc,
              params['downsample'][0], params['downsample'][1],
              w_y, w_xl, b_pc0]
    for (w_cv, b_cv), (w_pc, b_pc) in params['blocks']:
        inputs += [w_cv, b_cv, w_pc, b_pc]

    kernel = functools.partial(_dsf_kernel, n_blocks=n, act=act,
                               shortcut=shortcut, Ho=Ho, Wo=Wo,
                               c1=c1, c2=c2, c3=c3)

    in_specs = [
        pl.BlockSpec((1, 4, Ho + 1, Wo + 1, c1), lambda nb: (nb, 0, 0, 0, 0)),
        pl.BlockSpec((1, Ho, Wo, c2), lambda nb: (nb, 0, 0, 0)),
    ] + [pl.BlockSpec(a.shape, functools.partial(_const_index_map, nd=a.ndim))
         for a in inputs[2:]]

    out3d = pl.pallas_call(
        kernel,
        out_shape=jax.ShapeDtypeStruct((N, c3, Ho * Wo), jnp.float32),
        grid=(N,),
        in_specs=in_specs,
        out_specs=pl.BlockSpec((1, c3, Ho * Wo), lambda nb: (nb, 0, 0)),
        scratch_shapes=[pltpu.VMEM((Ho + 2, Wo + 2, c3), jnp.bfloat16)],
        compiler_params=pltpu.CompilerParams(
            dimension_semantics=("parallel",)),
    )(*inputs)

    # (N, c3, Ho*Wo) -> (N, c3, Ho, Wo) NCHW (pure reshape, no HBM transpose)
    return out3d.reshape(N, c3, Ho, Wo)


# ---------------------------------------------------------------------------
# Synthetic parameters: Conv weight + BatchNorm(momentum=0.03, eps=1e-4)
# folded into (weight*scale [bf16, matmul layout], bias [f32]).
# ---------------------------------------------------------------------------
def _fold_bn_conv(key, kh, kw, cin, cout):
    k1, k2, k3, k4, k5 = jax.random.split(key, 5)
    fan_in = kh * kw * cin
    w = jax.random.normal(k1, (kh, kw, cin, cout), jnp.float32) / math.sqrt(fan_in)
    gamma = 1.0 + 0.1 * jax.random.normal(k2, (cout,), jnp.float32)
    beta = 0.1 * jax.random.normal(k3, (cout,), jnp.float32)
    mean = 0.1 * jax.random.normal(k4, (cout,), jnp.float32)
    var = jnp.abs(jax.random.normal(k5, (cout,), jnp.float32)) + 0.5
    scale = gamma / jnp.sqrt(var + 1e-4)
    bias = (beta - mean * scale).reshape(1, cout).astype(jnp.float32)
    w_folded = (w * scale).reshape(kh * kw * cin, cout).astype(jnp.bfloat16)
    return w_folded, bias


def init_params(key, c1, c2, c3, n=2, e=2):
    keys = jax.random.split(key, 2 + 2 * n)
    params = {
        'downsample': _fold_bn_conv(keys[0], 3, 3, c1, c3),          # Conv(c1,c3,3,s)
        'fuse_pc':    _fold_bn_conv(keys[1], 1, 1, c3 + c2, c3),     # convMLP.pc
        'blocks': [],
    }
    for i in range(n):                                               # InvResB x n
        cv = _fold_bn_conv(keys[2 + 2 * i], 3, 3, c3, e * c3)
        pc = _fold_bn_conv(keys[3 + 2 * i], 1, 1, e * c3, c3)
        params['blocks'].append((cv, pc))
    return params


if __name__ == "__main__":
    key = jax.random.PRNGKey(0)
    kp, kx, kl = jax.random.split(key, 3)

    # DownSampleFuse(f1, c1=16, c2=32, c3=32, n=2, stride=2, e=2,
    #                activation='leaky', shortcut=False)   (f1: cfg-export only)
    c1, c2, c3, n, e, stride = 16, 32, 32, 2, 2, 2
    N, H, W = 2, 16, 16

    params = init_params(kp, c1, c2, c3, n=n, e=e)
    x = jax.random.normal(kx, (N, c1, H, W), jnp.float32)                     # NCHW
    x_l = jax.random.normal(kl, (N, c2, H // stride, W // stride), jnp.float32)

    fwd = jax.jit(functools.partial(downsample_fuse_forward, stride=stride,
                                    n=n, act='leaky', shortcut=False))
    out = jax.block_until_ready(fwd(params, x, x_l))

    assert out.shape == (N, c3, H // stride, W // stride)
    assert out.dtype == jnp.float32
    print("KERNEL_OK")
</pallas_src>

<mosaic_0001>
module attributes {stable_mosaic.version = 11 : i64} {
  func.func @_dsf_kernel(%arg0: i32, %arg1: memref<1x4x9x9x16xbf16, #tpu.memory_space<vmem>>, %arg2: memref<1x8x8x32xbf16, #tpu.memory_space<vmem>>, %arg3: memref<144x32xbf16, #tpu.memory_space<vmem>>, %arg4: memref<1x32xf32, #tpu.memory_space<vmem>>, %arg5: memref<32x32xbf16, #tpu.memory_space<vmem>>, %arg6: memref<32x32xbf16, #tpu.memory_space<vmem>>, %arg7: memref<1x32xf32, #tpu.memory_space<vmem>>, %arg8: memref<288x64xbf16, #tpu.memory_space<vmem>>, %arg9: memref<1x64xf32, #tpu.memory_space<vmem>>, %arg10: memref<64x32xbf16, #tpu.memory_space<vmem>>, %arg11: memref<1x32xf32, #tpu.memory_space<vmem>>, %arg12: memref<288x64xbf16, #tpu.memory_space<vmem>>, %arg13: memref<1x64xf32, #tpu.memory_space<vmem>>, %arg14: memref<64x32xbf16, #tpu.memory_space<vmem>>, %arg15: memref<1x32xf32, #tpu.memory_space<vmem>>, %arg16: memref<1x32x64xf32, #tpu.memory_space<vmem>>, %arg17: memref<10x10x32xbf16, #tpu.memory_space<vmem>>) attributes {dimension_semantics = [#tpu.dimension_semantics<parallel>], iteration_bounds = array<i64: 2>, scalar_prefetch = 0 : i64, scratch_operands = 1 : i64, tpu.core_type = #tpu.core_type<tc>, window_params = [{transform_indices = @transform_0, window_bounds = array<i64: 1, 4, 9, 9, 16>}, {transform_indices = @transform_1, window_bounds = array<i64: 1, 8, 8, 32>}, {pipeline_mode = #tpu.pipeline_mode<synchronous>, transform_indices = @transform_2, window_bounds = array<i64: 144, 32>}, {pipeline_mode = #tpu.pipeline_mode<synchronous>, transform_indices = @transform_3, window_bounds = array<i64: 1, 32>}, {pipeline_mode = #tpu.pipeline_mode<synchronous>, transform_indices = @transform_4, window_bounds = array<i64: 32, 32>}, {pipeline_mode = #tpu.pipeline_mode<synchronous>, transform_indices = @transform_5, window_bounds = array<i64: 32, 32>}, {pipeline_mode = #tpu.pipeline_mode<synchronous>, transform_indices = @transform_6, window_bounds = array<i64: 1, 32>}, {pipeline_mode = #tpu.pipeline_mode<synchronous>, transform_indices = @transform_7, window_bounds = array<i64: 288, 64>}, {pipeline_mode = #tpu.pipeline_mode<synchronous>, transform_indices = @transform_8, window_bounds = array<i64: 1, 64>}, {pipeline_mode = #tpu.pipeline_mode<synchronous>, transform_indices = @transform_9, window_bounds = array<i64: 64, 32>}, {pipeline_mode = #tpu.pipeline_mode<synchronous>, transform_indices = @transform_10, window_bounds = array<i64: 1, 32>}, {pipeline_mode = #tpu.pipeline_mode<synchronous>, transform_indices = @transform_11, window_bounds = array<i64: 288, 64>}, {pipeline_mode = #tpu.pipeline_mode<synchronous>, transform_indices = @transform_12, window_bounds = array<i64: 1, 64>}, {pipeline_mode = #tpu.pipeline_mode<synchronous>, transform_indices = @transform_13, window_bounds = array<i64: 64, 32>}, {pipeline_mode = #tpu.pipeline_mode<synchronous>, transform_indices = @transform_14, window_bounds = array<i64: 1, 32>}, {transform_indices = @transform_15, window_bounds = array<i64: 1, 32, 64>}]} {
    %c0 = arith.constant 0 : index
    %c0_0 = arith.constant 0 : index
    %c0_1 = arith.constant 0 : index
    %c0_2 = arith.constant 0 : index
    %c0_3 = arith.constant 0 : index
    %0 = vector.load %arg1[%c0, %c0_0, %c0_1, %c0_2, %c0_3] : memref<1x4x9x9x16xbf16, #tpu.memory_space<vmem>>, vector<1x1x9x9x16xbf16>
    %1 = vector.shape_cast %0 : vector<1x1x9x9x16xbf16> to vector<9x9x16xbf16>
    %c0_4 = arith.constant 0 : index
    %c1 = arith.constant 1 : index
    %c0_5 = arith.constant 0 : index
    %c0_6 = arith.constant 0 : index
    %c0_7 = arith.constant 0 : index
    %2 = vector.load %arg1[%c0_4, %c1, %c0_5, %c0_6, %c0_7] : memref<1x4x9x9x16xbf16, #tpu.memory_space<vmem>>, vector<1x1x9x9x16xbf16>
    %3 = vector.shape_cast %2 : vector<1x1x9x9x16xbf16> to vector<9x9x16xbf16>
    %c0_8 = arith.constant 0 : index
    %c2 = arith.constant 2 : index
    %c0_9 = arith.constant 0 : index
    %c0_10 = arith.constant 0 : index
    %c0_11 = arith.constant 0 : index
    %4 = vector.load %arg1[%c0_8, %c2, %c0_9, %c0_10, %c0_11] : memref<1x4x9x9x16xbf16, #tpu.memory_space<vmem>>, vector<1x1x9x9x16xbf16>
    %5 = vector.shape_cast %4 : vector<1x1x9x9x16xbf16> to vector<9x9x16xbf16>
    %c0_12 = arith.constant 0 : index
    %c3 = arith.constant 3 : index
    %c0_13 = arith.constant 0 : index
    %c0_14 = arith.constant 0 : index
    %c0_15 = arith.constant 0 : index
    %6 = vector.load %arg1[%c0_12, %c3, %c0_13, %c0_14, %c0_15] : memref<1x4x9x9x16xbf16, #tpu.memory_space<vmem>>, vector<1x1x9x9x16xbf16>
    %7 = vector.shape_cast %6 : vector<1x1x9x9x16xbf16> to vector<9x9x16xbf16>
    %8 = vector.extract_strided_slice %7 {offsets = [0, 0, 0], sizes = [8, 8, 16], strides = [1, 1, 1]} : vector<9x9x16xbf16> to vector<8x8x16xbf16>
    %9 = vector.extract_strided_slice %5 {offsets = [0, 1, 0], sizes = [8, 8, 16], strides = [1, 1, 1]} : vector<9x9x16xbf16> to vector<8x8x16xbf16>
    %10 = vector.extract_strided_slice %7 {offsets = [0, 1, 0], sizes = [8, 8, 16], strides = [1, 1, 1]} : vector<9x9x16xbf16> to vector<8x8x16xbf16>
    %11 = vector.extract_strided_slice %3 {offsets = [1, 0, 0], sizes = [8, 8, 16], strides = [1, 1, 1]} : vector<9x9x16xbf16> to vector<8x8x16xbf16>
    %12 = vector.extract_strided_slice %1 {offsets = [1, 1, 0], sizes = [8, 8, 16], strides = [1, 1, 1]} : vector<9x9x16xbf16> to vector<8x8x16xbf16>
    %13 = vector.extract_strided_slice %3 {offsets = [1, 1, 0], sizes = [8, 8, 16], strides = [1, 1, 1]} : vector<9x9x16xbf16> to vector<8x8x16xbf16>
    %14 = vector.extract_strided_slice %7 {offsets = [1, 0, 0], sizes = [8, 8, 16], strides = [1, 1, 1]} : vector<9x9x16xbf16> to vector<8x8x16xbf16>
    %15 = vector.extract_strided_slice %5 {offsets = [1, 1, 0], sizes = [8, 8, 16], strides = [1, 1, 1]} : vector<9x9x16xbf16> to vector<8x8x16xbf16>
    %16 = vector.extract_strided_slice %7 {offsets = [1, 1, 0], sizes = [8, 8, 16], strides = [1, 1, 1]} : vector<9x9x16xbf16> to vector<8x8x16xbf16>
    %17 = tpu.concatenate %8, %9, %10, %11, %12, %13, %14, %15, %16 in 2 : vector<8x8x16xbf16>, vector<8x8x16xbf16>, vector<8x8x16xbf16>, vector<8x8x16xbf16>, vector<8x8x16xbf16>, vector<8x8x16xbf16>, vector<8x8x16xbf16>, vector<8x8x16xbf16>, vector<8x8x16xbf16> -> vector<8x8x144xbf16>
    %18 = vector.shape_cast %17 : vector<8x8x144xbf16> to vector<64x144xbf16>
    %c0_16 = arith.constant 0 : index
    %c0_17 = arith.constant 0 : index
    %19 = vector.load %arg3[%c0_16, %c0_17] : memref<144x32xbf16, #tpu.memory_space<vmem>>, vector<144x32xbf16>
    %cst = arith.constant dense<0.000000e+00> : vector<64x32xf32>
    %20 = tpu.matmul %18, %19, %cst {dimension_numbers = #tpu.dot_dimension_numbers<[1], [0], [0], [1], [0, 0, 1, 1], [], []>} : vector<64x144xbf16>, vector<144x32xbf16>, vector<64x32xf32> -> vector<64x32xf32>
    %c0_18 = arith.constant 0 : index
    %c0_19 = arith.constant 0 : index
    %21 = vector.load %arg4[%c0_18, %c0_19] : memref<1x32xf32, #tpu.memory_space<vmem>>, vector<1x32xf32>
    %22 = vector.broadcast %21 : vector<1x32xf32> to vector<64x32xf32>
    %23 = arith.addf %20, %22 : vector<64x32xf32>
    %cst_20 = arith.constant 1.000000e-01 : f32
    %24 = vector.broadcast %cst_20 : f32 to vector<64x32xf32>
    %25 = arith.mulf %24, %23 : vector<64x32xf32>
    %26 = arith.maximumf %23, %25 : vector<64x32xf32>
    %c0_21 = arith.constant 0 : index
    %c0_22 = arith.constant 0 : index
    %c0_23 = arith.constant 0 : index
    %c0_24 = arith.constant 0 : index
    %27 = vector.load %arg2[%c0_21, %c0_22, %c0_23, %c0_24] : memref<1x8x8x32xbf16, #tpu.memory_space<vmem>>, vector<1x8x8x32xbf16>
    %28 = vector.shape_cast %27 : vector<1x8x8x32xbf16> to vector<8x8x32xbf16>
    %29 = vector.shape_cast %28 : vector<8x8x32xbf16> to vector<64x32xbf16>
    %30 = arith.truncf %26 : vector<64x32xf32> to vector<64x32xbf16>
    %c0_25 = arith.constant 0 : index
    %c0_26 = arith.constant 0 : index
    %31 = vector.load %arg5[%c0_25, %c0_26] : memref<32x32xbf16, #tpu.memory_space<vmem>>, vector<32x32xbf16>
    %cst_27 = arith.constant dense<0.000000e+00> : vector<64x32xf32>
    %32 = tpu.matmul %30, %31, %cst_27 {dimension_numbers = #tpu.dot_dimension_numbers<[1], [0], [0], [1], [0, 0, 1, 1], [], []>} : vector<64x32xbf16>, vector<32x32xbf16>, vector<64x32xf32> -> vector<64x32xf32>
    %c0_28 = arith.constant 0 : index
    %c0_29 = arith.constant 0 : index
    %33 = vector.load %arg6[%c0_28, %c0_29] : memref<32x32xbf16, #tpu.memory_space<vmem>>, vector<32x32xbf16>
    %cst_30 = arith.constant dense<0.000000e+00> : vector<64x32xf32>
    %34 = tpu.matmul %29, %33, %cst_30 {dimension_numbers = #tpu.dot_dimension_numbers<[1], [0], [0], [1], [0, 0, 1, 1], [], []>} : vector<64x32xbf16>, vector<32x32xbf16>, vector<64x32xf32> -> vector<64x32xf32>
    %35 = arith.addf %32, %34 : vector<64x32xf32>
    %c0_31 = arith.constant 0 : index
    %c0_32 = arith.constant 0 : index
    %36 = vector.load %arg7[%c0_31, %c0_32] : memref<1x32xf32, #tpu.memory_space<vmem>>, vector<1x32xf32>
    %37 = vector.broadcast %36 : vector<1x32xf32> to vector<64x32xf32>
    %38 = arith.addf %35, %37 : vector<64x32xf32>
    %cst_33 = arith.constant 1.000000e-01 : f32
    %39 = vector.broadcast %cst_33 : f32 to vector<64x32xf32>
    %40 = arith.mulf %39, %38 : vector<64x32xf32>
    %41 = arith.maximumf %38, %40 : vector<64x32xf32>
    %cst_34 = arith.constant 0.000000e+00 : bf16
    %42 = vector.broadcast %cst_34 : bf16 to vector<10x10x32xbf16>
    %c0_35 = arith.constant 0 : index
    %c0_36 = arith.constant 0 : index
    %c0_37 = arith.constant 0 : index
    %43 = vector.load %arg17[%c0_35, %c0_36, %c0_37] : memref<10x10x32xbf16, #tpu.memory_space<vmem>>, vector<10x10x32xbf16>
    tpu.vector_store %arg17[%c0_35, %c0_36, %c0_37], %42 {strides = array<i32>} : memref<10x10x32xbf16, #tpu.memory_space<vmem>>, vector<10x10x32xbf16>,
    %44 = arith.truncf %41 : vector<64x32xf32> to vector<64x32xbf16>
    %45 = vector.shape_cast %44 : vector<64x32xbf16> to vector<8x8x32xbf16>
    %c1_38 = arith.constant 1 : index
    %c1_39 = arith.constant 1 : index
    %c0_40 = arith.constant 0 : index
    %46 = vector.load %arg17[%c1_38, %c1_39, %c0_40] : memref<10x10x32xbf16, #tpu.memory_space<vmem>>, vector<8x8x32xbf16>
    tpu.vector_store %arg17[%c1_38, %c1_39, %c0_40], %45 {strides = array<i32>} : memref<10x10x32xbf16, #tpu.memory_space<vmem>>, vector<8x8x32xbf16>,
    %c0_41 = arith.constant 0 : index
    %c0_42 = arith.constant 0 : index
    %c0_43 = arith.constant 0 : index
    %47 = vector.load %arg17[%c0_41, %c0_42, %c0_43] : memref<10x10x32xbf16, #tpu.memory_space<vmem>>, vector<8x8x32xbf16>
    %c0_44 = arith.constant 0 : index
    %c1_45 = arith.constant 1 : index
    %c0_46 = arith.constant 0 : index
    %48 = vector.load %arg17[%c0_44, %c1_45, %c0_46] : memref<10x10x32xbf16, #tpu.memory_space<vmem>>, vector<8x8x32xbf16>
    %c0_47 = arith.constant 0 : index
    %c2_48 = arith.constant 2 : index
    %c0_49 = arith.constant 0 : index
    %49 = vector.load %arg17[%c0_47, %c2_48, %c0_49] : memref<10x10x32xbf16, #tpu.memory_space<vmem>>, vector<8x8x32xbf16>
    %c1_50 = arith.constant 1 : index
    %c0_51 = arith.constant 0 : index
    %c0_52 = arith.constant 0 : index
    %50 = vector.load %arg17[%c1_50, %c0_51, %c0_52] : memref<10x10x32xbf16, #tpu.memory_space<vmem>>, vector<8x8x32xbf16>
    %c1_53 = arith.constant 1 : index
    %c1_54 = arith.constant 1 : index
    %c0_55 = arith.constant 0 : index
    %51 = vector.load %arg17[%c1_53, %c1_54, %c0_55] : memref<10x10x32xbf16, #tpu.memory_space<vmem>>, vector<8x8x32xbf16>
    %c1_56 = arith.constant 1 : index
    %c2_57 = arith.constant 2 : index
    %c0_58 = arith.constant 0 : index
    %52 = vector.load %arg17[%c1_56, %c2_57, %c0_58] : memref<10x10x32xbf16, #tpu.memory_space<vmem>>, vector<8x8x32xbf16>
    %c2_59 = arith.constant 2 : index
    %c0_60 = arith.constant 0 : index
    %c0_61 = arith.constant 0 : index
    %53 = vector.load %arg17[%c2_59, %c0_60, %c0_61] : memref<10x10x32xbf16, #tpu.memory_space<vmem>>, vector<8x8x32xbf16>
    %c2_62 = arith.constant 2 : index
    %c1_63 = arith.constant 1 : index
    %c0_64 = arith.constant 0 : index
    %54 = vector.load %arg17[%c2_62, %c1_63, %c0_64] : memref<10x10x32xbf16, #tpu.memory_space<vmem>>, vector<8x8x32xbf16>
    %c2_65 = arith.constant 2 : index
    %c2_66 = arith.constant 2 : index
    %c0_67 = arith.constant 0 : index
    %55 = vector.load %arg17[%c2_65, %c2_66, %c0_67] : memref<10x10x32xbf16, #tpu.memory_space<vmem>>, vector<8x8x32xbf16>
    %56 = tpu.concatenate %47, %48, %49, %50, %51, %52, %53, %54, %55 in 2 : vector<8x8x32xbf16>, vector<8x8x32xbf16>, vector<8x8x32xbf16>, vector<8x8x32xbf16>, vector<8x8x32xbf16>, vector<8x8x32xbf16>, vector<8x8x32xbf16>, vector<8x8x32xbf16>, vector<8x8x32xbf16> -> vector<8x8x288xbf16>
    %57 = vector.shape_cast %56 : vector<8x8x288xbf16> to vector<64x288xbf16>
    %c0_68 = arith.constant 0 : index
    %c0_69 = arith.constant 0 : index
    %58 = vector.load %arg8[%c0_68, %c0_69] : memref<288x64xbf16, #tpu.memory_space<vmem>>, vector<288x64xbf16>
    %cst_70 = arith.constant dense<0.000000e+00> : vector<64x64xf32>
    %59 = tpu.matmul %57, %58, %cst_70 {dimension_numbers = #tpu.dot_dimension_numbers<[1], [0], [0], [1], [0, 0, 1, 1], [], []>} : vector<64x288xbf16>, vector<288x64xbf16>, vector<64x64xf32> -> vector<64x64xf32>
    %c0_71 = arith.constant 0 : index
    %c0_72 = arith.constant 0 : index
    %60 = vector.load %arg9[%c0_71, %c0_72] : memref<1x64xf32, #tpu.memory_space<vmem>>, vector<1x64xf32>
    %61 = vector.broadcast %60 : vector<1x64xf32> to vector<64x64xf32>
    %62 = arith.addf %59, %61 : vector<64x64xf32>
    %cst_73 = arith.constant 1.000000e-01 : f32
    %63 = vector.broadcast %cst_73 : f32 to vector<64x64xf32>
    %64 = arith.mulf %63, %62 : vector<64x64xf32>
    %65 = arith.maximumf %62, %64 : vector<64x64xf32>
    %66 = arith.truncf %65 : vector<64x64xf32> to vector<64x64xbf16>
    %c0_74 = arith.constant 0 : index
    %c0_75 = arith.constant 0 : index
    %67 = vector.load %arg10[%c0_74, %c0_75] : memref<64x32xbf16, #tpu.memory_space<vmem>>, vector<64x32xbf16>
    %cst_76 = arith.constant dense<0.000000e+00> : vector<64x32xf32>
    %68 = tpu.matmul %66, %67, %cst_76 {dimension_numbers = #tpu.dot_dimension_numbers<[1], [0], [0], [1], [0, 0, 1, 1], [], []>} : vector<64x64xbf16>, vector<64x32xbf16>, vector<64x32xf32> -> vector<64x32xf32>
    %c0_77 = arith.constant 0 : index
    %c0_78 = arith.constant 0 : index
    %69 = vector.load %arg11[%c0_77, %c0_78] : memref<1x32xf32, #tpu.memory_space<vmem>>, vector<1x32xf32>
    %70 = vector.broadcast %69 : vector<1x32xf32> to vector<64x32xf32>
    %71 = arith.addf %68, %70 : vector<64x32xf32>
    %cst_79 = arith.constant 1.000000e-01 : f32
    %72 = vector.broadcast %cst_79 : f32 to vector<64x32xf32>
    %73 = arith.mulf %72, %71 : vector<64x32xf32>
    %74 = arith.maximumf %71, %73 : vector<64x32xf32>
    %75 = arith.truncf %74 : vector<64x32xf32> to vector<64x32xbf16>
    %76 = vector.shape_cast %75 : vector<64x32xbf16> to vector<8x8x32xbf16>
    %c1_80 = arith.constant 1 : index
    %c1_81 = arith.constant 1 : index
    %c0_82 = arith.constant 0 : index
    %77 = vector.load %arg17[%c1_80, %c1_81, %c0_82] : memref<10x10x32xbf16, #tpu.memory_space<vmem>>, vector<8x8x32xbf16>
    tpu.vector_store %arg17[%c1_80, %c1_81, %c0_82], %76 {strides = array<i32>} : memref<10x10x32xbf16, #tpu.memory_space<vmem>>, vector<8x8x32xbf16>,
    %c0_83 = arith.constant 0 : index
    %c0_84 = arith.constant 0 : index
    %c0_85 = arith.constant 0 : index
    %78 = vector.load %arg17[%c0_83, %c0_84, %c0_85] : memref<10x10x32xbf16, #tpu.memory_space<vmem>>, vector<8x8x32xbf16>
    %c0_86 = arith.constant 0 : index
    %c1_87 = arith.constant 1 : index
    %c0_88 = arith.constant 0 : index
    %79 = vector.load %arg17[%c0_86, %c1_87, %c0_88] : memref<10x10x32xbf16, #tpu.memory_space<vmem>>, vector<8x8x32xbf16>
    %c0_89 = arith.constant 0 : index
    %c2_90 = arith.constant 2 : index
    %c0_91 = arith.constant 0 : index
    %80 = vector.load %arg17[%c0_89, %c2_90, %c0_91] : memref<10x10x32xbf16, #tpu.memory_space<vmem>>, vector<8x8x32xbf16>
    %c1_92 = arith.constant 1 : index
    %c0_93 = arith.constant 0 : index
    %c0_94 = arith.constant 0 : index
    %81 = vector.load %arg17[%c1_92, %c0_93, %c0_94] : memref<10x10x32xbf16, #tpu.memory_space<vmem>>, vector<8x8x32xbf16>
    %c1_95 = arith.constant 1 : index
    %c1_96 = arith.constant 1 : index
    %c0_97 = arith.constant 0 : index
    %82 = vector.load %arg17[%c1_95, %c1_96, %c0_97] : memref<10x10x32xbf16, #tpu.memory_space<vmem>>, vector<8x8x32xbf16>
    %c1_98 = arith.constant 1 : index
    %c2_99 = arith.constant 2 : index
    %c0_100 = arith.constant 0 : index
    %83 = vector.load %arg17[%c1_98, %c2_99, %c0_100] : memref<10x10x32xbf16, #tpu.memory_space<vmem>>, vector<8x8x32xbf16>
    %c2_101 = arith.constant 2 : index
    %c0_102 = arith.constant 0 : index
    %c0_103 = arith.constant 0 : index
    %84 = vector.load %arg17[%c2_101, %c0_102, %c0_103] : memref<10x10x32xbf16, #tpu.memory_space<vmem>>, vector<8x8x32xbf16>
    %c2_104 = arith.constant 2 : index
    %c1_105 = arith.constant 1 : index
    %c0_106 = arith.constant 0 : index
    %85 = vector.load %arg17[%c2_104, %c1_105, %c0_106] : memref<10x10x32xbf16, #tpu.memory_space<vmem>>, vector<8x8x32xbf16>
    %c2_107 = arith.constant 2 : index
    %c2_108 = arith.constant 2 : index
    %c0_109 = arith.constant 0 : index
    %86 = vector.load %arg17[%c2_107, %c2_108, %c0_109] : memref<10x10x32xbf16, #tpu.memory_space<vmem>>, vector<8x8x32xbf16>
    %87 = tpu.concatenate %78, %79, %80, %81, %82, %83, %84, %85, %86 in 2 : vector<8x8x32xbf16>, vector<8x8x32xbf16>, vector<8x8x32xbf16>, vector<8x8x32xbf16>, vector<8x8x32xbf16>, vector<8x8x32xbf16>, vector<8x8x32xbf16>, vector<8x8x32xbf16>, vector<8x8x32xbf16> -> vector<8x8x288xbf16>
    %88 = vector.shape_cast %87 : vector<8x8x288xbf16> to vector<64x288xbf16>
    %c0_110 = arith.constant 0 : index
    %c0_111 = arith.constant 0 : index
    %89 = vector.load %arg12[%c0_110, %c0_111] : memref<288x64xbf16, #tpu.memory_space<vmem>>, vector<288x64xbf16>
    %cst_112 = arith.constant dense<0.000000e+00> : vector<64x64xf32>
    %90 = tpu.matmul %88, %89, %cst_112 {dimension_numbers = #tpu.dot_dimension_numbers<[1], [0], [0], [1], [0, 0, 1, 1], [], []>} : vector<64x288xbf16>, vector<288x64xbf16>, vector<64x64xf32> -> vector<64x64xf32>
    %c0_113 = arith.constant 0 : index
    %c0_114 = arith.constant 0 : index
    %91 = vector.load %arg13[%c0_113, %c0_114] : memref<1x64xf32, #tpu.memory_space<vmem>>, vector<1x64xf32>
    %92 = vector.broadcast %91 : vector<1x64xf32> to vector<64x64xf32>
    %93 = arith.addf %90, %92 : vector<64x64xf32>
    %cst_115 = arith.constant 1.000000e-01 : f32
    %94 = vector.broadcast %cst_115 : f32 to vector<64x64xf32>
    %95 = arith.mulf %94, %93 : vector<64x64xf32>
    %96 = arith.maximumf %93, %95 : vector<64x64xf32>
    %97 = arith.truncf %96 : vector<64x64xf32> to vector<64x64xbf16>
    %c0_116 = arith.constant 0 : index
    %c0_117 = arith.constant 0 : index
    %98 = vector.load %arg14[%c0_116, %c0_117] : memref<64x32xbf16, #tpu.memory_space<vmem>>, vector<64x32xbf16>
    %cst_118 = arith.constant dense<0.000000e+00> : vector<64x32xf32>
    %99 = tpu.matmul %97, %98, %cst_118 {dimension_numbers = #tpu.dot_dimension_numbers<[1], [0], [0], [1], [0, 0, 1, 1], [], []>} : vector<64x64xbf16>, vector<64x32xbf16>, vector<64x32xf32> -> vector<64x32xf32>
    %c0_119 = arith.constant 0 : index
    %c0_120 = arith.constant 0 : index
    %100 = vector.load %arg15[%c0_119, %c0_120] : memref<1x32xf32, #tpu.memory_space<vmem>>, vector<1x32xf32>
    %101 = vector.broadcast %100 : vector<1x32xf32> to vector<64x32xf32>
    %102 = arith.addf %99, %101 : vector<64x32xf32>
    %cst_121 = arith.constant 1.000000e-01 : f32
    %103 = vector.broadcast %cst_121 : f32 to vector<64x32xf32>
    %104 = arith.mulf %103, %102 : vector<64x32xf32>
    %105 = arith.maximumf %102, %104 : vector<64x32xf32>
    %106 = tpu.transpose %105, [1, 0] : vector<64x32xf32> -> vector<32x64xf32>
    %c0_122 = arith.constant 0 : index
    %c0_123 = arith.constant 0 : index
    %c0_124 = arith.constant 0 : index
    %107 = vector.load %arg16[%c0_122, %c0_123, %c0_124] : memref<1x32x64xf32, #tpu.memory_space<vmem>>, vector<1x32x64xf32>
    %108 = vector.shape_cast %107 : vector<1x32x64xf32> to vector<32x64xf32>
    %109 = vector.shape_cast %106 : vector<32x64xf32> to vector<1x32x64xf32>
    tpu.vector_store %arg16[%c0_122, %c0_123, %c0_124], %109 {strides = array<i32>} : memref<1x32x64xf32, #tpu.memory_space<vmem>>, vector<1x32x64xf32>,
    return
  }
  func.func @transform_0(%arg0: i32) -> (i32, i32, i32, i32, i32) {
    %c0_i32 = arith.constant 0 : i32
    %c0_i32_0 = arith.constant 0 : i32
    %c0_i32_1 = arith.constant 0 : i32
    %c0_i32_2 = arith.constant 0 : i32
    %c0_i32_3 = arith.constant 0 : i32
    return %arg0, %c0_i32, %c0_i32_0, %c0_i32_1, %c0_i32_2 : i32, i32, i32, i32, i32
  }
  func.func @transform_1(%arg0: i32) -> (i32, i32, i32, i32) {
    %c0_i32 = arith.constant 0 : i32
    %c0_i32_0 = arith.constant 0 : i32
    %c0_i32_1 = arith.constant 0 : i32
    %c0_i32_2 = arith.constant 0 : i32
    return %arg0, %c0_i32, %c0_i32_0, %c0_i32_1 : i32, i32, i32, i32
  }
  func.func @transform_2(%arg0: i32) -> (i32, i32) {
    %c0_i32 = arith.constant 0 : i32
    %c0_i32_0 = arith.constant 0 : i32
    %c0_i32_1 = arith.constant 0 : i32
    return %c0_i32, %c0_i32_0 : i32, i32
  }
  func.func @transform_3(%arg0: i32) -> (i32, i32) {
    %c0_i32 = arith.constant 0 : i32
    %c0_i32_0 = arith.constant 0 : i32
    %c0_i32_1 = arith.constant 0 : i32
    return %c0_i32, %c0_i32_0 : i32, i32
  }
  func.func @transform_4(%arg0: i32) -> (i32, i32) {
    %c0_i32 = arith.constant 0 : i32
    %c0_i32_0 = arith.constant 0 : i32
    %c0_i32_1 = arith.constant 0 : i32
    return %c0_i32, %c0_i32_0 : i32, i32
  }
  func.func @transform_5(%arg0: i32) -> (i32, i32) {
    %c0_i32 = arith.constant 0 : i32
    %c0_i32_0 = arith.constant 0 : i32
    %c0_i32_1 = arith.constant 0 : i32
    return %c0_i32, %c0_i32_0 : i32, i32
  }
  func.func @transform_6(%arg0: i32) -> (i32, i32) {
    %c0_i32 = arith.constant 0 : i32
    %c0_i32_0 = arith.constant 0 : i32
    %c0_i32_1 = arith.constant 0 : i32
    return %c0_i32, %c0_i32_0 : i32, i32
  }
  func.func @transform_7(%arg0: i32) -> (i32, i32) {
    %c0_i32 = arith.constant 0 : i32
    %c0_i32_0 = arith.constant 0 : i32
    %c0_i32_1 = arith.constant 0 : i32
    return %c0_i32, %c0_i32_0 : i32, i32
  }
  func.func @transform_8(%arg0: i32) -> (i32, i32) {
    %c0_i32 = arith.constant 0 : i32
    %c0_i32_0 = arith.constant 0 : i32
    %c0_i32_1 = arith.constant 0 : i32
    return %c0_i32, %c0_i32_0 : i32, i32
  }
  func.func @transform_9(%arg0: i32) -> (i32, i32) {
    %c0_i32 = arith.constant 0 : i32
    %c0_i32_0 = arith.constant 0 : i32
    %c0_i32_1 = arith.constant 0 : i32
    return %c0_i32, %c0_i32_0 : i32, i32
  }
  func.func @transform_10(%arg0: i32) -> (i32, i32) {
    %c0_i32 = arith.constant 0 : i32
    %c0_i32_0 = arith.constant 0 : i32
    %c0_i32_1 = arith.constant 0 : i32
    return %c0_i32, %c0_i32_0 : i32, i32
  }
  func.func @transform_11(%arg0: i32) -> (i32, i32) {
    %c0_i32 = arith.constant 0 : i32
    %c0_i32_0 = arith.constant 0 : i32
    %c0_i32_1 = arith.constant 0 : i32
    return %c0_i32, %c0_i32_0 : i32, i32
  }
  func.func @transform_12(%arg0: i32) -> (i32, i32) {
    %c0_i32 = arith.constant 0 : i32
    %c0_i32_0 = arith.constant 0 : i32
    %c0_i32_1 = arith.constant 0 : i32
    return %c0_i32, %c0_i32_0 : i32, i32
  }
  func.func @transform_13(%arg0: i32) -> (i32, i32) {
    %c0_i32 = arith.constant 0 : i32
    %c0_i32_0 = arith.constant 0 : i32
    %c0_i32_1 = arith.constant 0 : i32
    return %c0_i32, %c0_i32_0 : i32, i32
  }
  func.func @transform_14(%arg0: i32) -> (i32, i32) {
    %c0_i32 = arith.constant 0 : i32
    %c0_i32_0 = arith.constant 0 : i32
    %c0_i32_1 = arith.constant 0 : i32
    return %c0_i32, %c0_i32_0 : i32, i32
  }
  func.func @transform_15(%arg0: i32) -> (i32, i32, i32) {
    %c0_i32 = arith.constant 0 : i32
    %c0_i32_0 = arith.constant 0 : i32
    %c0_i32_1 = arith.constant 0 : i32
    return %arg0, %c0_i32, %c0_i32_0 : i32, i32, i32
  }
}

</mosaic_0001>

<bundles_post_ra>
// kernel: downsample_fuse_forward.1
= control target key start
LH: loop header
LB: loop body
LE: loop exit
PB: predicated region body
PF: predicated region fallthrough
CT: control target
= control target key end

     0   :  { %s4842_s18 = smov 0   ;;  %s5926_s0 = inlined_call_operand.vmem [shape: bf16[2,4,9,9,16], index: 0, kind: input, shape index: {}]   ;;  %s5927_s1 = inlined_call_operand.vmem [shape: bf16[2,8,8,32], index: 1, kind: input, shape index: {}]   ;;  %s5928_s2 = inlined_call_operand.vmem [shape: bf16[144,32], index: 2, kind: input, shape index: {}]   ;;  %s5929_s3 = inlined_call_operand.vmem [shape: f32[1,32], index: 3, kind: input, shape index: {}]   ;;  %s5930_s4 = inlined_call_operand.vmem [shape: bf16[32,32], index: 4, kind: input, shape index: {}]   ;;  %s5931_s5 = inlined_call_operand.vmem [shape: bf16[32,32], index: 5, kind: input, shape index: {}]   ;;  %s5932_s6 = inlined_call_operand.vmem [shape: f32[1,32], index: 6, kind: input, shape index: {}]   ;;  %s5933_s7 = inlined_call_operand.vmem [shape: bf16[288,64], index: 7, kind: input, shape index: {}]   ;;  %s5934_s8 = inlined_call_operand.vmem [shape: f32[1,64], index: 8, kind: input, shape index: {}]   ;;  %s5935_s9 = inlined_call_operand.vmem [shape: bf16[64,32], index: 9, kind: input, shape index: {}]   ;;  %s5936_s10 = inlined_call_operand.vmem [shape: f32[1,32], index: 10, kind: input, shape index: {}]   ;;  %s5937_s11 = inlined_call_operand.vmem [shape: bf16[288,64], index: 11, kind: input, shape index: {}]   ;;  %s5938_s12 = inlined_call_operand.vmem [shape: f32[1,64], index: 12, kind: input, shape index: {}]   ;;  %s5939_s13 = inlined_call_operand.vmem [shape: bf16[64,32], index: 13, kind: input, shape index: {}]   ;;  %s5940_s14 = inlined_call_operand.vmem [shape: f32[1,32], index: 14, kind: input, shape index: {}]   ;;  %s5941_s15 = inlined_call_operand.vmem [shape: f32[2,32,64], index: 15, kind: output, shape index: {}]  }
   0x1 LB: > { %s4226_s19 = sadd.s32 4294967295, %s4752_s18   ;;  %p4230_p0 = scmp.ge.s32.totalorder %s4752_s18, 1  ;;  %s4752_s18 = sphi %s4842_s18, %s25_s18  }
   0x2   : > { %p447_p1 = scmp.lt.s32.totalorder %s4752_s18, 3 }
   0x4   : > { %p448_p2 = pnand %p4230_p0, %p447_p1 }
   0x5   : > { %p500_p3 = scmp.lt.s32.totalorder (!%p448_p2), %s4226_s19, 1  ;;  %s4754_s24 = smov (!%p448_p2), 32  }
   0x6   : > { %451 = sbr.rel (%p448_p2) target bundleno = 1612 (0x64c), region = 80  ;;  %s4755_s25 = smov (!%p448_p2), 16  }
   0x7   : > { %s4756_s26 = smov (!%p448_p2), 48   ;;  %s4757_s27 = smov (!%p448_p2), 64  }
   0x8   : > { %s4758_s28 = smov (!%p448_p2), 80   ;;  %s4759_s29 = smov (!%p448_p2), 96  }
   0x9   : > { %s4760_s30 = smov (!%p448_p2), 112  }
   0xb   : > { %s5947_s19 = smov (!%p500_p3, %s4226_s19), 1  ;;  %vm1123_vm0 = vcmask 130048   ;;  %vm1148_vm1 = vcmask 261120   ;;  %vm1165_vm2 = vcmask 392192   ;;  %vm1182_vm3 = vcmask 523264  }
   0xc   : > { %s4719_s20 = smul.u32 288, %s5947_s19  ;;  %vm1199_vm4 = vcmask 654336   ;;  %vm1216_vm5 = vcmask 785408   ;;  %vm1233_vm6 = vcmask 916480   ;;  %vm1622_vm7 = vcmask 257024  }
   0xd   : > { %vm1624_vm8 = vcmask 253952   ;;  %vm1734_vm9 = vsmask.f32 7938  ;;  %vm1740_vm10 = vsmask.f32 256 }
   0xe   : > { %s4856_s23 = scalar_lea.vmem %s5926_s0, %s4719_s20  ;;  %vm5253_vm11 = vmand %vm1622_vm7, %vm1734_vm9 }
   0xf   : > { %v4322_v0 = vld [vmem:[%s4856_s23 + $0xd8] sm:$0xf]  ;;  %v4653_v1 = vld [vmem:[%s4856_s23 + $0xd8] sm:$0x10]  ;;  %v4290_v2 = vld [vmem:[%s4856_s23 + $0x90] sm:$0xf] }
  0x10   : > { %v4323_v3 = vor.u32 %v4653_v1, %v4322_v0  ;;  %v4644_v4 = vld [vmem:[%s4856_s23 + $0x90] sm:$0x10]  ;;  %v4294_v5 = vld [vmem:[%s4856_s23 + $0x98] sm:$0xf]  ;;  %v4645_v6 = vld [vmem:[%s4856_s23 + $0x98] sm:$0x10] }
  0x11   : > { %v4291_v7 = vor.u32 %v4644_v4, %v4290_v2  ;;  %v4295_v8 = vor.u32 %v4645_v6, %v4294_v5  ;;  %v4330_v9 = vld [vmem:[%s4856_s23 + $0x10] sm:$0xf]  ;;  %v4637_v10 = vld [vmem:[%s4856_s23 + $0x10] sm:$0x10]  ;;  %v4867_v11 = vld [vmem:[%s4856_s23 + $0xe0] sm:$0xf] }
  0x12   : > { %v740_v12 = vshrl.u32 %v4323_v3, 16  ;;  %v742_v13 = vshll.u32 %v4323_v3, 16  ;;  %v4331_v14 = vor.u32 %v4637_v10, %v4330_v9  ;;  %v4273_v15 = vld [vmem:[%s4856_s23 + $0xe4] sm:$0x1]  ;;  %v4871_v20 = vunpack.c.l.b16 %v4867_v11  ;;  %v4326_v24 = vld [vmem:[%s4856_s23 + $0x8] sm:$0xf]  ;;  %vm5258_vm12 = vmand %vm1624_vm8, %vm1740_vm10 }
  0x13   : > { %v628_v16 = vshrl.u32 %v4291_v7, 16  ;;  %v630_v17 = vshll.u32 %v4291_v7, 16  ;;  %v718_v21 = vunpack.c.l.b16 %v4273_v15  ;;  %v637_v23 = vshll.u32 %v4295_v8, 16  ;;  %v4636_v26 = vld [vmem:[%s4856_s23 + $0x8] sm:$0x10] }
  0x14   : > { %v744_v18 = vrot.slane %v742_v13, 1  ;;  %v901_v19 = vshll.u32 %v4331_v14, 16  ;;  %v4236_v27 = vld [vmem:[%s4856_s23 + $0x50] sm:$0xf]  ;;  %v4237_v28 = vld [vmem:[%s4856_s23 + $0x54] sm:$0x1]  ;;  %v4327_v35 = vor.u32 %v4636_v26, %v4326_v24  ;;  %v1061_v4 = vpack.c.b16 %v4871_v20, %v4871_v20 }
  0x15   : > { %v632_v22 = vrot.slane %v630_v17, 1  ;;  %v635_v30 = vshrl.u32 %v4295_v8, 16  ;;  %v899_v31 = vshrl.u32 %v4331_v14, 16  ;;  %v732_v33 = vpack.c.b16 %v718_v21, %v4871_v20  ;;  %v4238_v36 = vld [vmem:[%s4856_s23 + $0x58] sm:$0xf] }
  0x16   : > { %v745_v25 = vor.u32 %v744_v18, %v740_v12  ;;  %v903_v32 = vrot.slane %v901_v19, 1  ;;  %v639_v34 = vrot.slane %v637_v23, 1  ;;  %v819_v37 = vunpack.c.l.b16 %v4236_v27  ;;  %v4239_v39 = vld [vmem:[%s4856_s23 + $0x5c] sm:$0x1]  ;;  %v4298_v56 = vld [vmem:[%s4856_s23 + $0xa0] sm:$0xf] }
  0x17   : > { %v633_v29 = vor.u32 %v632_v22, %v628_v16  ;;  %v971_v38 = vunpack.c.l.b16 %v4237_v28  ;;  %v749_v42 = vshll.u32 %v732_v33, 16  ;;  %v820_v43 = vunpack.c.l.b16 %v4238_v36  ;;  %v4646_v59 = vld [vmem:[%s4856_s23 + $0xa0] sm:$0x10]  ;;  %v4894_v1 = vld [vmem:[%s4856_s23 + $0xe8] sm:$0xf] }
  0x18   : > { %795 = vrot.lane.b32.xlu1 %v745_v25, %s4754_s24  ;;  %v827_v40 = vpack.c.b16 %v819_v37, %v819_v37  ;;  %v904_v41 = vor.u32 %v903_v32, %v899_v31  ;;  %v640_v44 = vor.u32 %v639_v34, %v635_v30  ;;  %v894_v45 = vshll.u32 %v4327_v35, 16  ;;  %v4275_v2 = vld [vmem:[%s4856_s23 + $0xec] sm:$0x1]  ;;  %v4302_v9 = vld [vmem:[%s4856_s23 + $0xa8] sm:$0xf] }
  0x19   : > { %683 = vrot.lane.b32.xlu0 %v633_v29, %s4755_s25  ;;  %v972_v46 = vunpack.c.l.b16 %v4239_v39  ;;  %v979_v47 = vpack.c.b16 %v971_v38, %v819_v37  ;;  %v747_v48 = vshrl.u32 %v732_v33, 16  ;;  %v751_v49 = vrot.slane %v749_v42, 1  ;;  %v4647_v10 = vld [vmem:[%s4856_s23 + $0xa8] sm:$0x10]  ;;  %v4904_v12 = vld [vmem:[%s4856_s23 + $0xf0] sm:$0xf] }
  0x1a   : > { %835 = vrot.lane.b32.xlu2 %v827_v40, %s4756_s26  ;;  %v892_v50 = vshrl.u32 %v4327_v35, 16  ;;  %v896_v51 = vrot.slane %v894_v45, 1  ;;  %v828_v53 = vpack.c.b16 %v820_v43, %v820_v43  ;;  %v4299_v62 = vor.u32 %v4646_v59, %v4298_v56  ;;  %v4277_v13 = vld [vmem:[%s4856_s23 + $0xf4] sm:$0x1]  ;;  %v4241_v29 = vld [vmem:[%s4856_s23 + $0x64] sm:$0x1] }
  0x1b   : > { %v980_v52 = vpack.c.b16 %v972_v46, %v820_v43  ;;  %v990_v54 = vshll.u32 %v979_v47, 16  ;;  %v4885_v55 = vor.u32 %v751_v49, %v747_v48  ;;  %v988_v60 = vshrl.u32 %v979_v47, 16  ;;  %v4334_v31 = vld [vmem:[%s4856_s23 + $0x18] sm:$0xf]  ;;  %v4638_v32 = vld [vmem:[%s4856_s23 + $0x18] sm:$0x10] }
  0x1c   : > { %v897_v57 = vor.u32 %v896_v51, %v892_v50  ;;  %v644_v5 = vshll.u32 %v4299_v62, 16  ;;  %v719_v6 = vunpack.c.l.b16 %v4894_v1  ;;  %v720_v7 = vunpack.c.l.b16 %v4275_v2  ;;  %v4240_v33 = vld [vmem:[%s4856_s23 + $0x60] sm:$0xf]  ;;  %v4242_v37 = vld [vmem:[%s4856_s23 + $0x68] sm:$0xf] }
  0x1d   : > { %v997_v58 = vshll.u32 %v980_v52, 16  ;;  %v992_v61 = vrot.slane %v990_v54, 1  ;;  %v995_v63 = vshrl.u32 %v980_v52, 16  ;;  %v642_v14 = vshrl.u32 %v4299_v62, 16  ;;  %v4338_v42 = vld [vmem:[%s4856_s23 + $0x20] sm:$0xf] }
  0x1e   : > { %v646_v15 = vrot.slane %v644_v5, 1  ;;  %v733_v16 = vpack.c.b16 %v720_v7, %v719_v6  ;;  %v4303_v17 = vor.u32 %v4647_v10, %v4302_v9  ;;  %v1062_v18 = vpack.c.b16 %v719_v6, %v719_v6  ;;  %v4639_v43 = vld [vmem:[%s4856_s23 + $0x20] sm:$0x10]  ;;  %v4306_v5 = vld [vmem:[%s4856_s23 + $0xb0] sm:$0xf] }
  0x1f   : > { %v999_v0 = vrot.slane %v997_v58, 1  ;;  %v993_v3 = vor.u32 %v992_v61, %v988_v60  ;;  %v4910_v19 = vunpack.c.l.b16 %v4904_v12  ;;  %v722_v20 = vunpack.c.l.b16 %v4277_v13  ;;  %v4648_v6 = vld [vmem:[%s4856_s23 + $0xb0] sm:$0x10]  ;;  %v4949_v13 = vld [vmem:[%s4856_s23 + $0x100] sm:$0xf] }
  0x20   : > { %949 = vrot.lane.b32.xlu1 %v904_v41, %s4757_s27  ;;  %v647_v21 = vor.u32 %v646_v15, %v642_v14  ;;  %v756_v22 = vshll.u32 %v733_v16, 16  ;;  %v651_v23 = vshll.u32 %v4303_v17, 16  ;;  %v754_v25 = vshrl.u32 %v733_v16, 16  ;;  %v4281_v14 = vld [vmem:[%s4856_s23 + $0x104] sm:$0x1] }
  0x21   : > { %685 = vrot.lane.b32.xlu0 %v640_v44, %s4755_s25  ;;  %v1000_v8 = vor.u32 %v999_v0, %v995_v63  ;;  %v734_v24 = vpack.c.b16 %v722_v20, %v4910_v19  ;;  %v649_v27 = vshrl.u32 %v4303_v17, 16  ;;  %v973_v35 = vunpack.c.l.b16 %v4241_v29  ;;  %v4279_v15 = vld [vmem:[%s4856_s23 + $0xfc] sm:$0x1]  ;;  %v4310_v17 = vld [vmem:[%s4856_s23 + $0xb8] sm:$0xf] }
  0x22   : > { %837 = vrot.lane.b32.xlu2 %v828_v53, %s4756_s26  ;;  %v758_v26 = vrot.slane %v756_v22, 1  ;;  %v653_v28 = vrot.slane %v651_v23, 1  ;;  %v4335_v40 = vor.u32 %v4638_v32, %v4334_v31  ;;  %v821_v41 = vunpack.c.l.b16 %v4240_v33 }
  0x23   : > { %v763_v30 = vshll.u32 %v734_v24, 16  ;;  %v761_v38 = vshrl.u32 %v734_v24, 16  ;;  %v822_v45 = vunpack.c.l.b16 %v4242_v37  ;;  %v4339_v47 = vor.u32 %v4639_v43, %v4338_v42  ;;  %v4640_v37 = vld [vmem:[%s4856_s23 + $0x28] sm:$0x10] }
  0x24   : > { %v4920_v34 = vor.u32 %v758_v26, %v754_v25  ;;  %v4922_v36 = vor.u32 %v653_v28, %v649_v27  ;;  %v981_v46 = vpack.c.b16 %v973_v35, %v821_v41  ;;  %v908_v49 = vshll.u32 %v4335_v40, 16 }
  0x25   : > { %v765_v39 = vrot.slane %v763_v30, 1  ;;  %v830_v51 = vpack.c.b16 %v822_v45, %v822_v45  ;;  %v829_v52 = vpack.c.b16 %v821_v41, %v821_v41  ;;  %v915_v54 = vshll.u32 %v4339_v47, 16 }
  0x26   : > { %v1004_v53 = vshll.u32 %v981_v46, 16  ;;  %v906_v56 = vshrl.u32 %v4335_v40, 16  ;;  %v1002_v59 = vshrl.u32 %v981_v46, 16  ;;  %v913_v61 = vshrl.u32 %v4339_v47, 16  ;;  %v4244_v46 = vld [vmem:[%s4856_s23 + $0x70] sm:$0xf] }
  0x27   : > { %v4933_v48 = vor.u32 %v765_v39, %v761_v38  ;;  %v917_v62 = vrot.slane %v915_v54, 1  ;;  %v4307_v10 = vor.u32 %v4648_v6, %v4306_v5  ;;  %v4956_v22 = vunpack.c.l.b16 %v4949_v13 }
  0x28   : > { %797 = vrot.lane.b32.xlu1 %v4885_v55, %s4754_s24  ;;  %v1006_v60 = vrot.slane %v1004_v53, 1  ;;  %v726_v23 = vunpack.c.l.b16 %v4281_v14  ;;  %v724_v24 = vunpack.c.l.b16 %v4279_v15  ;;  %v1063_v25 = vpack.c.b16 %v4910_v19, %v4910_v19  ;;  %v4342_v19 = vld [vmem:[%s4856_s23 + $0x28] sm:$0xf] }
  0x29   : > { %947 = vrot.lane.b32.xlu0 %v897_v57, %s4757_s27  ;;  %v910_v57 = vrot.slane %v908_v49, 1  ;;  %v656_v27 = vshrl.u32 %v4307_v10, 16  ;;  %v4343_v42 = vor.u32 %v4640_v37, %v4342_v19  ;;  %v4245_v49 = vld [vmem:[%s4856_s23 + $0x74] sm:$0x1]  ;;  %v5015_v37 = vld [vmem:[%s4856_s23 + $0x110] sm:$0xf] }
  0x2a   : > { %1043 = vrot.lane.b32.xlu2 %v993_v3, %s4758_s28  ;;  %v1007_v2 = vor.u32 %v1006_v60, %v1002_v59  ;;  %v4940_v3 = vld [vmem:[%s4856_s23 + $0xf8] sm:$0xf]  ;;  %v736_v29 = vpack.c.b16 %v726_v23, %v4956_v22  ;;  %v4314_v23 = vld [vmem:[%s4856_s23 + $0xc0] sm:$0xf] }
  0x2b   : > { %v911_v63 = vor.u32 %v910_v57, %v906_v56  ;;  %v723_v9 = vunpack.c.l.b16 %v4940_v3  ;;  %v922_v53 = vshll.u32 %v4343_v42, 16  ;;  %v823_v57 = vunpack.c.l.b16 %v4244_v46 }
  0x2c   : > { %v777_v33 = vshll.u32 %v736_v29, 16  ;;  %v775_v40 = vshrl.u32 %v736_v29, 16  ;;  %v5003_v29 = vld [vmem:[%s4856_s23 + $0x108] sm:$0xf] }
  0x2d   : > { %v1064_v20 = vpack.c.b16 %v723_v9, %v723_v9  ;;  %v735_v30 = vpack.c.b16 %v724_v24, %v723_v9  ;;  %v4650_v24 = vld [vmem:[%s4856_s23 + $0xc0] sm:$0x10]  ;;  %v727_v19 = vunpack.c.l.b16 %v5003_v29 }
  0x2e   : > { %v779_v41 = vrot.slane %v777_v33, 1 }
  0x2f   : > { %v770_v35 = vshll.u32 %v735_v30, 16  ;;  %v768_v43 = vshrl.u32 %v735_v30, 16  ;;  %v4315_v30 = vor.u32 %v4650_v24, %v4314_v23  ;;  %v1066_v46 = vpack.c.b16 %v727_v19, %v727_v19 }
  0x30   : > { %1069 = vrot.lane.b32.xlu1 %v1061_v4, %s4759_s29  ;;  %v918_v4 = vor.u32 %v917_v62, %v913_v61  ;;  %v920_v61 = vshrl.u32 %v4343_v42, 16  ;;  %v924_v62 = vrot.slane %v922_v53, 1 }
  0x31   : > { %1045 = vrot.lane.b32.xlu0 %v1000_v8, %s4758_s28 }
  0x32   : > { %1071 = vrot.lane.b32.xlu2 %v1062_v18, %s4759_s29  ;;  %v4649_v18 = vld [vmem:[%s4856_s23 + $0xb8] sm:$0x10]  ;;  %v925_v5 = vor.u32 %v924_v62, %v920_v61  ;;  %v4248_v61 = vld [vmem:[%s4856_s23 + $0x80] sm:$0xf]  ;;  %v4656_v62 = vld [vmem:[%s5928_s2 + $0x10] sm:$0xff] }
  0x33   : > { %v4311_v26 = vor.u32 %v4649_v18, %v4310_v17 }
  0x35   : > { %v665_v31 = vshll.u32 %v4311_v26, 16  ;;  %v663_v38 = vshrl.u32 %v4311_v26, 16 }
  0x37   : > { %v667_v39 = vrot.slane %v665_v31, 1 }
  0x38   : > { %1099 = vrot.lane.b32.xlu1 %v647_v21, %s4760_s30 }
  0x39   : > { %1097 = vrot.lane.b32.xlu0 %v640_v44, %s4760_s30  ;;  %v4243_v44 = vld [vmem:[%s4856_s23 + $0x6c] sm:$0x1]  ;;  %v4972_v47 = vor.u32 %v667_v39, %v663_v38  ;;  %v4285_v38 = vld [vmem:[%s4856_s23 + $0x114] sm:$0x1]  ;;  %v1065_v39 = vpack.c.b16 %v4956_v22, %v4956_v22 }
  0x3a   : > { %687 = vrot.lane.b32.xlu2 %v647_v21, %s4755_s25  ;;  %v974_v50 = vunpack.c.l.b16 %v4243_v44  ;;  %v658_v21 = vshll.u32 %v4307_v10, 16  ;;  %v772_v44 = vrot.slane %v770_v35, 1  ;;  %v4659_v35 = vld [vmem:[%s5928_s2 + $0x28] sm:$0xff] }
  0x3c   : > { %v982_v58 = vpack.c.b16 %v974_v50, %v822_v45  ;;  %v660_v28 = vrot.slane %v658_v21, 1  ;;  %v4247_v45 = vld [vmem:[%s4856_s23 + $0x7c] sm:$0x1]  ;;  %v4346_v50 = vld [vmem:[%s4856_s23 + $0x30] sm:$0xf]  ;;  %v4980_v56 = vor.u32 %v772_v44, %v768_v43  ;;  %v5021_v43 = vunpack.c.l.b16 %v5015_v37 }
  0x3d   : > { %v976_v54 = vunpack.c.l.b16 %v4247_v45  ;;  %v730_v44 = vunpack.c.l.b16 %v4285_v38  ;;  %v4658_v45 = vld [vmem:[%s5928_s2 + $0x20] sm:$0xff] }
  0x3e   : > { %v1011_v0 = vshll.u32 %v982_v58, 16  ;;  %v1009_v7 = vshrl.u32 %v982_v58, 16  ;;  %v661_v32 = vor.u32 %v660_v28, %v656_v27  ;;  %v975_v58 = vunpack.c.l.b16 %v4245_v49  ;;  %v4318_v27 = vld [vmem:[%s4856_s23 + $0xc8] sm:$0xf]  ;;  %v4651_v28 = vld [vmem:[%s4856_s23 + $0xc8] sm:$0x10] }
  0x3f   : > { %v4319_v33 = vor.u32 %v4651_v28, %v4318_v27 }
  0x40   : > { %799 = vrot.lane.b32.xlu1 %v4920_v34, %s4754_s24  ;;  %v1013_v8 = vrot.slane %v1011_v0, 1  ;;  %v983_v0 = vpack.c.b16 %v975_v58, %v823_v57 }
  0x41   : > { %689 = vrot.lane.b32.xlu0 %v4922_v36, %s4755_s25  ;;  %v679_v42 = vshll.u32 %v4319_v33, 16 }
  0x42   : > { %801 = vrot.lane.b32.xlu2 %v4933_v48, %s4754_s24  ;;  %v1014_v16 = vor.u32 %v1013_v8, %v1009_v7  ;;  %v1018_v8 = vshll.u32 %v983_v0, 16  ;;  %v1016_v17 = vshrl.u32 %v983_v0, 16  ;;  %v4643_v0 = vld [vmem:[%s4856_s23 + $0x40] sm:$0x10] }
  0x43   : > { %v681_v53 = vrot.slane %v679_v42, 1 }
  0x44   : > { %v1020_v18 = vrot.slane %v1018_v8, 1  ;;  %v4249_v8 = vld [vmem:[%s4856_s23 + $0x84] sm:$0x1] }
  0x45   : > { %v977_v23 = vunpack.c.l.b16 %v4249_v8 }
  0x46   : > { %v1021_v26 = vor.u32 %v1020_v18, %v1016_v17  ;;  %v4250_v18 = vld [vmem:[%s4856_s23 + $0x88] sm:$0xf] }
  0x47   : > { %v826_v28 = vunpack.c.l.b16 %v4250_v18 }
  0x48   : > { %841 = vrot.lane.b32.xlu1 %v830_v51, %s4756_s26  ;;  %v4641_v51 = vld [vmem:[%s4856_s23 + $0x30] sm:$0x10] }
  0x49   : > { %839 = vrot.lane.b32.xlu0 %v829_v52, %s4756_s26  ;;  %v4978_v52 = vor.u32 %v779_v41, %v775_v40  ;;  %v4347_v59 = vor.u32 %v4641_v51, %v4346_v50  ;;  %v672_v41 = vshll.u32 %v4315_v30, 16  ;;  %v670_v50 = vshrl.u32 %v4315_v30, 16 }
  0x4a   : > { %951 = vrot.lane.b32.xlu2 %v911_v63, %s4757_s27 }
  0x4b   : > { %v927_v9 = vshrl.u32 %v4347_v59, 16  ;;  %v674_v22 = vrot.slane %v672_v41, 1  ;;  %v1261_v41 = vunpack.c.l.b16 %v4920_v34 }
  0x50   : > { %1047 = vrot.lane.b32.xlu1 %v1007_v2, %s4758_s28  ;;  %v831_v2 = vpack.c.b16 %v823_v57, %v823_v57  ;;  %v4657_v57 = vld [vmem:[%s5928_s2 + $0x18] sm:$0xff] }
  0x51   : > { %953 = vrot.lane.b32.xlu0 %v918_v4, %s4757_s27  ;;  %v929_v4 = vshll.u32 %v4347_v59, 16  ;;  %v675_v59 = vor.u32 %v674_v22, %v670_v50  ;;  %v834_v50 = vpack.c.b16 %v826_v28, %v826_v28 }
  0x52   : > { %1049 = vrot.lane.b32.xlu2 %v1014_v16, %s4758_s28  ;;  %v4661_v16 = vld [vmem:[%s5928_s2 + $0x38] sm:$0xff] }
  0x53   : > { %v931_v10 = vrot.slane %v929_v4, 1  ;;  %1374 = vmatpush.bf16.msra.mxu0 %v4661_v16 }
  0x58   : > { %1075 = vrot.lane.b32.xlu1 %v1064_v20, %s4759_s29  ;;  %v932_v20 = vor.u32 %v931_v10, %v927_v9  ;;  %v825_v9 = vunpack.c.l.b16 %v4248_v61 }
  0x59   : > { %1073 = vrot.lane.b32.xlu0 %v1063_v25, %s4759_s29  ;;  %v4660_v25 = vld [vmem:[%s5928_s2 + $0x30] sm:$0xff] }
  0x5a   : > { %1101 = vrot.lane.b32.xlu2 %v4922_v36, %s4760_s30  ;;  %v4246_v36 = vld [vmem:[%s4856_s23 + $0x78] sm:$0xf]  ;;  %1375 = vmatpush.bf16.msra.mxu0 %v4660_v25  ;;  %v985_v38 = vpack.c.b16 %v977_v23, %v825_v9 }
  0x5b   : > { %v824_v60 = vunpack.c.l.b16 %v4246_v36  ;;  %v677_v36 = vshrl.u32 %v4319_v33, 16 }
  0x5c   : > { %v1032_v22 = vshll.u32 %v985_v38, 16  ;;  %v1030_v61 = vshrl.u32 %v985_v38, 16 }
  0x5d   : > { %v984_v63 = vpack.c.b16 %v976_v54, %v824_v60  ;;  %v832_v7 = vpack.c.b16 %v824_v60, %v824_v60  ;;  %v738_v54 = vpack.c.b16 %v730_v44, %v5021_v43  ;;  %v5036_v60 = vor.u32 %v681_v53, %v677_v36 }
  0x5e   : > { %1376 = vmatpush.bf16.msra.mxu0 %v4659_v35 }
  0x5f   : > { %v1025_v6 = vshll.u32 %v984_v63, 16  ;;  %v1023_v14 = vshrl.u32 %v984_v63, 16  ;;  %v4354_v63 = vld [vmem:[%s4856_s23 + $0x40] sm:$0xf]  ;;  %v789_v10 = vshrl.u32 %v738_v54, 16 }
  0x60   : > { %691 = vrot.lane.b32.xlu1 %v661_v32, %s4755_s25 }
  0x61   : > { %1103 = vrot.lane.b32.xlu0 %v661_v32, %s4760_s30  ;;  %v1027_v15 = vrot.slane %v1025_v6, 1  ;;  %v4283_v32 = vld [vmem:[%s4856_s23 + $0x10c] sm:$0x1]  ;;  %v4642_v6 = vld [vmem:[%s4856_s23 + $0x38] sm:$0x10] }
  0x62   : > { %693 = vrot.lane.b32.xlu2 %v4972_v47, %s4755_s25  ;;  %v728_v40 = vunpack.c.l.b16 %v4283_v32  ;;  %1377 = vmatpush.bf16.msra.mxu0 %v4658_v45  ;;  %v4654_v32 = vld [vmem:[%s5928_s2] sm:$0xff] }
  0x63   : > { %v1028_v21 = vor.u32 %v1027_v15, %v1023_v14  ;;  %v4355_v14 = vor.u32 %v4643_v0, %v4354_v63  ;;  %v4655_v15 = vld [vmem:[%s5928_s2 + $0x8] sm:$0xff] }
  0x64   : > { %v737_v49 = vpack.c.b16 %v728_v40, %v727_v19  ;;  %v4662_v19 = vld [vmem:[%s5928_s2 + $0x40] sm:$0xff]  ;;  %v1259_v40 = vunpack.c.l.b16 %v4885_v55 }
  0x65   : > { %v943_v27 = vshll.u32 %v4355_v14, 16  ;;  %1410 = vmatpush.bf16.msra.mxu1 %v4662_v19  ;;  %v941_v42 = vshrl.u32 %v4355_v14, 16  ;;  %v4270_v14 = vld [vmem:[%s4856_s23 + $0xd8] sm:$0xf] }
  0x66   : > { %v784_v58 = vshll.u32 %v737_v49, 16  ;;  %1378 = vmatpush.bf16.msra.mxu0 %v4657_v57  ;;  %v1297_v36 = vpack.c.b16 %v1261_v41, %v1259_v40 }
  0x67   : > { %v945_v44 = vrot.slane %v943_v27, 1 }
  0x68   : > { %805 = vrot.lane.b32.xlu1 %v4978_v52, %s4754_s24  ;;  %v786_v4 = vrot.slane %v784_v58, 1  ;;  %4396 = vmatmul.msk.bf16.vlgmr.msra.gmra.mxu1 %vm1123_vm0, %v1297_v36  ;;  %v4358_v58 = vld [vmem:[%s4856_s23 + $0xd0] sm:$0xf] }
  0x69   : > { %803 = vrot.lane.b32.xlu0 %v4980_v56, %s4754_s24  ;;  %v946_v34 = vor.u32 %v945_v44, %v941_v42 }
  0x6a   : > { %843 = vrot.lane.b32.xlu2 %v831_v2, %s4756_s26  ;;  %v782_v2 = vshrl.u32 %v737_v49, 16  ;;  %1379 = vmatpush.bf16.msra.mxu0 %v4656_v62 }
  0x6e   : > { %1380 = vmatpush.bf16.msra.mxu0 %v4655_v15 }
  0x70   : > { %955 = vrot.lane.b32.xlu1 %v925_v5, %s4757_s27  ;;  %v4350_v5 = vld [vmem:[%s4856_s23 + $0x38] sm:$0xf] }
  0x71   : > { %845 = vrot.lane.b32.xlu0 %v832_v7, %s4756_s26  ;;  %v4351_v17 = vor.u32 %v4642_v6, %v4350_v5  ;;  %v4286_v6 = vld [vmem:[%s4856_s23 + $0x118] sm:$0xf] }
  0x72   : > { %957 = vrot.lane.b32.xlu2 %v932_v20, %s4757_s27  ;;  %v4251_v20 = vld [vmem:[%s4856_s23 + $0x8c] sm:$0x1]  ;;  %1381 = vmatpush.bf16.msra.mxu0 %v4654_v32 }
  0x73   : > { %v978_v30 = vunpack.c.l.b16 %v4251_v20  ;;  %v936_v35 = vshll.u32 %v4351_v17, 16  ;;  %v934_v45 = vshrl.u32 %v4351_v17, 16 }
  0x74   : > { %v5005_v31 = vpop.permute.xlu2 %835 }
  0x75   : > { %v938_v49 = vrot.slane %v936_v35, 1 }
  0x77   : > { %v939_v57 = vor.u32 %v938_v49, %v934_v45 }
  0x78   : > { %1053 = vrot.lane.b32.xlu1 %v1028_v21, %s4758_s28  ;;  %v5058_v21 = vor.u32 %v786_v4, %v782_v2 }
  0x79   : > { %1051 = vrot.lane.b32.xlu0 %v1021_v26, %s4758_s28  ;;  %v833_v26 = vpack.c.b16 %v825_v9, %v825_v9  ;;  %v1067_v9 = vpack.c.b16 %v5021_v43, %v5021_v43 }
  0x7a   : > { %1077 = vrot.lane.b32.xlu2 %v1065_v39, %s4759_s29 }
  0x7c   : > { %v5027_v51 = vpop.permute.xlu2 %837 }
  0x80   : > { %1105 = vrot.lane.b32.xlu1 %v4972_v47, %s4760_s30  ;;  %v791_v47 = vshll.u32 %v738_v54, 16 }
  0x81   : > { %1079 = vrot.lane.b32.xlu0 %v1066_v46, %s4759_s29  ;;  %v986_v46 = vpack.c.b16 %v978_v30, %v826_v28 }
  0x82   : > { %1107 = vrot.lane.b32.xlu2 %v675_v59, %s4760_s30  ;;  %v793_v16 = vrot.slane %v791_v47, 1  ;;  %v1034_v47 = vrot.slane %v1032_v22, 1 }
  0x83   : > { %v1039_v54 = vshll.u32 %v986_v46, 16  ;;  %v1037_v0 = vshrl.u32 %v986_v46, 16 }
  0x84   : > { %v5047_v7 = vpop.permute.xlu2 %1043  ;;  %v5065_v33 = vor.u32 %v793_v16, %v789_v10  ;;  %v1035_v4 = vor.u32 %v1034_v47, %v1030_v61  ;;  %v5092_v16 = vunpack.c.l.b16 %v4286_v6 }
  0x85   : > { %v1041_v2 = vrot.slane %v1039_v54, 1 }
  0x86   : > { %v1068_v27 = vpack.c.b16 %v5092_v16, %v5092_v16 }
  0x87   : > { %v1042_v15 = vor.u32 %v1041_v2, %v1037_v0 }
  0x88   : > { %697 = vrot.lane.b32.xlu1 %v5036_v60, %s4755_s25 }
  0x89   : > { %695 = vrot.lane.b32.xlu0 %v675_v59, %s4755_s25  ;;  %v4652_v59 = vld [vmem:[%s4856_s23 + $0xd0] sm:$0x10] }
  0x8a   : > { %v5060_v24 = vpop.permute.xlu1 %795  ;;  %807 = vrot.lane.b32.xlu2 %v5058_v21, %s4754_s24  ;;  %v4359_v63 = vor.u32 %v4652_v59, %v4358_v58 }
  0x8b   : > { %v684_v25 = vpop.permute.xlu0 %683 }
  0x8c   : > { %v5072_v39 = vpop.permute.xlu2 %1071  ;;  %v1093_v10 = vshll.u32 %v4359_v63, 16  ;;  %v1126_v20 = vsel %vm1123_vm0, %v4270_v14, %v684_v25 }
  0x8d   : > { %v1150_v30 = vsel %vm1148_vm1, %v1126_v20, %v5060_v24 }
  0x8e   : > { %v1095_v43 = vrot.slane %v1093_v10, 1  ;;  %v1167_v35 = vsel %vm1165_vm2, %v1150_v30, %v5005_v31 }
  0x90   : > { %847 = vrot.lane.b32.xlu1 %v833_v26, %s4756_s26  ;;  %v1091_v26 = vshrl.u32 %v4359_v63, 16 }
  0x91   : > { %809 = vrot.lane.b32.xlu0 %v5065_v33, %s4754_s24 }
  0x92   : > { %v950_v53 = vpop.permute.xlu1 %949  ;;  %849 = vrot.lane.b32.xlu2 %v834_v50, %s4756_s26  ;;  %v1096_v32 = vor.u32 %v1095_v43, %v1091_v26  ;;  %v1267_v43 = vunpack.c.l.b16 %v4978_v52 }
  0x93   : > { %v686_v55 = vpop.permute.xlu0 %685 }
  0x94   : > { %v5083_v62 = vpop.permute.xlu2 %687  ;;  %v1129_v17 = vsel %vm1123_vm0, %v4867_v11, %v686_v55  ;;  %v1265_v55 = vunpack.c.l.b16 %v4980_v56 }
  0x95   : > { %v1132_v61 = vsel %vm1123_vm0, %v4894_v1, %v5083_v62 }
  0x98   : > { %961 = vrot.lane.b32.xlu1 %v946_v34, %s4757_s27 }
  0x99   : > { %959 = vrot.lane.b32.xlu0 %v939_v57, %s4757_s27 }
  0x9a   : > { %v798_v5 = vpop.permute.xlu1 %797  ;;  %1055 = vrot.lane.b32.xlu2 %v1035_v4, %s4758_s28 }
  0x9b   : > { %v948_v8 = vpop.permute.xlu0 %947  ;;  %v1152_v23 = vsel %vm1148_vm1, %v1129_v17, %v798_v5 }
  0x9c   : > { %v802_v18 = vpop.permute.xlu2 %801  ;;  %v1169_v11 = vsel %vm1165_vm2, %v1152_v23, %v5027_v51  ;;  %v1184_v38 = vsel %vm1182_vm3, %v1167_v35, %v948_v8 }
  0x9d   : > { %v1186_v19 = vsel %vm1182_vm3, %v1169_v11, %v950_v53  ;;  %v1201_v24 = vsel %vm1199_vm4, %v1184_v38, %v5047_v7  ;;  %v1263_v7 = vunpack.c.l.b16 %v4933_v48  ;;  %v4287_v38 = vld [vmem:[%s4856_s23 + $0x11c] sm:$0x1]  ;;  %s4634_s23 = sshll.u32 %s5947_s19, 5 }
  0x9e   : > { %s5190_s16 = scalar_lea.vmem %s5927_s1, %s4634_s23  ;;  %s514_s17 = scalar_lea.vmem %s5941_s15, %s4634_s23 }
  0xa0   : > { %1081 = vrot.lane.b32.xlu1 %v1067_v9, %s4759_s29 }
  0xa1   : > { %1057 = vrot.lane.b32.xlu0 %v1042_v15, %s4758_s28 }
  0xa2   : > { %v1070_v28 = vpop.permute.xlu1 %1069  ;;  %1083 = vrot.lane.b32.xlu2 %v1068_v27, %s4759_s29  ;;  %v1269_v27 = vunpack.c.l.b16 %v5058_v21 }
  0xa3   : > { %v1046_v25 = vpop.permute.xlu0 %1045  ;;  %v1218_v42 = vsel %vm1216_vm5, %v1201_v24, %v1070_v28 }
  0xa4   : > { %v1203_v40 = vsel %vm1199_vm4, %v1186_v19, %v1046_v25  ;;  %v952_v51 = vpop.permute.xlu2 %951  ;;  %v1301_v28 = vpack.c.b16 %v1269_v27, %v1267_v43 }
  0xa5   : > { %v1220_v31 = vsel %vm1216_vm5, %v1203_v40, %v5072_v39  ;;  %v1299_v39 = vpack.c.b16 %v1265_v55, %v1263_v7  ;;  %v1114_v40 = vunpack.c.l.b16 %v4287_v38  ;;  %v4667_v38 = vld [vmem:[%s5930_s4] sm:$0xff] }
  0xa7   : > { %4397 = vmatmul.msk.bf16.gmra.mxu1 %vm1123_vm0, %v1299_v39 }
  0xa8   : > { %1111 = vrot.lane.b32.xlu1 %v1096_v32, %s4760_s30 }
  0xa9   : > { %1109 = vrot.lane.b32.xlu0 %v5036_v60, %s4760_s30 }
  0xaa   : > { %v1100_v41 = vpop.permute.xlu1 %1099 }
  0xab   : > { %v1237_v44 = vsel %vm1233_vm6, %v1220_v31, %v1100_v41  ;;  %v1098_v45 = vpop.permute.xlu0 %1097  ;;  %v1115_v41 = vpack.c.b16 %v1114_v40, %v5092_v16 }
  0xac   : > { %v1260_v46 = vunpack.c.l.b16 %v1237_v44  ;;  %v1235_v49 = vsel %vm1233_vm6, %v1218_v42, %v1098_v45  ;;  %v1050_v53 = vpop.permute.xlu2 %1049 }
  0xad   : > { %v1258_v50 = vunpack.c.l.b16 %v1235_v49  ;;  %v1117_v7 = vshrl.u32 %v1115_v41, 16 }
  0xaf   : > { %v1296_v22 = vpack.c.b16 %v1260_v46, %v1258_v50  ;;  %v1119_v50 = vshll.u32 %v1115_v41, 16 }
  0xb1   : > { %1382 = vmatmul.bf16.vlgmr.msra.gmra.mxu0 %v1296_v22  ;;  %v1121_v55 = vrot.slane %v1119_v50, 1 }
  0xb2   : > { %v800_v60 = vpop.permute.xlu1 %799 }
  0xb3   : > { %v690_v36 = vpop.permute.xlu0 %689  ;;  %v1154_v63 = vsel %vm1148_vm1, %v1132_v61, %v800_v60 }
  0xb4   : > { %v1102_v57 = vpop.permute.xlu2 %1101  ;;  %v1135_v48 = vsel %vm1123_vm0, %v4904_v12, %v690_v36 }
  0xb5   : > { %v1156_v4 = vsel %vm1148_vm1, %v1135_v48, %v802_v18 }
  0xb7   : > { %4398 = vmatmul.msk.bf16.gmra.mxu1 %vm1123_vm0, %v1301_v28 }
  0xba   : > { %v842_v34 = vpop.permute.xlu1 %841 }
  0xbb   : > { %v840_v54 = vpop.permute.xlu0 %839  ;;  %v1173_v6 = vsel %vm1165_vm2, %v1156_v4, %v842_v34 }
  0xbc   : > { %v694_v47 = vpop.permute.xlu2 %693  ;;  %v1171_v56 = vsel %vm1165_vm2, %v1154_v63, %v840_v54 }
  0xbd   : > { %v1188_v5 = vsel %vm1182_vm3, %v1171_v56, %v952_v51  ;;  %v1141_v21 = vsel %vm1123_vm0, %v4949_v13, %v694_v47 }
  0xc2   : > { %v1048_v58 = vpop.permute.xlu1 %1047 }
  0xc3   : > { %v954_v59 = vpop.permute.xlu0 %953  ;;  %v1205_v8 = vsel %vm1199_vm4, %v1188_v5, %v1048_v58  ;;  %v1271_v58 = vunpack.c.l.b16 %v5065_v33 }
  0xc4   : > { %v1190_v1 = vsel %vm1182_vm3, %v1173_v6, %v954_v59  ;;  %v844_v9 = vpop.permute.xlu2 %843 }
  0xc5   : > { %v1207_v10 = vsel %vm1199_vm4, %v1190_v1, %v1050_v53 }
  0xca   : > { %v1076_v0 = vpop.permute.xlu1 %1075 }
  0xcb   : > { %v1074_v2 = vpop.permute.xlu0 %1073  ;;  %v1224_v15 = vsel %vm1216_vm5, %v1207_v10, %v1076_v0 }
  0xcc   : > { %v1222_v62 = vsel %vm1216_vm5, %v1205_v8, %v1074_v2  ;;  %v958_v25 = vpop.permute.xlu2 %957 }
  0xcd   : > { %v1239_v12 = vsel %vm1233_vm6, %v1222_v62, %v1102_v57  ;;  %v1122_v57 = vor.u32 %v1121_v55, %v1117_v7 }
  0xce   : > { %v1262_v20 = vunpack.c.l.b16 %v1239_v12 }
  0xcf   : > { %v1273_v61 = vunpack.c.l.b16 %v1122_v57 }
  0xd1   : > { %v1303_v48 = vpack.c.b16 %v1273_v61, %v1271_v58 }
  0xd2   : > { %v692_v14 = vpop.permute.xlu1 %691 }
  0xd3   : > { %v1104_v17 = vpop.permute.xlu0 %1103  ;;  %v1138_v51 = vsel %vm1123_vm0, %v4940_v3, %v692_v14  ;;  %4399 = vmatmul.msk.bf16.gmra.mxu1 %vm1123_vm0, %v1303_v48 }
  0xd4   : > { %v1241_v18 = vsel %vm1233_vm6, %v1224_v15, %v1104_v17  ;;  %v1078_v19 = vpop.permute.xlu2 %1077 }
  0xd5   : > { %v1264_v23 = vunpack.c.l.b16 %v1241_v18 }
  0xd7   : > { %v1298_v26 = vpack.c.b16 %v1264_v23, %v1262_v20 }
  0xd9   : > { %1387 = vmatmul.bf16.gmra.mxu0 %v1298_v26  ;;  %v4668_v26 = vld [vmem:[%s5930_s4 + $0x8] sm:$0xff] }
  0xda   : > { %v806_v30 = vpop.permute.xlu1 %805  ;;  %1571 = vmatpush.bf16.msra.mxu3 %v4668_v26 }
  0xdb   : > { %v804_v11 = vpop.permute.xlu0 %803  ;;  %v1160_v44 = vsel %vm1148_vm1, %v1141_v21, %v806_v30  ;;  %v4737_v21 = vld [vmem:[%s5929_s3] ss:$0 sm:$0xff] }
  0xdc   : > { %v1158_v24 = vsel %vm1148_vm1, %v1138_v51, %v804_v11  ;;  %v1108_v3 = vpop.permute.xlu2 %1107  ;;  %v4663_v51 = vld [vmem:[%s5190_s16] sm:$0xff] }
  0xdd   : > { %v1175_v42 = vsel %vm1165_vm2, %v1158_v24, %v844_v9 }
  0xde   : > { %1572 = vmatpush.bf16.msra.mxu3 %v4667_v38 }
  0xe2   : > { %v956_v32 = vpop.permute.xlu1 %955 }
  0xe3   : > { %v846_v35 = vpop.permute.xlu0 %845  ;;  %v1192_v45 = vsel %vm1182_vm3, %v1175_v42, %v956_v32 }
  0xe4   : > { %v1177_v46 = vsel %vm1165_vm2, %v1160_v44, %v846_v35  ;;  %v808_v63 = vpop.permute.xlu2 %807 }
  0xe5   : > { %v1194_v22 = vsel %vm1182_vm3, %v1177_v46, %v958_v25 }
  0xea   : > { %v1054_v52 = vpop.permute.xlu1 %1053 }
  0xeb   : > { %v1052_v31 = vpop.permute.xlu0 %1051  ;;  %v1211_v36 = vsel %vm1199_vm4, %v1194_v22, %v1054_v52  ;;  %v1412_v52 = vpop.f32.mrf.mxu1 }
  0xec   : > { %v1209_v49 = vsel %vm1199_vm4, %v1192_v45, %v1052_v31  ;;  %v850_v5 = vpop.permute.xlu2 %849 }
  0xed   : > { %v1226_v60 = vsel %vm1216_vm5, %v1209_v49, %v1078_v19  ;;  %v4669_v19 = vld [vmem:[%s5931_s5] sm:$0xff] }
  0xf2   : > { %v1106_v13 = vpop.permute.xlu1 %1105 }
  0xf3   : > { %v1243_v16 = vsel %vm1233_vm6, %v1226_v60, %v1106_v13  ;;  %v1080_v53 = vpop.permute.xlu0 %1079  ;;  %v1414_v45 = vpop.f32.mrf.mxu1 }
  0xf4   : > { %v1266_v39 = vunpack.c.l.b16 %v1243_v16  ;;  %v1228_v34 = vsel %vm1216_vm5, %v1211_v36, %v1080_v53  ;;  %v1056_v1 = vpop.permute.xlu2 %1055  ;;  %v4664_v36 = vld [vmem:[%s5190_s16 + $0x8] sm:$0xff] }
  0xf5   : > { %v1245_v54 = vsel %vm1233_vm6, %v1228_v34, %v1108_v3 }
  0xf6   : > { %v1268_v59 = vunpack.c.l.b16 %v1245_v54 }
  0xf8   : > { %v1300_v47 = vpack.c.b16 %v1268_v59, %v1266_v39 }
  0xfa   : > { %1392 = vmatmul.bf16.gmra.mxu0 %v1300_v47  ;;  %v698_v56 = vpop.permute.xlu1 %697 }
  0xfb   : > { %v696_v0 = vpop.permute.xlu0 %695  ;;  %v1147_v33 = vsel %vm1123_vm0, %v5015_v37, %v698_v56 }
  0xfc   : > { %v1144_v62 = vsel %vm1123_vm0, %v5003_v29, %v696_v0  ;;  %v1084_v23 = vpop.permute.xlu2 %1083  ;;  %v4670_v29 = vld [vmem:[%s5931_s5 + $0x8] sm:$0xff] }
  0xfd   : > { %v1162_v14 = vsel %vm1148_vm1, %v1144_v62, %v808_v63  ;;  %1518 = vmatpush.bf16.msra.mxu2 %v4670_v29  ;;  %v4665_v63 = vld [vmem:[%s5190_s16 + $0x10] sm:$0xff] }
 0x101   : > { %1519 = vmatpush.bf16.msra.mxu2 %v4669_v19 }
 0x102   : > { %v848_v2 = vpop.permute.xlu1 %847 }
 0x103   : > { %v810_v4 = vpop.permute.xlu0 %809  ;;  %v1179_v17 = vsel %vm1165_vm2, %v1162_v14, %v848_v2 }
 0x104   : > { %v1164_v9 = vsel %vm1148_vm1, %v1147_v33, %v810_v4  ;;  %4424 = vmatmul.msk.bf16.vlgmr.msra.gmra.mxu2 %vm1148_vm1, %v4663_v51 }
 0x105   : > { %v1181_v15 = vsel %vm1165_vm2, %v1164_v9, %v850_v5 }
 0x10a   : > { %v962_v6 = vpop.permute.xlu1 %961 }
 0x10b   : > { %v960_v8 = vpop.permute.xlu0 %959  ;;  %v1198_v18 = vsel %vm1182_vm3, %v1181_v15, %v962_v6 }
 0x10c   : > { %v1196_v20 = vsel %vm1182_vm3, %v1179_v17, %v960_v8 }
 0x10d   : > { %v1213_v43 = vsel %vm1199_vm4, %v1196_v20, %v1056_v1  ;;  %v4761_v20 = vmov 0  }
 0x10e   : > { %1626 = vst.msk [vmem:[#allocation2 + $0x8] sm:$0xf] %vm1622_vm7, %v4761_v20 }
 0x10f   : > { %1627 = vst.msk [vmem:[#allocation2 + $0xc] sm:$0x1] %vm1624_vm8, %v4761_v20 }
 0x110   : > { %1623 = vst.msk [vmem:[#allocation2] sm:$0xf] %vm1622_vm7, %v4761_v20 }
 0x111   : > { %1625 = vst.msk [vmem:[#allocation2 + $0x4] sm:$0x1] %vm1624_vm8, %v4761_v20 }
 0x112   : > { %v1082_v10 = vpop.permute.xlu1 %1081  ;;  %1628 = vst.msk [vmem:[#allocation2 + $0x10] sm:$0xf] %vm1622_vm7, %v4761_v20 }
 0x113   : > { %v1058_v12 = vpop.permute.xlu0 %1057  ;;  %v1230_v30 = vsel %vm1216_vm5, %v1213_v43, %v1082_v10  ;;  %1629 = vst.msk [vmem:[#allocation2 + $0x14] sm:$0x1] %vm1624_vm8, %v4761_v20 }
 0x114   : > { %v1215_v37 = vsel %vm1199_vm4, %v1198_v18, %v1058_v12  ;;  %4425 = vmatmul.msk.bf16.gmra.mxu2 %vm1148_vm1, %v4664_v36  ;;  %v4666_v12 = vld [vmem:[%s5190_s16 + $0x18] sm:$0xff]  ;;  %1630 = vst.msk [vmem:[#allocation2 + $0x18] sm:$0xf] %vm1622_vm7, %v4761_v20 }
 0x115   : > { %v1232_v27 = vsel %vm1216_vm5, %v1215_v37, %v1084_v23  ;;  %1631 = vst.msk [vmem:[#allocation2 + $0x1c] sm:$0x1] %vm1624_vm8, %v4761_v20 }
 0x116   : > { %1632 = vst.msk [vmem:[#allocation2 + $0x20] sm:$0xf] %vm1622_vm7, %v4761_v20 }
 0x117   : > { %1633 = vst.msk [vmem:[#allocation2 + $0x24] sm:$0x1] %vm1624_vm8, %v4761_v20 }
 0x118   : > { %1634 = vst.msk [vmem:[#allocation2 + $0x28] sm:$0xf] %vm1622_vm7, %v4761_v20 }
 0x119   : > { %1635 = vst.msk [vmem:[#allocation2 + $0x2c] sm:$0x1] %vm1624_vm8, %v4761_v20 }
 0x11a   : > { %v1112_v28 = vpop.permute.xlu1 %1111  ;;  %1636 = vst.msk [vmem:[#allocation2 + $0x30] sm:$0xf] %vm1622_vm7, %v4761_v20 }
 0x11b   : > { %v1249_v11 = vsel %vm1233_vm6, %v1232_v27, %v1112_v28  ;;  %v1110_v25 = vpop.permute.xlu0 %1109  ;;  %1637 = vst.msk [vmem:[#allocation2 + $0x34] sm:$0x1] %vm1624_vm8, %v4761_v20 }
 0x11c   : > { %v1272_v32 = vunpack.c.l.b16 %v1249_v11  ;;  %v1247_v35 = vsel %vm1233_vm6, %v1230_v30, %v1110_v25  ;;  %v1787_v30 = vld [vmem:[#allocation2] sm:$0xf]  ;;  %v1795_v11 = vld [vmem:[#allocation2 + $0x4] sm:$0x1]  ;;  %1638 = vst.msk [vmem:[#allocation2 + $0x38] sm:$0xf] %vm1622_vm7, %v4761_v20 }
 0x11d   : > { %v1270_v40 = vunpack.c.l.b16 %v1247_v35  ;;  %v1876_v25 = vunpack.c.l.b16 %v1787_v30  ;;  %v1877_v19 = vunpack.c.l.b16 %v1795_v11  ;;  %1639 = vst.msk [vmem:[#allocation2 + $0x3c] sm:$0x1] %vm1624_vm8, %v4761_v20 }
 0x11e   : > { %1640 = vst.msk [vmem:[#allocation2 + $0x40] sm:$0xf] %vm1622_vm7, %v4761_v20 }
 0x11f   : > { %v1302_v24 = vpack.c.b16 %v1272_v32, %v1270_v40  ;;  %v1892_v40 = vpack.c.b16 %v1877_v19, %v1876_v25  ;;  %1641 = vst.msk [vmem:[#allocation2 + $0x44] sm:$0x1] %vm1624_vm8, %v4761_v20 }
 0x120   : > { %1642 = vst.msk [vmem:[#allocation2 + $0x48] sm:$0xf] %vm1622_vm7, %v4761_v20 }
 0x121   : > { %1397 = vmatmul.bf16.gmra.mxu0 %v1302_v24  ;;  %v1903_v51 = vshll.u32 %v1892_v40, 16  ;;  %v1901_v24 = vshrl.u32 %v1892_v40, 16  ;;  %1643 = vst.msk [vmem:[#allocation2 + $0x4c] sm:$0x1] %vm1624_vm8, %v4761_v20  ;;  %v1748_v20 = vld [vmem:[#allocation2 + $0x14] sm:$0x1] }
 0x124   : > { %v1417_v16 = vpop.f32.mrf.mxu1  ;;  %4426 = vmatmul.msk.bf16.gmra.mxu2 %vm1148_vm1, %v4665_v63 }
 0x12c   : > { %v1419_v34 = vpop.f32.mrf.mxu1 }
 0x12e   : > { %v1383_v31 = vpop.f32.mrf.mxu0 }
 0x12f   : > { %v1384_v41 = vadd.f32 %v4737_v21, %v1383_v31 }
 0x131   : > { %v1413_v42 = vadd.f32 %v1412_v52, %v1384_v41  ;;  %v1905_v52 = vrot.slane %v1903_v51, 1 }
 0x133   : > { %v1432_v49 = vmul.f32 0.1, %v1413_v42  ;;  %v1906_v31 = vor.u32 %v1905_v52, %v1901_v24 }
 0x134   : > { %v1422_v56 = vpop.f32.mrf.mxu1  ;;  %4427 = vmatmul.msk.bf16.gmra.mxu2 %vm1148_vm1, %v4666_v12 }
 0x135   : > { %v1440_v22 = vmax.f32 %v1413_v42, %v1432_v49  ;;  %1956 = vrot.lane.b32.xlu2 %v1906_v31, %s4754_s24  ;;  %v5238_v49 = vld [vmem:[#allocation2 + $0x4c] sm:$0x1] }
 0x136   : > { %v1385_v44 = vpop.f32.mrf.mxu0 }
 0x137   : > { %v1386_v46 = vadd.f32 %v4737_v21, %v1385_v44 }
 0x139   : > { %v1415_v3 = vadd.f32 %v1414_v45, %v1386_v46  ;;  %v1843_v45 = vld [vmem:[#allocation2 + $0x48] sm:$0xf] }
 0x13a   : > { %v2203_v46 = vunpack.c.l.b16 %v1843_v45 }
 0x13b   : > { %v1433_v50 = vmul.f32 0.1, %v1415_v3 }
 0x13c   : > { %v1424_v6 = vpop.f32.mrf.mxu1 }
 0x13d   : > { %v1441_v60 = vmax.f32 %v1415_v3, %v1433_v50  ;;  %v2243_v3 = vunpack.c.l.b16 %v5238_v49  ;;  %v2211_v50 = vpack.c.b16 %v2203_v46, %v2203_v46 }
 0x13f   : > { %v1456_v13 = vpack.c.bf16 %v1441_v60, %v1440_v22  ;;  %v2251_v60 = vpack.c.b16 %v2243_v3, %v2203_v46  ;;  %2226 = vrot.lane.b32.xlu2 %v2211_v50, %s4757_s27 }
 0x141   : > { %4436 = vmatmul.msk.bf16.vlgmr.msra.gmra.mxu3 %vm1148_vm1, %v1456_v13  ;;  %v2302_v13 = vshrl.u32 %v2251_v60, 16  ;;  %v2304_v36 = vshll.u32 %v2251_v60, 16 }
 0x150   : > { %v1427_v15 = vpop.f32.mrf.mxu1 }
 0x156   : > { %v1388_v53 = vpop.f32.mrf.mxu0 }
 0x157   : > { %v1389_v7 = vadd.f32 %v4737_v21, %v1388_v53 }
 0x158   : > { %v1429_v26 = vpop.f32.mrf.mxu1 }
 0x159   : > { %v1418_v55 = vadd.f32 %v1417_v16, %v1389_v7  ;;  %v5247_v16 = vld [vmem:[%s5932_s6] ss:$0 sm:$0xff]  ;;  %v2306_v7 = vrot.slane %v2304_v36, 1 }
 0x15b   : > { %v1434_v57 = vmul.f32 0.1, %v1418_v55 }
 0x15d   : > { %v1442_v61 = vmax.f32 %v1418_v55, %v1434_v57 }
 0x15e   : > { %v1390_v39 = vpop.f32.mrf.mxu0 }
 0x15f   : > { %v1391_v54 = vadd.f32 %v4737_v21, %v1390_v39  ;;  %v2307_v39 = vor.u32 %v2306_v7, %v2302_v13 }
 0x161   : > { %v1420_v58 = vadd.f32 %v1419_v34, %v1391_v54 }
 0x163   : > { %v1435_v59 = vmul.f32 0.1, %v1420_v58 }
 0x165   : > { %v1443_v47 = vmax.f32 %v1420_v58, %v1435_v59 }
 0x167   : > { %v1457_v48 = vpack.c.bf16 %v1443_v47, %v1442_v61 }
 0x169   : > { %4437 = vmatmul.msk.bf16.gmra.mxu3 %vm1148_vm1, %v1457_v48 }
 0x177   : > { %v1393_v0 = vpop.f32.mrf.mxu0 }
 0x178   : > { %v1394_v2 = vadd.f32 %v4737_v21, %v1393_v0 }
 0x17a   : > { %v1423_v4 = vadd.f32 %v1422_v56, %v1394_v2 }
 0x17c   : > { %v1436_v1 = vmul.f32 0.1, %v1423_v4 }
 0x17e   : > { %v1444_v9 = vmax.f32 %v1423_v4, %v1436_v1 }
 0x17f   : > { %v1395_v5 = vpop.f32.mrf.mxu0 }
 0x180   : > { %v1396_v8 = vadd.f32 %v4737_v21, %v1395_v5  ;;  %v1736_v5 = vld [vmem:[#allocation2 + $0x8] sm:$0xf] }
 0x182   : > { %v1425_v33 = vadd.f32 %v1424_v6, %v1396_v8  ;;  %v1742_v8 = vld [vmem:[#allocation2 + $0xc] sm:$0x1] }
 0x184   : > { %v1437_v62 = vmul.f32 0.1, %v1425_v33 }
 0x186   : > { %v1445_v10 = vmax.f32 %v1425_v33, %v1437_v62 }
 0x187   : > { %v1521_v22 = vpop.f32.mrf.mxu2 }
 0x188   : > { %v1458_v14 = vpack.c.bf16 %v1445_v10, %v1444_v9 }
 0x18a   : > { %4438 = vmatmul.msk.bf16.gmra.mxu3 %vm1148_vm1, %v1458_v14 }
 0x18f   : > { %v1523_v57 = vpop.f32.mrf.mxu2 }
 0x19e   : > { %v1398_v17 = vpop.f32.mrf.mxu0 }
 0x19f   : > { %v1399_v18 = vadd.f32 %v4737_v21, %v1398_v17 }
 0x1a1   : > { %v1428_v37 = vadd.f32 %v1427_v15, %v1399_v18  ;;  %v1745_v18 = vld [vmem:[#allocation2 + $0x10] sm:$0xf] }
 0x1a3   : > { %v1438_v43 = vmul.f32 0.1, %v1428_v37 }
 0x1a5   : > { %v1446_v32 = vmax.f32 %v1428_v37, %v1438_v43 }
 0x1a6   : > { %v1400_v23 = vpop.f32.mrf.mxu0 }
 0x1a7   : > { %v1401_v29 = vadd.f32 %v4737_v21, %v1400_v23  ;;  %v1803_v21 = vld [vmem:[#allocation2] sm:$0xe] }
 0x1a8   : > { %v1980_v41 = vunpack.c.l.b16 %v1803_v21 }
 0x1a9   : > { %v1430_v27 = vadd.f32 %v1429_v26, %v1401_v29 }
 0x1aa   : > { %v1988_v42 = vpack.c.b16 %v1877_v19, %v1980_v41 }
 0x1ab   : > { %v1439_v28 = vmul.f32 0.1, %v1430_v27 }
 0x1ac   : > { %v1996_v44 = vrot.slane %v1988_v42, 1 }
 0x1ad   : > { %v1447_v35 = vmax.f32 %v1430_v27, %v1439_v28 }
 0x1ae   : > { %2004 = vrot.lane.b32.xlu1 %v1996_v44, %s4757_s27 }
 0x1af   : > { %v1459_v38 = vpack.c.bf16 %v1447_v35, %v1446_v32 }
 0x1b1   : > { %4439 = vmatmul.msk.bf16.gmra.mxu3 %vm1148_vm1, %v1459_v38 }
 0x1b6   : > { %2322 = vrot.lane.b32.xlu1 %v2307_v39, %s4759_s29 }
 0x1c4   : > { %v1574_v53 = vpop.f32.mrf.mxu3 }
 0x1c5   : > { %v1575_v55 = vadd.f32 %v1574_v53, %v1521_v22 }
 0x1c7   : > { %v1598_v34 = vadd.f32 %v5247_v16, %v1575_v55 }
 0x1c9   : > { %v1606_v54 = vmul.f32 0.1, %v1598_v34 }
 0x1cb   : > { %v1614_v58 = vmax.f32 %v1598_v34, %v1606_v54 }
 0x1cc   : > { %v1576_v59 = vpop.f32.mrf.mxu3 }
 0x1cd   : > { %v1644_v61 = vpack.c.bf16 %v1614_v58, %v1614_v58  ;;  %v1577_v47 = vadd.f32 %v1576_v59, %v1523_v57  ;;  %v1526_v58 = vpop.f32.mrf.mxu2 }
 0x1cf   : > { %v1653_v63 = vshrl.u32 %v1644_v61, 16  ;;  %v1599_v48 = vadd.f32 %v5247_v16, %v1577_v47  ;;  %v1656_v0 = vshll.u32 %v1644_v61, 16 }
 0x1d1   : > { %v1655_v56 = vrot.slane %v1653_v63, 7  ;;  %v1607_v4 = vmul.f32 0.1, %v1599_v48  ;;  %v4688_v63 = vld [vmem:[%s5933_s7 + $0x88] sm:$0xff] }
 0x1d2   : > { %2752 = vmatpush.bf16.msrb.mxu3 %v4688_v63 }
 0x1d3   : > { %v1658_v1 = vor.u32 %v1656_v0, %v1655_v56  ;;  %v1659_v33 = vrot.slane %v1655_v56, 4  ;;  %v1615_v62 = vmax.f32 %v1599_v48, %v1607_v4 }
 0x1d5   : > { %v1737_v9 = vsel %vm5253_vm11, %v1658_v1, %v1736_v5  ;;  %v1743_v10 = vsel %vm5258_vm12, %v1659_v33, %v1742_v8  ;;  %v1645_v12 = vpack.c.bf16 %v1615_v62, %v1615_v62 }
 0x1d6   : > { %1738 = vst [vmem:[#allocation2 + $0x8] sm:$0xf] %v1737_v9 }
 0x1d7   : > { %1744 = vst [vmem:[#allocation2 + $0xc] sm:$0x1] %v1743_v10  ;;  %v1661_v14 = vshrl.u32 %v1645_v12, 16  ;;  %v1664_v17 = vshll.u32 %v1645_v12, 16  ;;  %v4687_v10 = vld [vmem:[%s5933_s7 + $0x80] sm:$0xff] }
 0x1d8   : > { %2753 = vmatpush.bf16.msrb.mxu3 %v4687_v10 }
 0x1d9   : > { %v1663_v15 = vrot.slane %v1661_v14, 7 }
 0x1db   : > { %v1666_v37 = vor.u32 %v1664_v17, %v1663_v15  ;;  %v1667_v23 = vrot.slane %v1663_v15, 4 }
 0x1dd   : > { %v1746_v29 = vsel %vm5253_vm11, %v1666_v37, %v1745_v18  ;;  %v1749_v26 = vsel %vm5258_vm12, %v1667_v23, %v1748_v20  ;;  %v1811_v43 = vld [vmem:[#allocation2 + $0x8] sm:$0xf] }
 0x1de   : > { %v1827_v27 = vld [vmem:[#allocation2 + $0x8] sm:$0xe]  ;;  %1747 = vst [vmem:[#allocation2 + $0x10] sm:$0xf] %v1746_v29  ;;  %v2028_v30 = vunpack.c.l.b16 %v1811_v43  ;;  %v1819_v11 = vld [vmem:[#allocation2 + $0xc] sm:$0x1]  ;;  %v1528_v29 = vpop.f32.mrf.mxu2 }
 0x1df   : > { %v5270_v28 = vld [vmem:[#allocation2 + $0x8] sm:$0xf]  ;;  %v2148_v25 = vunpack.c.l.b16 %v1827_v27  ;;  %v1796_v32 = vld [vmem:[#allocation2 + $0xc] sm:$0x1]  ;;  %1750 = vst [vmem:[#allocation2 + $0x14] sm:$0x1] %v1749_v26  ;;  %v2068_v19 = vunpack.c.l.b16 %v1819_v11 }
 0x1e0   : > { %v1878_v35 = vunpack.c.l.b16 %v5270_v28  ;;  %v1879_v38 = vunpack.c.l.b16 %v1796_v32  ;;  %v2036_v40 = vpack.c.b16 %v2028_v30, %v2028_v30  ;;  %v1804_v51 = vld [vmem:[#allocation2 + $0x8] sm:$0xe] }
 0x1e1   : > { %v2156_v24 = vpack.c.b16 %v2068_v19, %v2148_v25  ;;  %v5273_v52 = vpack.c.b16 %v2068_v19, %v2028_v30  ;;  %v1981_v42 = vunpack.c.l.b16 %v1804_v51 }
 0x1e2   : > { %v1893_v21 = vpack.c.b16 %v1879_v38, %v1878_v35  ;;  %2044 = vrot.lane.b32.xlu0 %v2036_v40, %s4759_s29 }
 0x1e3   : > { %v2164_v31 = vrot.slane %v2156_v24, 1  ;;  %v1989_v7 = vpack.c.b16 %v1879_v38, %v1981_v42  ;;  %v1751_v42 = vld [vmem:[#allocation2 + $0x18] sm:$0xf] }
 0x1e4   : > { %v1910_v41 = vshll.u32 %v1893_v21, 16  ;;  %v1908_v45 = vshrl.u32 %v1893_v21, 16 }
 0x1e5   : > { %2172 = vrot.lane.b32.xlu2 %v2164_v31, %s4754_s24  ;;  %v1836_v44 = vld [vmem:[#allocation2 + $0x10] sm:$0xf]  ;;  %v1997_v4 = vrot.slane %v1989_v7, 1 }
 0x1e6   : > { %v1912_v46 = vrot.slane %v1910_v41, 1  ;;  %v1812_v50 = vld [vmem:[#allocation2 + $0x10] sm:$0xf]  ;;  %v2196_v22 = vunpack.c.l.b16 %v1836_v44  ;;  %v1820_v13 = vld [vmem:[#allocation2 + $0x14] sm:$0x1] }
 0x1e7   : > { %v2029_v60 = vunpack.c.l.b16 %v1812_v50  ;;  %v1828_v36 = vld [vmem:[#allocation2 + $0x10] sm:$0xe]  ;;  %v2069_v55 = vunpack.c.l.b16 %v1820_v13  ;;  %v1797_v39 = vld [vmem:[#allocation2 + $0x14] sm:$0x1]  ;;  %v1754_v44 = vld [vmem:[#allocation2 + $0x1c] sm:$0x1] }
 0x1e8   : > { %v5277_v53 = vld [vmem:[#allocation2 + $0x10] sm:$0xf]  ;;  %v2204_v54 = vpack.c.b16 %v2196_v22, %v2196_v22  ;;  %v1913_v57 = vor.u32 %v1912_v46, %v1908_v45  ;;  %v2149_v59 = vunpack.c.l.b16 %v1828_v36  ;;  %v1881_v61 = vunpack.c.l.b16 %v1797_v39  ;;  %v1844_v47 = vld [vmem:[#allocation2 + $0x14] sm:$0x1] }
 0x1e9   : > { %v1880_v34 = vunpack.c.l.b16 %v5277_v53  ;;  %v5283_v48 = vpack.c.b16 %v2069_v55, %v2029_v60  ;;  %v2236_v56 = vunpack.c.l.b16 %v1844_v47  ;;  %v1805_v9 = vld [vmem:[#allocation2 + $0x10] sm:$0xe]  ;;  %v2037_v15 = vpack.c.b16 %v2029_v60, %v2029_v60 }
 0x1ea   : > { %2212 = vrot.lane.b32.xlu1 %v2204_v54, %s4757_s27  ;;  %1958 = vrot.lane.b32.xlu0 %v1913_v57, %s4754_s24  ;;  %v2157_v8 = vpack.c.b16 %v2069_v55, %v2149_v59  ;;  %v1982_v18 = vunpack.c.l.b16 %v1805_v9  ;;  %v1852_v41 = vld [vmem:[#allocation2 + $0x10] sm:$0xe]  ;;  %v1757_v54 = vld [vmem:[#allocation2 + $0x20] sm:$0xf]  ;;  %v1760_v57 = vld [vmem:[#allocation2 + $0x24] sm:$0x1] }
 0x1eb   : > { %v1894_v0 = vpack.c.b16 %v1881_v61, %v1880_v34  ;;  %v2244_v33 = vpack.c.b16 %v2236_v56, %v2196_v22  ;;  %v2332_v22 = vunpack.c.l.b16 %v1852_v41 }
 0x1ec   : > { %v1579_v5 = vpop.f32.mrf.mxu3  ;;  %v2165_v17 = vrot.slane %v2157_v8, 1  ;;  %v1990_v30 = vpack.c.b16 %v1881_v61, %v1982_v18 }
 0x1ed   : > { %v1917_v1 = vshll.u32 %v1894_v0, 16  ;;  %2006 = vrot.lane.b32.xlu2 %v1997_v4, %s4757_s27  ;;  %v1580_v62 = vadd.f32 %v1579_v5, %v1526_v58  ;;  %v2255_v20 = vshll.u32 %v2244_v33, 16  ;;  %v1915_v23 = vshrl.u32 %v1894_v0, 16 }
 0x1ee   : > { %v2253_v35 = vshrl.u32 %v2244_v33, 16  ;;  %v1998_v40 = vrot.slane %v1990_v30, 1  ;;  %v2340_v55 = vpack.c.b16 %v2236_v56, %v2332_v22 }
 0x1ef   : > { %v1600_v12 = vadd.f32 %v5247_v16, %v1580_v62  ;;  %v1919_v14 = vrot.slane %v1917_v1, 1  ;;  %v2257_v11 = vrot.slane %v2255_v20, 1 }
 0x1f0   : > { %v2348_v61 = vrot.slane %v2340_v55, 1 }
 0x1f1   : > { %v1608_v37 = vmul.f32 0.1, %v1600_v12  ;;  %v1920_v43 = vor.u32 %v1919_v14, %v1915_v23  ;;  %v2258_v51 = vor.u32 %v2257_v11, %v2253_v35  ;;  %v1531_v23 = vpop.f32.mrf.mxu2 }
 0x1f2   : > { %2046 = vrot.lane.b32.xlu1 %v2037_v15, %s4759_s29  ;;  %2174 = vrot.lane.b32.xlu0 %v2165_v17, %s4754_s24 }
 0x1f3   : > { %v1616_v26 = vmax.f32 %v1600_v12, %v1608_v37 }
 0x1f4   : > { %v1581_v27 = vpop.f32.mrf.mxu3 }
 0x1f5   : > { %v1646_v25 = vpack.c.bf16 %v1616_v26, %v1616_v26  ;;  %1960 = vrot.lane.b32.xlu2 %v1920_v43, %s4754_s24  ;;  %v1582_v32 = vadd.f32 %v1581_v27, %v1528_v29 }
 0x1f7   : > { %v1669_v19 = vshrl.u32 %v1646_v25, 16  ;;  %v1601_v38 = vadd.f32 %v5247_v16, %v1582_v32  ;;  %v1672_v21 = vshll.u32 %v1646_v25, 16 }
 0x1f9   : > { %v1671_v24 = vrot.slane %v1669_v19, 7  ;;  %v1609_v31 = vmul.f32 0.1, %v1601_v38  ;;  %v2486_v19 = vunpack.c.l.b16 %v2348_v61 }
 0x1fa   : > { %2008 = vrot.lane.b32.xlu1 %v1998_v40, %s4757_s27  ;;  %2308 = vrot.lane.b32.xlu0 %v2258_v51, %s4759_s29 }
 0x1fb   : > { %v1674_v45 = vor.u32 %v1672_v21, %v1671_v24  ;;  %v1675_v46 = vrot.slane %v1671_v24, 4  ;;  %v1617_v50 = vmax.f32 %v1601_v38, %v1609_v31 }
 0x1fd   : > { %v1752_v60 = vsel %vm5253_vm11, %v1674_v45, %v1751_v42  ;;  %v1755_v13 = vsel %vm5258_vm12, %v1675_v46, %v1754_v44  ;;  %v1647_v36 = vpack.c.bf16 %v1617_v50, %v1617_v50 }
 0x1fe   : > { %1753 = vst [vmem:[#allocation2 + $0x18] sm:$0xf] %v1752_v60 }
 0x1ff   : > { %1756 = vst [vmem:[#allocation2 + $0x1c] sm:$0x1] %v1755_v13  ;;  %v1677_v7 = vshrl.u32 %v1647_v36, 16  ;;  %v1680_v34 = vshll.u32 %v1647_v36, 16 }
 0x201   : > { %v1679_v39 = vrot.slane %v1677_v7, 7 }
 0x203   : > { %v1682_v58 = vor.u32 %v1680_v34, %v1679_v39  ;;  %v1683_v59 = vrot.slane %v1679_v39, 4 }
 0x205   : > { %v1758_v47 = vsel %vm5253_vm11, %v1682_v58, %v1757_v54  ;;  %v1761_v63 = vsel %vm5258_vm12, %v1683_v59, %v1760_v57  ;;  %v1837_v0 = vld [vmem:[#allocation2 + $0x18] sm:$0xf] }
 0x206   : > { %v1813_v4 = vld [vmem:[#allocation2 + $0x18] sm:$0xf]  ;;  %1759 = vst [vmem:[#allocation2 + $0x20] sm:$0xf] %v1758_v47  ;;  %v2197_v8 = vunpack.c.l.b16 %v1837_v0  ;;  %v1845_v56 = vld [vmem:[#allocation2 + $0x1c] sm:$0x1] }
 0x207   : > { %v1853_v5 = vld [vmem:[#allocation2 + $0x18] sm:$0xe]  ;;  %v2030_v1 = vunpack.c.l.b16 %v1813_v4  ;;  %v1821_v62 = vld [vmem:[#allocation2 + $0x1c] sm:$0x1]  ;;  %1762 = vst [vmem:[#allocation2 + $0x24] sm:$0x1] %v1761_v63  ;;  %v2237_v9 = vunpack.c.l.b16 %v1845_v56 }
 0x208   : > { %v2333_v33 = vunpack.c.l.b16 %v1853_v5  ;;  %v1829_v10 = vld [vmem:[#allocation2 + $0x18] sm:$0xe]  ;;  %v2070_v12 = vunpack.c.l.b16 %v1821_v62  ;;  %v2205_v15 = vpack.c.b16 %v2197_v8, %v2197_v8  ;;  %v1798_v20 = vld [vmem:[#allocation2 + $0x1c] sm:$0x1] }
 0x209   : > { %v5306_v14 = vld [vmem:[#allocation2 + $0x18] sm:$0xf]  ;;  %v2038_v17 = vpack.c.b16 %v2030_v1, %v2030_v1  ;;  %v2150_v18 = vunpack.c.l.b16 %v1829_v10  ;;  %v2245_v29 = vpack.c.b16 %v2237_v9, %v2197_v8  ;;  %v1883_v27 = vunpack.c.l.b16 %v1798_v20  ;;  %v1533_v8 = vpop.f32.mrf.mxu2 }
 0x20a   : > { %v1882_v37 = vunpack.c.l.b16 %v5306_v14  ;;  %v2341_v26 = vpack.c.b16 %v2237_v9, %v2333_v33  ;;  %v5309_v43 = vpack.c.b16 %v2070_v12, %v2030_v1  ;;  %2214 = vrot.lane.b32.xlu2 %v2205_v15, %s4757_s27  ;;  %v1806_v35 = vld [vmem:[#allocation2 + $0x18] sm:$0xe] }
 0x20b   : > { %2048 = vrot.lane.b32.xlu0 %v2038_v17, %s4759_s29  ;;  %v2158_v30 = vpack.c.b16 %v2070_v12, %v2150_v18  ;;  %v2262_v11 = vshll.u32 %v2245_v29, 16  ;;  %v2260_v40 = vshrl.u32 %v2245_v29, 16  ;;  %v1983_v45 = vunpack.c.l.b16 %v1806_v35  ;;  %v1763_v35 = vld [vmem:[#allocation2 + $0x28] sm:$0xf] }
 0x20c   : > { %v2349_v25 = vrot.slane %v2341_v26, 1  ;;  %v1895_v32 = vpack.c.b16 %v1883_v27, %v1882_v37 }
 0x20d   : > { %v1584_v38 = vpop.f32.mrf.mxu3  ;;  %v2264_v51 = vrot.slane %v2262_v11, 1  ;;  %v1838_v31 = vld [vmem:[#allocation2 + $0x20] sm:$0xf]  ;;  %v2166_v42 = vrot.slane %v2158_v30, 1  ;;  %v1991_v56 = vpack.c.b16 %v1883_v27, %v1983_v45 }
 0x20e   : > { %v2489_v24 = vunpack.c.l.b16 %v2349_v25  ;;  %v1924_v21 = vshll.u32 %v1895_v32, 16  ;;  %v1585_v41 = vadd.f32 %v1584_v38, %v1531_v23  ;;  %v1922_v44 = vshrl.u32 %v1895_v32, 16  ;;  %v1822_v46 = vld [vmem:[#allocation2 + $0x24] sm:$0x1]  ;;  %v1830_v50 = vld [vmem:[#allocation2 + $0x20] sm:$0xe] }
 0x20f   : > { %v2265_v22 = vor.u32 %v2264_v51, %v2260_v40  ;;  %v2071_v36 = vunpack.c.l.b16 %v1822_v46  ;;  %v1814_v7 = vld [vmem:[#allocation2 + $0x20] sm:$0xf]  ;;  %v2198_v34 = vunpack.c.l.b16 %v1838_v31  ;;  %v2151_v54 = vunpack.c.l.b16 %v1830_v50  ;;  %v1799_v58 = vld [vmem:[#allocation2 + $0x24] sm:$0x1] }
 0x210   : > { %v2550_v60 = vpack.c.b16 %v2489_v24, %v2486_v19  ;;  %v1926_v13 = vrot.slane %v1924_v21, 1  ;;  %v5313_v55 = vld [vmem:[#allocation2 + $0x20] sm:$0xf]  ;;  %v1602_v39 = vadd.f32 %v5247_v16, %v1585_v41  ;;  %v2031_v57 = vunpack.c.l.b16 %v1814_v7  ;;  %v1846_v59 = vld [vmem:[#allocation2 + $0x24] sm:$0x1] }
 0x211   : > { %2310 = vrot.lane.b32.xlu1 %v2265_v22, %s4759_s29  ;;  %v1884_v47 = vunpack.c.l.b16 %v5313_v55  ;;  %v1885_v63 = vunpack.c.l.b16 %v1799_v58  ;;  %v2238_v0 = vunpack.c.l.b16 %v1846_v59  ;;  %v2159_v9 = vpack.c.b16 %v2071_v36, %v2151_v54  ;;  %v1807_v30 = vld [vmem:[#allocation2 + $0x20] sm:$0xe]  ;;  %v1766_v19 = vld [vmem:[#allocation2 + $0x2c] sm:$0x1]  ;;  %v1769_v58 = vld [vmem:[#allocation2 + $0x30] sm:$0xf] }
 0x212   : > { %4512 = vmatmul.msk.bf16.vlgmr.msrb.gmra.mxu3 %vm1148_vm1, %v2550_v60  ;;  %v1927_v61 = vor.u32 %v1926_v13, %v1922_v44  ;;  %v1610_v4 = vmul.f32 0.1, %v1602_v39  ;;  %2176 = vrot.lane.b32.xlu2 %v2166_v42, %s4754_s24  ;;  %v5320_v5 = vpack.c.b16 %v2071_v36, %v2031_v57  ;;  %v2206_v17 = vpack.c.b16 %v2198_v34, %v2198_v34  ;;  %v1854_v32 = vld [vmem:[#allocation2 + $0x20] sm:$0xe]  ;;  %v1772_v59 = vld [vmem:[#allocation2 + $0x34] sm:$0x1] }
 0x213   : > { %v1896_v33 = vpack.c.b16 %v1885_v63, %v1884_v47  ;;  %v2246_v10 = vpack.c.b16 %v2238_v0, %v2198_v34  ;;  %v1999_v37 = vrot.slane %v1991_v56, 1  ;;  %v2167_v29 = vrot.slane %v2159_v9, 1 }
 0x214   : > { %1962 = vrot.lane.b32.xlu0 %v1927_v61, %s4754_s24  ;;  %v1618_v1 = vmax.f32 %v1602_v39, %v1610_v4  ;;  %v1984_v31 = vunpack.c.l.b16 %v1807_v30  ;;  %v2334_v41 = vunpack.c.l.b16 %v1854_v32  ;;  %v2039_v50 = vpack.c.b16 %v2031_v57, %v2031_v57 }
 0x215   : > { %v1586_v62 = vpop.f32.mrf.mxu3  ;;  %v1931_v23 = vshll.u32 %v1896_v33, 16  ;;  %v2269_v26 = vshll.u32 %v2246_v10, 16  ;;  %v1929_v46 = vshrl.u32 %v1896_v33, 16  ;;  %v2267_v22 = vshrl.u32 %v2246_v10, 16 }
 0x216   : > { %v1648_v12 = vpack.c.bf16 %v1618_v1, %v1618_v1  ;;  %v1587_v15 = vadd.f32 %v1586_v62, %v1533_v8  ;;  %v1992_v7 = vpack.c.b16 %v1885_v63, %v1984_v31  ;;  %v2342_v39 = vpack.c.b16 %v2238_v0, %v2334_v41 }
 0x217   : > { %v1933_v24 = vrot.slane %v1931_v23, 1  ;;  %v2271_v21 = vrot.slane %v2269_v26, 1 }
 0x218   : > { %v1685_v18 = vshrl.u32 %v1648_v12, 16  ;;  %v1603_v20 = vadd.f32 %v5247_v16, %v1587_v15  ;;  %v1688_v25 = vshll.u32 %v1648_v12, 16  ;;  %v2000_v57 = vrot.slane %v1992_v7, 1 }
 0x219   : > { %2216 = vrot.lane.b32.xlu1 %v2206_v17, %s4757_s27  ;;  %v1934_v13 = vor.u32 %v1933_v24, %v1929_v46  ;;  %v2272_v36 = vor.u32 %v2271_v21, %v2267_v22  ;;  %v2350_v4 = vrot.slane %v2342_v39, 1  ;;  %v4678_v22 = vld [vmem:[%s5933_s7 + $0x38] sm:$0xff] }
 0x21a   : > { %v1687_v11 = vrot.slane %v1685_v18, 7  ;;  %v1611_v27 = vmul.f32 0.1, %v1603_v20  ;;  %2010 = vrot.lane.b32.xlu2 %v1999_v37, %s4757_s27  ;;  %2688 = vmatpush.bf16.msrb.mxu1 %v4678_v22  ;;  %v4673_v22 = vld [vmem:[%s5933_s7 + $0x10] sm:$0xff] }
 0x21c   : > { %2178 = vrot.lane.b32.xlu0 %v2167_v29, %s4754_s24  ;;  %v1690_v38 = vor.u32 %v1688_v25, %v1687_v11  ;;  %v1691_v40 = vrot.slane %v1687_v11, 4  ;;  %v1619_v51 = vmax.f32 %v1603_v20, %v1611_v27 }
 0x21e   : > { %v1764_v42 = vsel %vm5253_vm11, %v1690_v38, %v1763_v35  ;;  %v1767_v44 = vsel %vm5258_vm12, %v1691_v40, %v1766_v19  ;;  %v1649_v45 = vpack.c.bf16 %v1619_v51, %v1619_v51  ;;  %v2492_v40 = vunpack.c.l.b16 %v2350_v4 }
 0x21f   : > { %1765 = vst [vmem:[#allocation2 + $0x28] sm:$0xf] %v1764_v42 }
 0x220   : > { %1768 = vst [vmem:[#allocation2 + $0x2c] sm:$0x1] %v1767_v44  ;;  %v1693_v60 = vshrl.u32 %v1649_v45, 16  ;;  %v1696_v54 = vshll.u32 %v1649_v45, 16 }
 0x221   : > { %2050 = vrot.lane.b32.xlu1 %v2039_v50, %s4759_s29 }
 0x222   : > { %v1695_v34 = vrot.slane %v1693_v60, 7  ;;  %1964 = vrot.lane.b32.xlu2 %v1934_v13, %s4754_s24 }
 0x224   : > { %2312 = vrot.lane.b32.xlu0 %v2272_v36, %s4759_s29  ;;  %v1698_v61 = vor.u32 %v1696_v54, %v1695_v34  ;;  %v1699_v47 = vrot.slane %v1695_v34, 4 }
 0x226   : > { %v1770_v8 = vsel %vm5253_vm11, %v1698_v61, %v1769_v58  ;;  %v1773_v1 = vsel %vm5258_vm12, %v1699_v47, %v1772_v59  ;;  %v1839_v63 = vld [vmem:[#allocation2 + $0x28] sm:$0xf]  ;;  %v4677_v61 = vld [vmem:[%s5933_s7 + $0x30] sm:$0xff]  ;;  %v4686_v47 = vld [vmem:[%s5933_s7 + $0x78] sm:$0xff] }
 0x227   : > { %v1815_v0 = vld [vmem:[#allocation2 + $0x28] sm:$0xf]  ;;  %1771 = vst [vmem:[#allocation2 + $0x30] sm:$0xf] %v1770_v8  ;;  %v2199_v33 = vunpack.c.l.b16 %v1839_v63  ;;  %v1847_v9 = vld [vmem:[#allocation2 + $0x2c] sm:$0x1]  ;;  %2717 = vmatpush.bf16.msrb.mxu2 %v4686_v47  ;;  %2689 = vmatpush.bf16.msrb.mxu1 %v4677_v61 }
 0x228   : > { %v1855_v56 = vld [vmem:[#allocation2 + $0x28] sm:$0xe]  ;;  %v2032_v62 = vunpack.c.l.b16 %v1815_v0  ;;  %v1823_v12 = vld [vmem:[#allocation2 + $0x2c] sm:$0x1]  ;;  %1774 = vst [vmem:[#allocation2 + $0x34] sm:$0x1] %v1773_v1  ;;  %v2239_v15 = vunpack.c.l.b16 %v1847_v9 }
 0x229   : > { %v2335_v10 = vunpack.c.l.b16 %v1855_v56  ;;  %v1831_v17 = vld [vmem:[#allocation2 + $0x28] sm:$0xe]  ;;  %v2072_v18 = vunpack.c.l.b16 %v1823_v12  ;;  %2012 = vrot.lane.b32.xlu1 %v2000_v57, %s4757_s27  ;;  %v2207_v37 = vpack.c.b16 %v2199_v33, %v2199_v33  ;;  %v1800_v26 = vld [vmem:[#allocation2 + $0x2c] sm:$0x1]  ;;  %v1536_v57 = vpop.f32.mrf.mxu2 }
 0x22a   : > { %v5338_v20 = vld [vmem:[#allocation2 + $0x28] sm:$0xf]  ;;  %v2040_v23 = vpack.c.b16 %v2032_v62, %v2032_v62  ;;  %v2152_v29 = vunpack.c.l.b16 %v1831_v17  ;;  %v2247_v11 = vpack.c.b16 %v2239_v15, %v2199_v33  ;;  %v1887_v32 = vunpack.c.l.b16 %v1800_v26 }
 0x22b   : > { %v1886_v30 = vunpack.c.l.b16 %v5338_v20  ;;  %v2343_v25 = vpack.c.b16 %v2239_v15, %v2335_v10  ;;  %v5342_v27 = vpack.c.b16 %v2072_v18, %v2032_v62  ;;  %2218 = vrot.lane.b32.xlu2 %v2207_v37, %s4757_s27  ;;  %v1808_v24 = vld [vmem:[#allocation2 + $0x28] sm:$0xe]  ;;  %v4685_v15 = vld [vmem:[%s5933_s7 + $0x70] sm:$0xff] }
 0x22c   : > { %2052 = vrot.lane.b32.xlu0 %v2040_v23, %s4759_s29  ;;  %v2276_v35 = vshll.u32 %v2247_v11, 16  ;;  %v2160_v51 = vpack.c.b16 %v2072_v18, %v2152_v29  ;;  %v2274_v21 = vshrl.u32 %v2247_v11, 16  ;;  %v1985_v54 = vunpack.c.l.b16 %v1808_v24  ;;  %v4676_v9 = vld [vmem:[%s5933_s7 + $0x28] sm:$0xff]  ;;  %2718 = vmatpush.bf16.msrb.mxu2 %v4685_v15  ;;  %v4675_v29 = vld [vmem:[%s5933_s7 + $0x20] sm:$0xff] }
 0x22d   : > { %v2351_v19 = vrot.slane %v2343_v25, 1  ;;  %v1897_v38 = vpack.c.b16 %v1887_v32, %v1886_v30  ;;  %2690 = vmatpush.bf16.msrb.mxu1 %v4676_v9  ;;  %v4671_v15 = vld [vmem:[%s5933_s7] sm:$0xff] }
 0x22e   : > { %v2278_v31 = vrot.slane %v2276_v35, 1  ;;  %v1840_v44 = vld [vmem:[#allocation2 + $0x30] sm:$0xf]  ;;  %v2168_v34 = vrot.slane %v2160_v51, 1  ;;  %v1993_v62 = vpack.c.b16 %v1887_v32, %v1985_v54 }
 0x22f   : > { %v2495_v41 = vunpack.c.l.b16 %v2351_v19  ;;  %v1938_v42 = vshll.u32 %v1897_v38, 16  ;;  %v1936_v45 = vshrl.u32 %v1897_v38, 16  ;;  %v1824_v46 = vld [vmem:[#allocation2 + $0x34] sm:$0x1]  ;;  %v1832_v50 = vld [vmem:[#allocation2 + $0x30] sm:$0xe]  ;;  %v2200_v8 = vunpack.c.l.b16 %v1840_v44 }
 0x230   : > { %v2279_v60 = vor.u32 %v2278_v31, %v2274_v21  ;;  %v2073_v7 = vunpack.c.l.b16 %v1824_v46  ;;  %v1816_v39 = vld [vmem:[#allocation2 + $0x30] sm:$0xf]  ;;  %v5349_v59 = vld [vmem:[#allocation2 + $0x34] sm:$0x1]  ;;  %v2153_v1 = vunpack.c.l.b16 %v1832_v50  ;;  %v2001_v23 = vrot.slane %v1993_v62, 1  ;;  %v4674_v38 = vld [vmem:[%s5933_s7 + $0x18] sm:$0xff] }
 0x231   : > { %v2553_v13 = vpack.c.b16 %v2495_v41, %v2492_v40  ;;  %v1940_v36 = vrot.slane %v1938_v42, 1  ;;  %v2033_v58 = vunpack.c.l.b16 %v1816_v39  ;;  %v2240_v63 = vunpack.c.l.b16 %v5349_v59  ;;  %v1538_v25 = vpop.f32.mrf.mxu2  ;;  %2691 = vmatpush.bf16.msrb.mxu1 %v4675_v29  ;;  %v4684_v40 = vld [vmem:[%s5933_s7 + $0x68] sm:$0xff]  ;;  %v5386_v42 = vld [vmem:[#allocation2 + $0x30] sm:$0xf]  ;;  %v5388_v44 = vld [vmem:[#allocation2 + $0x34] sm:$0x1] }
 0x232   : > { %2314 = vrot.lane.b32.xlu1 %v2279_v60, %s4759_s29  ;;  %v2161_v10 = vpack.c.b16 %v2073_v7, %v2153_v1  ;;  %v2208_v18 = vpack.c.b16 %v2200_v8, %v2200_v8  ;;  %2719 = vmatpush.bf16.msrb.mxu2 %v4684_v40  ;;  %v1775_v60 = vld [vmem:[#allocation2 + $0x38] sm:$0xf]  ;;  %v1889_v54 = vunpack.c.l.b16 %v5388_v44  ;;  %v4683_v1 = vld [vmem:[%s5933_s7 + $0x60] sm:$0xff]  ;;  %v4680_v44 = vld [vmem:[%s5933_s7 + $0x48] sm:$0xff] }
 0x233   : > { %4513 = vmatmul.msk.bf16.gmra.mxu3 %vm1148_vm1, %v2553_v13  ;;  %v1941_v4 = vor.u32 %v1940_v36, %v1936_v45  ;;  %2180 = vrot.lane.b32.xlu2 %v2168_v34, %s4754_s24  ;;  %v5361_v0 = vpack.c.b16 %v2073_v7, %v2033_v58  ;;  %v2248_v12 = vpack.c.b16 %v2240_v63, %v2200_v8  ;;  %v1778_v13 = vld [vmem:[#allocation2 + $0x3c] sm:$0x1]  ;;  %v1888_v34 = vunpack.c.l.b16 %v5386_v42  ;;  %v4672_v8 = vld [vmem:[%s5933_s7 + $0x8] sm:$0xff] }
 0x234   : > { %v1589_v56 = vpop.f32.mrf.mxu3  ;;  %v2169_v26 = vrot.slane %v2161_v10, 1  ;;  %v2041_v31 = vpack.c.b16 %v2033_v58, %v2033_v58  ;;  %v5397_v58 = vpop.permute.xlu2 %1956 }
 0x235   : > { %1966 = vrot.lane.b32.xlu0 %v1941_v4, %s4754_s24  ;;  %v1590_v33 = vadd.f32 %v1589_v56, %v1536_v57  ;;  %v2283_v30 = vshll.u32 %v2248_v12, 16  ;;  %v2281_v41 = vshrl.u32 %v2248_v12, 16  ;;  %2692 = vmatpush.bf16.msrb.mxu1 %v4674_v38  ;;  %v1856_v4 = vld [vmem:[#allocation2 + $0x30] sm:$0xe]  ;;  %v1898_v9 = vpack.c.b16 %v1889_v54, %v1888_v34 }
 0x236   : > { %v2336_v62 = vunpack.c.l.b16 %v1856_v4  ;;  %2720 = vmatpush.bf16.msrb.mxu2 %v4683_v1 }
 0x237   : > { %v1604_v17 = vadd.f32 %v5247_v16, %v1590_v33  ;;  %v2285_v51 = vrot.slane %v2283_v30, 1  ;;  %v5409_v33 = vpop.permute.xlu1 %2004 }
 0x238   : > { %v2344_v29 = vpack.c.b16 %v2240_v63, %v2336_v62 }
 0x239   : > { %v1612_v37 = vmul.f32 0.1, %v1604_v17  ;;  %2693 = vmatpush.bf16.msrb.mxu1 %v4673_v22  ;;  %v4682_v22 = vld [vmem:[%s5933_s7 + $0x58] sm:$0xff] }
 0x23a   : > { %2220 = vrot.lane.b32.xlu1 %v2208_v18, %s4757_s27  ;;  %v1784_v18 = vld [vmem:[#allocation2 + $0x44] sm:$0x1]  ;;  %2721 = vmatpush.bf16.msrb.mxu2 %v4682_v22 }
 0x23b   : > { %v1620_v11 = vmax.f32 %v1604_v17, %v1612_v37  ;;  %2014 = vrot.lane.b32.xlu2 %v2001_v23, %s4757_s27  ;;  %v1781_v17 = vld [vmem:[#allocation2 + $0x40] sm:$0xf] }
 0x23c   : > { %v1591_v32 = vpop.f32.mrf.mxu3  ;;  %v5427_v63 = vpop.permute.xlu2 %2226 }
 0x23d   : > { %2182 = vrot.lane.b32.xlu0 %v2169_v26, %s4754_s24  ;;  %v1650_v35 = vpack.c.bf16 %v1620_v11, %v1620_v11  ;;  %v1592_v19 = vadd.f32 %v1591_v32, %v1538_v25  ;;  %2694 = vmatpush.bf16.msrb.mxu1 %v4672_v8  ;;  %v1945_v26 = vshll.u32 %v1898_v9, 16 }
 0x23f   : > { %v1701_v24 = vshrl.u32 %v1650_v35, 16  ;;  %v1605_v21 = vadd.f32 %v5247_v16, %v1592_v19  ;;  %v1704_v46 = vshll.u32 %v1650_v35, 16  ;;  %v2286_v16 = vor.u32 %v2285_v51, %v2281_v41  ;;  %v5439_v34 = vpop.permute.xlu1 %2322 }
 0x241   : > { %v1703_v45 = vrot.slane %v1701_v24, 7  ;;  %v1613_v50 = vmul.f32 0.1, %v1605_v21  ;;  %2695 = vmatpush.bf16.msrb.mxu1 %v4671_v15 }
 0x242   : > { %2054 = vrot.lane.b32.xlu1 %v2041_v31, %s4759_s29  ;;  %v1809_v31 = vld [vmem:[#allocation2 + $0x30] sm:$0xe] }
 0x243   : > { %v1706_v36 = vor.u32 %v1704_v46, %v1703_v45  ;;  %v1707_v7 = vrot.slane %v1703_v45, 4  ;;  %v1621_v39 = vmax.f32 %v1605_v21, %v1613_v50  ;;  %v2352_v46 = vrot.slane %v2344_v29, 1 }
 0x244   : > { %v1947_v50 = vrot.slane %v1945_v26, 1  ;;  %v1986_v8 = vunpack.c.l.b16 %v1809_v31 }
 0x245   : > { %2316 = vrot.lane.b32.xlu0 %v2286_v16, %s4759_s29  ;;  %v1776_v61 = vsel %vm5253_vm11, %v1706_v36, %v1775_v60  ;;  %v1779_v47 = vsel %vm5258_vm12, %v1707_v7, %v1778_v13  ;;  %v1651_v57 = vpack.c.bf16 %v1621_v39, %v1621_v39  ;;  %v1859_v39 = vld [vmem:[#allocation2 + $0x48] sm:$0xe]  ;;  %v2498_v62 = vunpack.c.l.b16 %v2352_v46 }
 0x246   : > { %1777 = vst [vmem:[#allocation2 + $0x38] sm:$0xf] %v1776_v61  ;;  %v1943_v61 = vshrl.u32 %v1898_v9, 16  ;;  %v2339_v15 = vunpack.c.l.b16 %v1859_v39 }
 0x247   : > { %1780 = vst [vmem:[#allocation2 + $0x3c] sm:$0x1] %v1779_v47  ;;  %v1709_v56 = vshrl.u32 %v1651_v57, 16  ;;  %v1712_v12 = vshll.u32 %v1651_v57, 16 }
 0x248   : > { %v2347_v39 = vpack.c.b16 %v2243_v3, %v2339_v15 }
 0x249   : > { %v1711_v10 = vrot.slane %v1709_v56, 7 }
 0x24b   : > { %v1714_v37 = vor.u32 %v1712_v12, %v1711_v10  ;;  %v1715_v23 = vrot.slane %v1711_v10, 4  ;;  %v1948_v12 = vor.u32 %v1947_v50, %v1943_v61 }
 0x24d   : > { %v1782_v30 = vsel %vm5253_vm11, %v1714_v37, %v1781_v17  ;;  %v1785_v11 = vsel %vm5258_vm12, %v1715_v23, %v1784_v18  ;;  %v1841_v25 = vld [vmem:[#allocation2 + $0x38] sm:$0xf]  ;;  %v4681_v17 = vld [vmem:[%s5933_s7 + $0x50] sm:$0xff] }
 0x24e   : > { %v1857_v32 = vld [vmem:[#allocation2 + $0x38] sm:$0xe]  ;;  %1783 = vst [vmem:[#allocation2 + $0x40] sm:$0xf] %v1782_v30  ;;  %v2201_v19 = vunpack.c.l.b16 %v1841_v25  ;;  %v1849_v38 = vld [vmem:[#allocation2 + $0x3c] sm:$0x1]  ;;  %2722 = vmatpush.bf16.msrb.mxu2 %v4681_v17 }
 0x24f   : > { %v5422_v35 = vld [vmem:[#allocation2 + $0x38] sm:$0xf]  ;;  %v2337_v40 = vunpack.c.l.b16 %v1857_v32  ;;  %v5424_v51 = vld [vmem:[#allocation2 + $0x3c] sm:$0x1]  ;;  %1786 = vst [vmem:[#allocation2 + $0x44] sm:$0x1] %v1785_v11  ;;  %v2241_v24 = vunpack.c.l.b16 %v1849_v38 }
 0x250   : > { %v1890_v59 = vunpack.c.l.b16 %v5422_v35  ;;  %v1891_v21 = vunpack.c.l.b16 %v5424_v51  ;;  %v5430_v41 = vld [vmem:[#allocation2 + $0x3c] sm:$0x1]  ;;  %v2209_v45 = vpack.c.b16 %v2201_v19, %v2201_v19  ;;  %v1817_v60 = vld [vmem:[#allocation2 + $0x38] sm:$0xf] }
 0x251   : > { %v2345_v13 = vpack.c.b16 %v2241_v24, %v2337_v40  ;;  %v2249_v16 = vpack.c.b16 %v2241_v24, %v2201_v19  ;;  %v2074_v7 = vunpack.c.l.b16 %v5430_v41  ;;  %v5441_v47 = vunpack.c.l.b16 %v1817_v60  ;;  %v1833_v1 = vld [vmem:[#allocation2 + $0x38] sm:$0xe] }
 0x252   : > { %v1899_v36 = vpack.c.b16 %v1891_v21, %v1890_v59  ;;  %2222 = vrot.lane.b32.xlu2 %v2209_v45, %s4757_s27  ;;  %v2154_v32 = vunpack.c.l.b16 %v1833_v1  ;;  %2723 = vmatpush.bf16.msrb.mxu2 %v4680_v44 }
 0x253   : > { %v2353_v57 = vrot.slane %v2345_v13, 1  ;;  %v2290_v4 = vshll.u32 %v2249_v16, 16  ;;  %v2288_v37 = vshrl.u32 %v2249_v16, 16  ;;  %v5447_v26 = vpack.c.b16 %v2074_v7, %v5441_v47  ;;  %v5449_v13 = vpop.permute.xlu2 %2172 }
 0x254   : > { %v2045_v56 = vpop.permute.xlu0 %2044  ;;  %v1952_v10 = vshll.u32 %v1899_v36, 16  ;;  %v1950_v30 = vshrl.u32 %v1899_v36, 16  ;;  %v1994_v16 = vpack.c.b16 %v1889_v54, %v1986_v8  ;;  %v2355_v8 = vrot.slane %v2347_v39, 1 }
 0x255   : > { %v2501_v18 = vunpack.c.l.b16 %v2353_v57  ;;  %v2292_v23 = vrot.slane %v2290_v4, 1  ;;  %v1834_v9 = vld [vmem:[#allocation2 + $0x40] sm:$0xe]  ;;  %v2094_v39 = vshll.u32 %v5283_v48, 16 }
 0x256   : > { %v1858_v29 = vld [vmem:[#allocation2 + $0x40] sm:$0xe]  ;;  %v1954_v11 = vrot.slane %v1952_v10, 1  ;;  %v1826_v25 = vld [vmem:[#allocation2 + $0x44] sm:$0x1]  ;;  %v2155_v50 = vunpack.c.l.b16 %v1834_v9  ;;  %v2162_v10 = vpack.c.b16 %v2074_v7, %v2154_v32  ;;  %v2002_v3 = vrot.slane %v1994_v16, 1 }
 0x257   : > { %v1850_v19 = vld [vmem:[#allocation2 + $0x44] sm:$0x1]  ;;  %v2338_v38 = vunpack.c.l.b16 %v1858_v29  ;;  %v2556_v40 = vpack.c.b16 %v2501_v18, %v2498_v62  ;;  %v2293_v59 = vor.u32 %v2292_v23, %v2288_v37  ;;  %v2075_v24 = vunpack.c.l.b16 %v1826_v25  ;;  %v1842_v41 = vld [vmem:[#allocation2 + $0x40] sm:$0xf]  ;;  %v1810_v18 = vld [vmem:[#allocation2 + $0x38] sm:$0xe] }
 0x258   : > { %v2242_v31 = vunpack.c.l.b16 %v1850_v19  ;;  %v1818_v45 = vld [vmem:[#allocation2 + $0x40] sm:$0xf]  ;;  %v1955_v46 = vor.u32 %v1954_v11, %v1950_v30  ;;  %v2202_v22 = vunpack.c.l.b16 %v1842_v41  ;;  %v2170_v37 = vrot.slane %v2162_v10, 1 }
 0x259   : > { %v2035_v60 = vunpack.c.l.b16 %v1818_v45  ;;  %4514 = vmatmul.msk.bf16.gmra.mxu3 %vm1148_vm1, %v2556_v40  ;;  %2318 = vrot.lane.b32.xlu1 %v2293_v59, %s4759_s29  ;;  %v4743_v57 = vld [vmem:[#allocation2] sm:$0xf]  ;;  %v2163_v62 = vpack.c.b16 %v2075_v24, %v2155_v50  ;;  %v1987_v23 = vunpack.c.l.b16 %v1810_v18  ;;  %v2507_v30 = vunpack.c.l.b16 %v2355_v8 }
 0x25a   : > { %1970 = vrot.lane.b32.xlu0 %v1955_v46, %s4754_s24  ;;  %1968 = vrot.lane.b32.xlu2 %v1948_v12, %s4754_s24  ;;  %v2346_v36 = vpack.c.b16 %v2242_v31, %v2338_v38  ;;  %v2358_v4 = vsel %vm1148_vm1, %v4743_v57, %v5397_v58  ;;  %v2250_v17 = vpack.c.b16 %v2242_v31, %v2202_v22 }
 0x25b   : > { %v5459_v61 = vpack.c.b16 %v2075_v24, %v2035_v60  ;;  %v2381_v49 = vsel %vm1182_vm3, %v2358_v4, %v5409_v33  ;;  %v2171_v15 = vrot.slane %v2163_v62, 1  ;;  %v2007_v9 = vpop.permute.xlu2 %2006  ;;  %v1995_v19 = vpack.c.b16 %v1891_v21, %v1987_v23  ;;  %v4679_v24 = vld [vmem:[%s5933_s7 + $0x40] sm:$0xff] }
 0x25c   : > { %v5463_v1 = vpop.permute.xlu1 %2212  ;;  %v1959_v12 = vpop.permute.xlu0 %1958  ;;  %v2354_v54 = vrot.slane %v2346_v36, 1  ;;  %v2297_v58 = vshll.u32 %v2250_v17, 16  ;;  %v2397_v33 = vsel %vm1216_vm5, %v2381_v49, %v2045_v56  ;;  %v2295_v59 = vshrl.u32 %v2250_v17, 16  ;;  %2724 = vmatpush.bf16.msrb.mxu2 %v4679_v24 }
 0x25d   : > { %v2361_v7 = vsel %vm1148_vm1, %v5270_v28, %v1959_v12  ;;  %v2484_v38 = vunpack.c.l.b16 %v2397_v33  ;;  %v2210_v56 = vpack.c.b16 %v2202_v22, %v2202_v22  ;;  %v2003_v45 = vrot.slane %v1995_v19, 1 }
 0x25e   : > { %v2504_v29 = vunpack.c.l.b16 %v2354_v54  ;;  %v2383_v25 = vsel %vm1182_vm3, %v2361_v7, %v2007_v9  ;;  %v2299_v32 = vrot.slane %v2297_v58, 1  ;;  %v2043_v50 = vpack.c.b16 %v2035_v60, %v2035_v60 }
 0x25f   : > { %v2042_v16 = vpack.c.b16 %v5441_v47, %v5441_v47  ;;  %v2087_v36 = vshll.u32 %v5273_v52, 16  ;;  %v2096_v62 = vrot.slane %v2094_v39, 1  ;;  %v2085_v17 = vshrl.u32 %v5273_v52, 16 }
 0x260   : > { %v2559_v31 = vpack.c.b16 %v2507_v30, %v2504_v29  ;;  %v2300_v41 = vor.u32 %v2299_v32, %v2295_v59  ;;  %v2092_v60 = vshrl.u32 %v5283_v48, 16  ;;  %v2101_v59 = vshll.u32 %v5309_v43, 16 }
 0x261   : > { %2016 = vrot.lane.b32.xlu1 %v2002_v3, %s4757_s27  ;;  %v2089_v4 = vrot.slane %v2087_v36, 1 }
 0x262   : > { %2186 = vrot.lane.b32.xlu0 %v2171_v15, %s4754_s24  ;;  %2184 = vrot.lane.b32.xlu2 %v2170_v37, %s4754_s24  ;;  %v2097_v47 = vor.u32 %v2096_v62, %v2092_v60 }
 0x263   : > { %v1961_v21 = vpop.permute.xlu2 %1960  ;;  %v2090_v12 = vor.u32 %v2089_v4, %v2085_v17 }
 0x264   : > { %v2047_v11 = vpop.permute.xlu1 %2046  ;;  %v2175_v51 = vpop.permute.xlu0 %2174  ;;  %v2364_v33 = vsel %vm1148_vm1, %v5277_v53, %v1961_v21  ;;  %v2108_v53 = vshll.u32 %v5320_v5, 16 }
 0x265   : > { %v2399_v28 = vsel %vm1216_vm5, %v2383_v25, %v2047_v11  ;;  %v2414_v44 = vsel %vm1148_vm1, %v2090_v12, %v5449_v13  ;;  %v2417_v49 = vsel %vm1148_vm1, %v2097_v47, %v2175_v51 }
 0x266   : > { %v2487_v40 = vunpack.c.l.b16 %v2399_v28  ;;  %v2437_v3 = vsel %vm1182_vm3, %v2414_v44, %v5463_v1 }
 0x268   : > { %v2548_v46 = vpack.c.b16 %v2487_v40, %v2484_v38 }
 0x269   : > { %4515 = vmatmul.msk.bf16.gmra.mxu3 %vm1148_vm1, %v2559_v31  ;;  %2224 = vrot.lane.b32.xlu1 %v2210_v56, %s4757_s27  ;;  %v2103_v31 = vrot.slane %v2101_v59, 1  ;;  %v2110_v56 = vrot.slane %v2108_v53, 1 }
 0x26a   : > { %2320 = vrot.lane.b32.xlu0 %v2300_v41, %s4759_s29  ;;  %2018 = vrot.lane.b32.xlu2 %v2003_v45, %s4757_s27  ;;  %v2099_v45 = vshrl.u32 %v5309_v43, 16 }
 0x26b   : > { %2696 = vmatmul.bf16.vlgmr.msrb.gmra.mxu1 %v2548_v46  ;;  %v2215_v57 = vpop.permute.xlu2 %2214  ;;  %v2106_v46 = vshrl.u32 %v5320_v5, 16 }
 0x26c   : > { %v2309_v22 = vpop.permute.xlu0 %2308  ;;  %v2009_v10 = vpop.permute.xlu1 %2008  ;;  %v2439_v37 = vsel %vm1182_vm3, %v2417_v49, %v2215_v57  ;;  %v2104_v51 = vor.u32 %v2103_v31, %v2099_v45  ;;  %v2129_v45 = vshll.u32 %v5447_v26, 16 }
 0x26d   : > { %v2453_v8 = vsel %vm1216_vm5, %v2437_v3, %v2309_v22  ;;  %v2385_v30 = vsel %vm1182_vm3, %v2364_v33, %v2009_v10 }
 0x26e   : > { %v2485_v48 = vunpack.c.l.b16 %v2453_v8 }
 0x271   : > { %2058 = vrot.lane.b32.xlu1 %v2043_v50, %s4759_s29  ;;  %v2111_v50 = vor.u32 %v2110_v56, %v2106_v46  ;;  %v2134_v46 = vshrl.u32 %v5459_v61, 16 }
 0x272   : > { %2056 = vrot.lane.b32.xlu0 %v2042_v16, %s4759_s29 }
 0x273   : > { %v2177_v54 = vpop.permute.xlu2 %2176 }
 0x274   : > { %v2420_v16 = vsel %vm1148_vm1, %v2104_v51, %v2177_v54 }
 0x27b   : > { %v2011_v9 = vpop.permute.xlu2 %2010 }
 0x27d   : > { %v2049_v18 = vpop.permute.xlu0 %2048 }
 0x27e   : > { %v2401_v11 = vsel %vm1216_vm5, %v2385_v30, %v2049_v18 }
 0x27f   : > { %v2490_v38 = vunpack.c.l.b16 %v2401_v11 }
 0x283   : > { %v2311_v15 = vpop.permute.xlu1 %2310  ;;  %v1965_v28 = vpop.permute.xlu2 %1964 }
 0x284   : > { %v2455_v52 = vsel %vm1216_vm5, %v2439_v37, %v2311_v15  ;;  %v2370_v47 = vsel %vm1148_vm1, %v5313_v55, %v1965_v28  ;;  %v2115_v55 = vshll.u32 %v5342_v27, 16 }
 0x285   : > { %v2488_v58 = vunpack.c.l.b16 %v2455_v52 }
 0x286   : > { %v1963_v23 = vpop.permute.xlu0 %1962 }
 0x287   : > { %v2549_v7 = vpack.c.b16 %v2488_v58, %v2485_v48  ;;  %v2367_v1 = vsel %vm1148_vm1, %v5306_v14, %v1963_v23 }
 0x288   : > { %v2387_v32 = vsel %vm1182_vm3, %v2367_v1, %v2011_v9  ;;  %v2120_v1 = vshrl.u32 %v5361_v0, 16 }
 0x289   : > { %2725 = vmatmul.bf16.vlgmr.msrb.gmra.mxu2 %v2549_v7  ;;  %v2122_v7 = vshll.u32 %v5361_v0, 16  ;;  %v2136_v0 = vshll.u32 %v5459_v61, 16 }
 0x28b   : > { %v2217_v13 = vpop.permute.xlu1 %2216  ;;  %v2219_v21 = vpop.permute.xlu2 %2218  ;;  %v2124_v9 = vrot.slane %v2122_v7, 1 }
 0x28c   : > { %v2441_v36 = vsel %vm1182_vm3, %v2420_v16, %v2217_v13  ;;  %v2113_v13 = vshrl.u32 %v5342_v27, 16  ;;  %v4691_v16 = vld [vmem:[%s5935_s9 + $0x10] sm:$0xff] }
 0x28d   : > { %v2125_v11 = vor.u32 %v2124_v9, %v2120_v1 }
 0x28e   : > { %v2179_v29 = vpop.permute.xlu0 %2178 }
 0x28f   : > { %v2423_v22 = vsel %vm1148_vm1, %v2111_v50, %v2179_v29 }
 0x290   : > { %v2443_v62 = vsel %vm1182_vm3, %v2423_v22, %v2219_v21  ;;  %v2131_v22 = vrot.slane %v2129_v45, 1 }
 0x293   : > { %v2051_v25 = vpop.permute.xlu1 %2050  ;;  %v2181_v60 = vpop.permute.xlu2 %2180 }
 0x294   : > { %v2403_v19 = vsel %vm1216_vm5, %v2387_v32, %v2051_v25  ;;  %v4692_v25 = vld [vmem:[%s5935_s9 + $0x18] sm:$0xff] }
 0x295   : > { %v2493_v40 = vunpack.c.l.b16 %v2403_v19  ;;  %2847 = vmatpush.bf16.msrb.mxu0 %v4692_v25 }
 0x296   : > { %v2313_v14 = vpop.permute.xlu0 %2312 }
 0x297   : > { %v2551_v24 = vpack.c.b16 %v2493_v40, %v2490_v38  ;;  %v2457_v39 = vsel %vm1216_vm5, %v2441_v36, %v2313_v14 }
 0x298   : > { %v2491_v43 = vunpack.c.l.b16 %v2457_v39  ;;  %v4690_v39 = vld [vmem:[%s5935_s9 + $0x8] sm:$0xff] }
 0x299   : > { %2701 = vmatmul.bf16.gmra.mxu1 %v2551_v24  ;;  %2848 = vmatpush.bf16.msrb.mxu0 %v4691_v16 }
 0x29b   : > { %v2013_v41 = vpop.permute.xlu1 %2012  ;;  %v2015_v3 = vpop.permute.xlu2 %2014 }
 0x29c   : > { %v2389_v49 = vsel %vm1182_vm3, %v2370_v47, %v2013_v41  ;;  %v2138_v41 = vrot.slane %v2136_v0, 1 }
 0x29d   : > { %2849 = vmatpush.bf16.msrb.mxu0 %v4690_v39 }
 0x29e   : > { %v2053_v57 = vpop.permute.xlu0 %2052  ;;  %v2139_v21 = vor.u32 %v2138_v41, %v2134_v46 }
 0x29f   : > { %v2405_v54 = vsel %vm1216_vm5, %v2389_v49, %v2053_v57  ;;  %v2127_v57 = vshrl.u32 %v5447_v26, 16 }
 0x2a0   : > { %v2496_v52 = vunpack.c.l.b16 %v2405_v54 }
 0x2a4   : > { %v2315_v4 = vpop.permute.xlu1 %2314 }
 0x2a5   : > { %v2459_v10 = vsel %vm1216_vm5, %v2443_v62, %v2315_v4  ;;  %v2132_v62 = vor.u32 %v2131_v22, %v2127_v57 }
 0x2a6   : > { %v2494_v17 = vunpack.c.l.b16 %v2459_v10 }
 0x2a7   : > { %v1967_v12 = vpop.permute.xlu0 %1966 }
 0x2a8   : > { %v2552_v5 = vpack.c.b16 %v2494_v17, %v2491_v43  ;;  %v2373_v44 = vsel %vm1148_vm1, %v5338_v20, %v1967_v12  ;;  %v2117_v20 = vrot.slane %v2115_v55, 1  ;;  %v2755_v55 = vpop.f32.mrf.mxu3 }
 0x2a9   : > { %v2391_v15 = vsel %vm1182_vm3, %v2373_v44, %v2015_v3 }
 0x2aa   : > { %2730 = vmatmul.bf16.gmra.mxu2 %v2552_v5  ;;  %v2118_v30 = vor.u32 %v2117_v20, %v2113_v13 }
 0x2ac   : > { %v2221_v18 = vpop.permute.xlu1 %2220  ;;  %v2223_v33 = vpop.permute.xlu2 %2222  ;;  %v2426_v32 = vsel %vm1148_vm1, %v2118_v30, %v2181_v60 }
 0x2ad   : > { %v2445_v28 = vsel %vm1182_vm3, %v2426_v32, %v2221_v18 }
 0x2af   : > { %v2183_v23 = vpop.permute.xlu0 %2182 }
 0x2b0   : > { %v2429_v19 = vsel %vm1148_vm1, %v2125_v11, %v2183_v23  ;;  %v4739_v23 = vld [vmem:[%s5934_s8] ss:$0 sm:$0xff]  ;;  %v2757_v11 = vpop.f32.mrf.mxu3 }
 0x2b1   : > { %v2447_v40 = vsel %vm1182_vm3, %v2429_v19, %v2223_v33 }
 0x2b4   : > { %v2055_v8 = vpop.permute.xlu1 %2054  ;;  %v1969_v31 = vpop.permute.xlu2 %1968 }
 0x2b5   : > { %v2407_v37 = vsel %vm1216_vm5, %v2391_v15, %v2055_v8  ;;  %v2376_v49 = vsel %vm1148_vm1, %v5386_v42, %v1969_v31 }
 0x2b6   : > { %v2499_v48 = vunpack.c.l.b16 %v2407_v37 }
 0x2b7   : > { %v2317_v29 = vpop.permute.xlu0 %2316 }
 0x2b8   : > { %v2554_v58 = vpack.c.b16 %v2499_v48, %v2496_v52  ;;  %v2461_v38 = vsel %vm1216_vm5, %v2445_v28, %v2317_v29  ;;  %v2760_v0 = vpop.f32.mrf.mxu3 }
 0x2b9   : > { %v2497_v24 = vunpack.c.l.b16 %v2461_v38 }
 0x2ba   : > { %2706 = vmatmul.bf16.gmra.mxu1 %v2554_v58 }
 0x2bc   : > { %v2185_v4 = vpop.permute.xlu2 %2184 }
 0x2bd   : > { %v2432_v10 = vsel %vm1148_vm1, %v2132_v62, %v2185_v4 }
 0x2c0   : > { %v2762_v46 = vpop.f32.mrf.mxu3 }
 0x2cb   : > { %v2319_v27 = vpop.permute.xlu1 %2318 }
 0x2cc   : > { %v2463_v59 = vsel %vm1216_vm5, %v2447_v40, %v2319_v27  ;;  %v1971_v53 = vpop.permute.xlu0 %1970 }
 0x2cd   : > { %v2500_v14 = vunpack.c.l.b16 %v2463_v59  ;;  %v2379_v26 = vsel %vm1148_vm1, %v5422_v35, %v1971_v53  ;;  %v4689_v35 = vld [vmem:[%s5935_s9] sm:$0xff] }
 0x2ce   : > { %2850 = vmatpush.bf16.msrb.mxu0 %v4689_v35 }
 0x2cf   : > { %v2555_v56 = vpack.c.b16 %v2500_v14, %v2497_v24 }
 0x2d1   : > { %2735 = vmatmul.bf16.gmra.mxu2 %v2555_v56 }
 0x2d3   : > { %v2017_v51 = vpop.permute.xlu1 %2016 }
 0x2d4   : > { %v2187_v50 = vpop.permute.xlu0 %2186 }
 0x2d5   : > { %v2435_v36 = vsel %vm1148_vm1, %v2139_v21, %v2187_v50 }
 0x2d6   : > { %v2451_v61 = vsel %vm1182_vm3, %v2435_v36, %v5427_v63  ;;  %v2019_v63 = vpop.permute.xlu2 %2018 }
 0x2d7   : > { %v2467_v17 = vsel %vm1216_vm5, %v2451_v61, %v5439_v34  ;;  %v2395_v54 = vsel %vm1182_vm3, %v2379_v26, %v2019_v63  ;;  %v2393_v34 = vsel %vm1182_vm3, %v2376_v49, %v2017_v51 }
 0x2d8   : > { %v2506_v47 = vunpack.c.l.b16 %v2467_v17 }
 0x2db   : > { %v2225_v43 = vpop.permute.xlu1 %2224 }
 0x2dc   : > { %v2449_v5 = vsel %vm1182_vm3, %v2432_v10, %v2225_v43  ;;  %v2321_v60 = vpop.permute.xlu0 %2320  ;;  %v2765_v57 = vpop.f32.mrf.mxu3 }
 0x2dd   : > { %v2465_v18 = vsel %vm1216_vm5, %v2449_v5, %v2321_v60 }
 0x2de   : > { %v2503_v12 = vunpack.c.l.b16 %v2465_v18 }
 0x2e0   : > { %v2558_v44 = vpack.c.b16 %v2506_v47, %v2503_v12 }
 0x2e2   : > { %2740 = vmatmul.bf16.gmra.mxu2 %v2558_v44 }
 0x2e3   : > { %v2059_v3 = vpop.permute.xlu1 %2058 }
 0x2e4   : > { %v2411_v8 = vsel %vm1216_vm5, %v2395_v54, %v2059_v3  ;;  %v2057_v15 = vpop.permute.xlu0 %2056  ;;  %v2767_v18 = vpop.f32.mrf.mxu3 }
 0x2e5   : > { %v2505_v37 = vunpack.c.l.b16 %v2411_v8  ;;  %v2409_v52 = vsel %vm1216_vm5, %v2393_v34, %v2057_v15 }
 0x2e6   : > { %v2502_v48 = vunpack.c.l.b16 %v2409_v52 }
 0x2e8   : > { %v2557_v58 = vpack.c.b16 %v2505_v37, %v2502_v48  ;;  %v2697_v42 = vpop.f32.mrf.mxu1 }
 0x2e9   : > { %v2698_v20 = vadd.f32 %v4739_v23, %v2697_v42 }
 0x2ea   : > { %2711 = vmatmul.bf16.gmra.mxu1 %v2557_v58 }
 0x2ec   : > { %v2770_v8 = vpop.f32.mrf.mxu3 }
 0x2f0   : > { %v2699_v13 = vpop.f32.mrf.mxu1 }
 0x2f1   : > { %v2700_v33 = vadd.f32 %v4739_v23, %v2699_v13 }
 0x2f4   : > { %v2772_v42 = vpop.f32.mrf.mxu3 }
 0x30c   : > { %v2726_v7 = vpop.f32.mrf.mxu2 }
 0x30d   : > { %v2727_v9 = vadd.f32 %v2726_v7, %v2698_v20 }
 0x30f   : > { %v2756_v1 = vadd.f32 %v2755_v55, %v2727_v9 }
 0x311   : > { %v2775_v25 = vmul.f32 0.1, %v2756_v1 }
 0x313   : > { %v2783_v28 = vmax.f32 %v2756_v1, %v2775_v25  ;;  %v3023_v1 = vld [vmem:[#allocation2] sm:$0xf] }
 0x314   : > { %v2728_v29 = vpop.f32.mrf.mxu2 }
 0x315   : > { %v2729_v30 = vadd.f32 %v2728_v29, %v2700_v33  ;;  %v3031_v29 = vld [vmem:[#allocation2 + $0x4] sm:$0x1] }
 0x316   : > { %v2702_v40 = vpop.f32.mrf.mxu1 }
 0x317   : > { %v2758_v32 = vadd.f32 %v2757_v11, %v2729_v30  ;;  %v2703_v53 = vadd.f32 %v4739_v23, %v2702_v40  ;;  %v3111_v30 = vunpack.c.l.b16 %v3023_v1  ;;  %v3112_v11 = vunpack.c.l.b16 %v3031_v29 }
 0x319   : > { %v2776_v19 = vmul.f32 0.1, %v2758_v32  ;;  %v3127_v25 = vpack.c.b16 %v3112_v11, %v3111_v30  ;;  %v4710_v30 = vld [vmem:[%s5937_s11 + $0x88] sm:$0xff] }
 0x31a   : > { %3987 = vmatpush.bf16.msra.mxu3 %v4710_v30  ;;  %v2987_v30 = vld [vmem:[#allocation2 + $0x18] sm:$0xf] }
 0x31b   : > { %v2784_v38 = vmax.f32 %v2758_v32, %v2776_v19  ;;  %v3138_v32 = vshll.u32 %v3127_v25, 16  ;;  %v3136_v19 = vshrl.u32 %v3127_v25, 16 }
 0x31d   : > { %v2791_v27 = vpack.c.bf16 %v2784_v38, %v2783_v28  ;;  %v3140_v28 = vrot.slane %v3138_v32, 1  ;;  %v3039_v38 = vld [vmem:[#allocation2] sm:$0xe] }
 0x31e   : > { %v2704_v14 = vpop.f32.mrf.mxu1 }
 0x31f   : > { %4532 = vmatmul.msk.bf16.vlgmr.msrb.gmra.mxu0 %vm1182_vm3, %v2791_v27  ;;  %v2705_v31 = vadd.f32 %v4739_v23, %v2704_v14  ;;  %v3215_v27 = vunpack.c.l.b16 %v3039_v38  ;;  %v4709_v38 = vld [vmem:[%s5937_s11 + $0x80] sm:$0xff] }
 0x320   : > { %3988 = vmatpush.bf16.msra.mxu3 %v4709_v38 }
 0x321   : > { %v3223_v40 = vpack.c.b16 %v3112_v11, %v3215_v27 }
 0x32d   : > { %v2731_v59 = vpop.f32.mrf.mxu2 }
 0x32e   : > { %v2732_v24 = vadd.f32 %v2731_v59, %v2703_v53  ;;  %v5579_v59 = vld [vmem:[#allocation2 + $0x4c] sm:$0x1]  ;;  %v3231_v53 = vrot.slane %v3223_v40, 1 }
 0x32f   : > { %v3478_v14 = vunpack.c.l.b16 %v5579_v59 }
 0x330   : > { %v2761_v56 = vadd.f32 %v2760_v0, %v2732_v24  ;;  %v3078_v0 = vld [vmem:[#allocation2 + $0x48] sm:$0xf]  ;;  %3239 = vrot.lane.b32.xlu1 %v3231_v53, %s4757_s27 }
 0x331   : > { %v3438_v24 = vunpack.c.l.b16 %v3078_v0 }
 0x332   : > { %v2777_v51 = vmul.f32 0.1, %v2761_v56 }
 0x334   : > { %v2785_v16 = vmax.f32 %v2761_v56, %v2777_v51  ;;  %v3486_v56 = vpack.c.b16 %v3478_v14, %v3438_v24 }
 0x335   : > { %v2733_v41 = vpop.f32.mrf.mxu2 }
 0x336   : > { %v2734_v45 = vadd.f32 %v2733_v41, %v2705_v31  ;;  %v3446_v31 = vpack.c.b16 %v3438_v24, %v3438_v24  ;;  %v3537_v41 = vshrl.u32 %v3486_v56, 16 }
 0x337   : > { %v2707_v39 = vpop.f32.mrf.mxu1 }
 0x338   : > { %v2763_v21 = vadd.f32 %v2762_v46, %v2734_v45  ;;  %v2708_v61 = vadd.f32 %v4739_v23, %v2707_v39  ;;  %v3539_v45 = vshll.u32 %v3486_v56, 16  ;;  %v5589_v46 = vld [vmem:[%s5936_s10] ss:$0 sm:$0xff] }
 0x33a   : > { %v2778_v50 = vmul.f32 0.1, %v2763_v21  ;;  %v3541_v51 = vrot.slane %v3539_v45, 1 }
 0x33c   : > { %v2786_v22 = vmax.f32 %v2763_v21, %v2778_v50  ;;  %v3542_v50 = vor.u32 %v3541_v51, %v3537_v41 }
 0x33e   : > { %v2792_v36 = vpack.c.bf16 %v2786_v22, %v2785_v16  ;;  %3557 = vrot.lane.b32.xlu1 %v3542_v50, %s4759_s29 }
 0x33f   : > { %v2709_v10 = vpop.f32.mrf.mxu1 }
 0x340   : > { %4533 = vmatmul.msk.bf16.gmra.mxu0 %vm1182_vm3, %v2792_v36  ;;  %v2710_v43 = vadd.f32 %v4739_v23, %v2709_v10 }
 0x354   : > { %v2736_v4 = vpop.f32.mrf.mxu2 }
 0x355   : > { %v2737_v62 = vadd.f32 %v2736_v4, %v2708_v61 }
 0x357   : > { %v2766_v17 = vadd.f32 %v2765_v57, %v2737_v62 }
 0x359   : > { %v2779_v12 = vmul.f32 0.1, %v2766_v17 }
 0x35b   : > { %v2787_v44 = vmax.f32 %v2766_v17, %v2779_v12  ;;  %v4744_v12 = vld [vmem:[#allocation2 + $0x8] sm:$0xf] }
 0x35c   : > { %v2738_v5 = vpop.f32.mrf.mxu2 }
 0x35d   : > { %v2739_v60 = vadd.f32 %v2738_v5, %v2710_v43 }
 0x35f   : > { %v2768_v47 = vadd.f32 %v2767_v18, %v2739_v60  ;;  %v2978_v18 = vld [vmem:[#allocation2 + $0xc] sm:$0x1] }
 0x361   : > { %v2780_v26 = vmul.f32 0.1, %v2768_v47 }
 0x363   : > { %v2788_v63 = vmax.f32 %v2768_v47, %v2780_v26 }
 0x365   : > { %v2793_v49 = vpack.c.bf16 %v2788_v63, %v2787_v44  ;;  %v2741_v3 = vpop.f32.mrf.mxu2 }
 0x367   : > { %v2712_v54 = vpop.f32.mrf.mxu1  ;;  %4534 = vmatmul.msk.bf16.gmra.mxu0 %vm1182_vm3, %v2793_v49 }
 0x368   : > { %v2713_v34 = vadd.f32 %v4739_v23, %v2712_v54 }
 0x36a   : > { %v2742_v15 = vadd.f32 %v2741_v3, %v2713_v34 }
 0x36c   : > { %v2771_v52 = vadd.f32 %v2770_v8, %v2742_v15  ;;  %v2981_v8 = vld [vmem:[#allocation2 + $0x10] sm:$0xf]  ;;  %v2984_v15 = vld [vmem:[#allocation2 + $0x14] sm:$0x1] }
 0x36d   : > { %v2743_v58 = vpop.f32.mrf.mxu2 }
 0x36e   : > { %v2781_v55 = vmul.f32 0.1, %v2771_v52 }
 0x36f   : > { %v2714_v37 = vpop.f32.mrf.mxu1 }
 0x370   : > { %v2715_v48 = vadd.f32 %v4739_v23, %v2714_v37  ;;  %v2789_v9 = vmax.f32 %v2771_v52, %v2781_v55  ;;  %v3141_v23 = vor.u32 %v3140_v28, %v3136_v19 }
 0x372   : > { %v2744_v35 = vadd.f32 %v2743_v58, %v2715_v48  ;;  %3191 = vrot.lane.b32.xlu2 %v3141_v23, %s4754_s24 }
 0x374   : > { %v2773_v7 = vadd.f32 %v2772_v42, %v2744_v35 }
 0x376   : > { %v2782_v20 = vmul.f32 0.1, %v2773_v7 }
 0x378   : > { %v2790_v13 = vmax.f32 %v2773_v7, %v2782_v20 }
 0x37a   : > { %v2794_v33 = vpack.c.bf16 %v2790_v13, %v2789_v9  ;;  %3461 = vrot.lane.b32.xlu2 %v3446_v31, %s4757_s27 }
 0x37c   : > { %4535 = vmatmul.msk.bf16.gmra.mxu0 %vm1182_vm3, %v2794_v33 }
 0x39c   : > { %v2852_v21 = vpop.f32.mrf.mxu0 }
 0x39d   : > { %v2853_v16 = vadd.f32 %v5589_v46, %v2852_v21 }
 0x39f   : > { %v2872_v22 = vmul.f32 0.1, %v2853_v16 }
 0x3a1   : > { %v2880_v36 = vmax.f32 %v2853_v16, %v2872_v22 }
 0x3a3   : > { %v2888_v39 = vpack.c.bf16 %v2880_v36, %v2880_v36 }
 0x3a4   : > { %v2854_v57 = vpop.f32.mrf.mxu0 }
 0x3a5   : > { %v2897_v4 = vshrl.u32 %v2888_v39, 16  ;;  %v2855_v61 = vadd.f32 %v5589_v46, %v2854_v57  ;;  %v2900_v10 = vshll.u32 %v2888_v39, 16 }
 0x3a7   : > { %v2899_v62 = vrot.slane %v2897_v4, 7  ;;  %v2873_v43 = vmul.f32 0.1, %v2855_v61 }
 0x3a9   : > { %v2902_v17 = vor.u32 %v2900_v10, %v2899_v62  ;;  %v2903_v5 = vrot.slane %v2899_v62, 4  ;;  %v2881_v60 = vmax.f32 %v2855_v61, %v2873_v43 }
 0x3ab   : > { %v2976_v47 = vsel %vm5253_vm11, %v2902_v17, %v4744_v12  ;;  %v2979_v26 = vsel %vm5258_vm12, %v2903_v5, %v2978_v18  ;;  %v2889_v44 = vpack.c.bf16 %v2881_v60, %v2881_v60 }
 0x3ac   : > { %2977 = vst [vmem:[#allocation2 + $0x8] sm:$0xf] %v2976_v47 }
 0x3ad   : > { %2980 = vst [vmem:[#allocation2 + $0xc] sm:$0x1] %v2979_v26  ;;  %v2905_v63 = vshrl.u32 %v2889_v44, 16  ;;  %v2908_v3 = vshll.u32 %v2889_v44, 16 }
 0x3af   : > { %v2907_v49 = vrot.slane %v2905_v63, 7 }
 0x3b1   : > { %v2910_v54 = vor.u32 %v2908_v3, %v2907_v49  ;;  %v2911_v34 = vrot.slane %v2907_v49, 4 }
 0x3b3   : > { %v2982_v37 = vsel %vm5253_vm11, %v2910_v54, %v2981_v8  ;;  %v2985_v52 = vsel %vm5258_vm12, %v2911_v34, %v2984_v15  ;;  %v3047_v48 = vld [vmem:[#allocation2 + $0x8] sm:$0xf] }
 0x3b4   : > { %v3063_v58 = vld [vmem:[#allocation2 + $0x8] sm:$0xe]  ;;  %2983 = vst [vmem:[#allocation2 + $0x10] sm:$0xf] %v2982_v37  ;;  %v3263_v42 = vunpack.c.l.b16 %v3047_v48  ;;  %v3055_v55 = vld [vmem:[#allocation2 + $0xc] sm:$0x1] }
 0x3b5   : > { %v5602_v35 = vld [vmem:[#allocation2 + $0x8] sm:$0xf]  ;;  %v3383_v7 = vunpack.c.l.b16 %v3063_v58  ;;  %v3032_v20 = vld [vmem:[#allocation2 + $0xc] sm:$0x1]  ;;  %2986 = vst [vmem:[#allocation2 + $0x14] sm:$0x1] %v2985_v52  ;;  %v3303_v13 = vunpack.c.l.b16 %v3055_v55 }
 0x3b6   : > { %v3113_v9 = vunpack.c.l.b16 %v5602_v35  ;;  %v3114_v33 = vunpack.c.l.b16 %v3032_v20  ;;  %v3271_v1 = vpack.c.b16 %v3263_v42, %v3263_v42  ;;  %v3040_v29 = vld [vmem:[#allocation2 + $0x8] sm:$0xe] }
 0x3b7   : > { %v3391_v11 = vpack.c.b16 %v3303_v13, %v3383_v7  ;;  %v5608_v25 = vpack.c.b16 %v3303_v13, %v3263_v42  ;;  %v3216_v23 = vunpack.c.l.b16 %v3040_v29 }
 0x3b8   : > { %v3128_v32 = vpack.c.b16 %v3114_v33, %v3113_v9  ;;  %3279 = vrot.lane.b32.xlu0 %v3271_v1, %s4759_s29 }
 0x3b9   : > { %v3399_v19 = vrot.slane %v3391_v11, 1  ;;  %v3224_v50 = vpack.c.b16 %v3114_v33, %v3216_v23  ;;  %v2990_v11 = vld [vmem:[#allocation2 + $0x1c] sm:$0x1] }
 0x3ba   : > { %v3145_v28 = vshll.u32 %v3128_v32, 16  ;;  %v3143_v40 = vshrl.u32 %v3128_v32, 16 }
 0x3bb   : > { %3407 = vrot.lane.b32.xlu2 %v3399_v19, %s4754_s24  ;;  %v3071_v27 = vld [vmem:[#allocation2 + $0x10] sm:$0xf]  ;;  %v3232_v60 = vrot.slane %v3224_v50, 1 }
 0x3bc   : > { %v3147_v0 = vrot.slane %v3145_v28, 1  ;;  %v3048_v53 = vld [vmem:[#allocation2 + $0x10] sm:$0xf]  ;;  %v3431_v24 = vunpack.c.l.b16 %v3071_v27  ;;  %v3056_v56 = vld [vmem:[#allocation2 + $0x14] sm:$0x1] }
 0x3bd   : > { %v3264_v31 = vunpack.c.l.b16 %v3048_v53  ;;  %v3064_v41 = vld [vmem:[#allocation2 + $0x10] sm:$0xe]  ;;  %v2857_v51 = vpop.f32.mrf.mxu0  ;;  %v3304_v16 = vunpack.c.l.b16 %v3056_v56  ;;  %v3033_v22 = vld [vmem:[#allocation2 + $0x14] sm:$0x1] }
 0x3be   : > { %v5615_v45 = vld [vmem:[#allocation2 + $0x10] sm:$0xf]  ;;  %v3148_v21 = vor.u32 %v3147_v0, %v3143_v40  ;;  %v3079_v39 = vld [vmem:[#allocation2 + $0x14] sm:$0x1]  ;;  %v2858_v57 = vadd.f32 %v5589_v46, %v2857_v51  ;;  %v3439_v4 = vpack.c.b16 %v3431_v24, %v3431_v24  ;;  %v3384_v61 = vunpack.c.l.b16 %v3064_v41  ;;  %v2993_v51 = vld [vmem:[#allocation2 + $0x20] sm:$0xf] }
 0x3bf   : > { %v3115_v36 = vunpack.c.l.b16 %v5615_v45  ;;  %v3116_v62 = vunpack.c.l.b16 %v3033_v22  ;;  %v5619_v10 = vpack.c.b16 %v3304_v16, %v3264_v31  ;;  %v3471_v43 = vunpack.c.l.b16 %v3079_v39  ;;  %v3041_v26 = vld [vmem:[#allocation2 + $0x10] sm:$0xe] }
 0x3c0   : > { %v2874_v17 = vmul.f32 0.1, %v2858_v57  ;;  %3447 = vrot.lane.b32.xlu1 %v3439_v4, %s4757_s27  ;;  %3193 = vrot.lane.b32.xlu0 %v3148_v21, %s4754_s24  ;;  %v3392_v12 = vpack.c.b16 %v3304_v16, %v3384_v61  ;;  %v3272_v3 = vpack.c.b16 %v3264_v31, %v3264_v31  ;;  %v3217_v34 = vunpack.c.l.b16 %v3041_v26  ;;  %v3087_v7 = vld [vmem:[#allocation2 + $0x10] sm:$0xe]  ;;  %v2996_v21 = vld [vmem:[#allocation2 + $0x24] sm:$0x1] }
 0x3c1   : > { %v3129_v5 = vpack.c.b16 %v3116_v62, %v3115_v36  ;;  %v3479_v44 = vpack.c.b16 %v3471_v43, %v3431_v24  ;;  %v3567_v32 = vunpack.c.l.b16 %v3087_v7 }
 0x3c2   : > { %v2882_v18 = vmax.f32 %v2858_v57, %v2874_v17  ;;  %v3400_v37 = vrot.slane %v3392_v12, 1  ;;  %v3225_v9 = vpack.c.b16 %v3116_v62, %v3217_v34 }
 0x3c3   : > { %v3152_v47 = vshll.u32 %v3129_v5, 16  ;;  %3241 = vrot.lane.b32.xlu2 %v3232_v60, %s4757_s27  ;;  %v3490_v52 = vshll.u32 %v3479_v44, 16  ;;  %v3150_v48 = vshrl.u32 %v3129_v5, 16  ;;  %v3488_v38 = vshrl.u32 %v3479_v44, 16 }
 0x3c4   : > { %v2890_v63 = vpack.c.bf16 %v2882_v18, %v2882_v18  ;;  %v3233_v40 = vrot.slane %v3225_v9, 1  ;;  %v3575_v53 = vpack.c.b16 %v3471_v43, %v3567_v32 }
 0x3c5   : > { %v2859_v49 = vpop.f32.mrf.mxu0  ;;  %v3154_v54 = vrot.slane %v3152_v47, 1  ;;  %v3492_v29 = vrot.slane %v3490_v52, 1 }
 0x3c6   : > { %v2913_v8 = vshrl.u32 %v2890_v63, 16  ;;  %v2860_v15 = vadd.f32 %v5589_v46, %v2859_v49  ;;  %v2916_v42 = vshll.u32 %v2890_v63, 16  ;;  %v3583_v50 = vrot.slane %v3575_v53, 1 }
 0x3c7   : > { %v3155_v20 = vor.u32 %v3154_v54, %v3150_v48  ;;  %v3493_v0 = vor.u32 %v3492_v29, %v3488_v38 }
 0x3c8   : > { %v2915_v58 = vrot.slane %v2913_v8, 7  ;;  %v2875_v55 = vmul.f32 0.1, %v2860_v15  ;;  %3281 = vrot.lane.b32.xlu1 %v3272_v3, %s4759_s29  ;;  %3409 = vrot.lane.b32.xlu0 %v3400_v37, %s4754_s24 }
 0x3ca   : > { %v2918_v13 = vor.u32 %v2916_v42, %v2915_v58  ;;  %v2919_v33 = vrot.slane %v2915_v58, 4  ;;  %v2883_v1 = vmax.f32 %v2860_v15, %v2875_v55  ;;  %v3721_v58 = vunpack.c.l.b16 %v3583_v50 }
 0x3cb   : > { %3195 = vrot.lane.b32.xlu2 %v3155_v20, %s4754_s24 }
 0x3cc   : > { %v2988_v19 = vsel %vm5253_vm11, %v2918_v13, %v2987_v30  ;;  %v2991_v28 = vsel %vm5258_vm12, %v2919_v33, %v2990_v11  ;;  %v2891_v23 = vpack.c.bf16 %v2883_v1, %v2883_v1 }
 0x3cd   : > { %2989 = vst [vmem:[#allocation2 + $0x18] sm:$0xf] %v2988_v19 }
 0x3ce   : > { %2992 = vst [vmem:[#allocation2 + $0x1c] sm:$0x1] %v2991_v28  ;;  %v2921_v27 = vshrl.u32 %v2891_v23, 16  ;;  %v2924_v31 = vshll.u32 %v2891_v23, 16 }
 0x3d0   : > { %v2923_v24 = vrot.slane %v2921_v27, 7  ;;  %3243 = vrot.lane.b32.xlu1 %v3233_v40, %s4757_s27  ;;  %3543 = vrot.lane.b32.xlu0 %v3493_v0, %s4759_s29 }
 0x3d2   : > { %v2926_v56 = vor.u32 %v2924_v31, %v2923_v24  ;;  %v2927_v41 = vrot.slane %v2923_v24, 4 }
 0x3d4   : > { %v2994_v16 = vsel %vm5253_vm11, %v2926_v56, %v2993_v51  ;;  %v2997_v22 = vsel %vm5258_vm12, %v2927_v41, %v2996_v21  ;;  %v3072_v36 = vld [vmem:[#allocation2 + $0x18] sm:$0xf] }
 0x3d5   : > { %v3049_v39 = vld [vmem:[#allocation2 + $0x18] sm:$0xf]  ;;  %2995 = vst [vmem:[#allocation2 + $0x20] sm:$0xf] %v2994_v16  ;;  %v3432_v4 = vunpack.c.l.b16 %v3072_v36  ;;  %v3080_v62 = vld [vmem:[#allocation2 + $0x1c] sm:$0x1] }
 0x3d6   : > { %v3088_v57 = vld [vmem:[#allocation2 + $0x18] sm:$0xe]  ;;  %v3265_v61 = vunpack.c.l.b16 %v3049_v39  ;;  %v3057_v17 = vld [vmem:[#allocation2 + $0x1c] sm:$0x1]  ;;  %2998 = vst [vmem:[#allocation2 + $0x24] sm:$0x1] %v2997_v22  ;;  %v3472_v5 = vunpack.c.l.b16 %v3080_v62 }
 0x3d7   : > { %v3568_v43 = vunpack.c.l.b16 %v3088_v57  ;;  %v3065_v60 = vld [vmem:[#allocation2 + $0x18] sm:$0xe]  ;;  %v3305_v18 = vunpack.c.l.b16 %v3057_v17  ;;  %v3440_v47 = vpack.c.b16 %v3432_v4, %v3432_v4  ;;  %v3034_v63 = vld [vmem:[#allocation2 + $0x1c] sm:$0x1] }
 0x3d8   : > { %v5638_v12 = vld [vmem:[#allocation2 + $0x18] sm:$0xf]  ;;  %v3273_v26 = vpack.c.b16 %v3265_v61, %v3265_v61  ;;  %v3385_v44 = vunpack.c.l.b16 %v3065_v60  ;;  %v3480_v54 = vpack.c.b16 %v3472_v5, %v3432_v4  ;;  %v3118_v8 = vunpack.c.l.b16 %v3034_v63 }
 0x3d9   : > { %v3117_v49 = vunpack.c.l.b16 %v5638_v12  ;;  %v3576_v3 = vpack.c.b16 %v3472_v5, %v3568_v43  ;;  %v5641_v34 = vpack.c.b16 %v3305_v18, %v3265_v61  ;;  %3449 = vrot.lane.b32.xlu2 %v3440_v47, %s4757_s27  ;;  %v3042_v48 = vld [vmem:[#allocation2 + $0x18] sm:$0xe] }
 0x3da   : > { %3283 = vrot.lane.b32.xlu0 %v3273_v26, %s4759_s29  ;;  %v3497_v37 = vshll.u32 %v3480_v54, 16  ;;  %v3393_v42 = vpack.c.b16 %v3305_v18, %v3385_v44  ;;  %v3495_v7 = vshrl.u32 %v3480_v54, 16  ;;  %v3218_v1 = vunpack.c.l.b16 %v3042_v48 }
 0x3db   : > { %v3584_v15 = vrot.slane %v3576_v3, 1  ;;  %v3130_v52 = vpack.c.b16 %v3118_v8, %v3117_v49 }
 0x3dc   : > { %v3499_v20 = vrot.slane %v3497_v37, 1  ;;  %v3073_v13 = vld [vmem:[#allocation2 + $0x20] sm:$0xf]  ;;  %v3401_v27 = vrot.slane %v3393_v42, 1  ;;  %v3226_v16 = vpack.c.b16 %v3118_v8, %v3218_v1  ;;  %v2999_v1 = vld [vmem:[#allocation2 + $0x28] sm:$0xf] }
 0x3dd   : > { %v3724_v55 = vunpack.c.l.b16 %v3584_v15  ;;  %v3159_v9 = vshll.u32 %v3130_v52, 16  ;;  %v3157_v33 = vshrl.u32 %v3130_v52, 16  ;;  %v3058_v29 = vld [vmem:[#allocation2 + $0x24] sm:$0x1]  ;;  %v3066_v30 = vld [vmem:[#allocation2 + $0x20] sm:$0xe]  ;;  %v3433_v40 = vunpack.c.l.b16 %v3073_v13 }
 0x3de   : > { %v3500_v32 = vor.u32 %v3499_v20, %v3495_v7  ;;  %v3306_v28 = vunpack.c.l.b16 %v3058_v29  ;;  %v3050_v23 = vld [vmem:[#allocation2 + $0x20] sm:$0xf]  ;;  %v3035_v53 = vld [vmem:[#allocation2 + $0x24] sm:$0x1]  ;;  %v3386_v41 = vunpack.c.l.b16 %v3066_v30  ;;  %v3234_v43 = vrot.slane %v3226_v16, 1 }
 0x3df   : > { %v3785_v11 = vpack.c.b16 %v3724_v55, %v3721_v58  ;;  %v3161_v19 = vrot.slane %v3159_v9, 1  ;;  %v5645_v38 = vld [vmem:[#allocation2 + $0x20] sm:$0xf]  ;;  %v3266_v0 = vunpack.c.l.b16 %v3050_v23  ;;  %v3081_v31 = vld [vmem:[#allocation2 + $0x24] sm:$0x1]  ;;  %v3120_v51 = vunpack.c.l.b16 %v3035_v53 }
 0x3e0   : > { %v3119_v24 = vunpack.c.l.b16 %v5645_v38  ;;  %3545 = vrot.lane.b32.xlu1 %v3500_v32, %s4759_s29  ;;  %v3473_v21 = vunpack.c.l.b16 %v3081_v31  ;;  %v3394_v39 = vpack.c.b16 %v3306_v28, %v3386_v41  ;;  %v3441_v61 = vpack.c.b16 %v3433_v40, %v3433_v40  ;;  %v3043_v44 = vld [vmem:[#allocation2 + $0x20] sm:$0xe]  ;;  %v3002_v29 = vld [vmem:[#allocation2 + $0x2c] sm:$0x1]  ;;  %v3005_v41 = vld [vmem:[#allocation2 + $0x30] sm:$0xf] }
 0x3e1   : > { %4608 = vmatmul.msk.bf16.vlgmr.msra.gmra.mxu3 %vm1148_vm1, %v3785_v11  ;;  %v3162_v56 = vor.u32 %v3161_v19, %v3157_v33  ;;  %3411 = vrot.lane.b32.xlu2 %v3401_v27, %s4754_s24  ;;  %v5651_v50 = vpack.c.b16 %v3306_v28, %v3266_v0  ;;  %v3274_v15 = vpack.c.b16 %v3266_v0, %v3266_v0  ;;  %v3219_v52 = vunpack.c.l.b16 %v3043_v44  ;;  %v3089_v7 = vld [vmem:[#allocation2 + $0x20] sm:$0xe] }
 0x3e2   : > { %v3131_v22 = vpack.c.b16 %v3120_v51, %v3119_v24  ;;  %v3481_v57 = vpack.c.b16 %v3473_v21, %v3433_v40  ;;  %v3402_v5 = vrot.slane %v3394_v39, 1  ;;  %v3569_v11 = vunpack.c.l.b16 %v3089_v7 }
 0x3e3   : > { %3197 = vrot.lane.b32.xlu0 %v3162_v56, %s4754_s24  ;;  %v3227_v30 = vpack.c.b16 %v3120_v51, %v3219_v52  ;;  %v3008_v51 = vld [vmem:[#allocation2 + $0x34] sm:$0x1] }
 0x3e4   : > { %v2862_v36 = vpop.f32.mrf.mxu0  ;;  %v3166_v17 = vshll.u32 %v3131_v22, 16  ;;  %v3504_v60 = vshll.u32 %v3481_v57, 16  ;;  %v3164_v8 = vshrl.u32 %v3131_v22, 16  ;;  %v3502_v37 = vshrl.u32 %v3481_v57, 16 }
 0x3e5   : > { %v2863_v4 = vadd.f32 %v5589_v46, %v2862_v36  ;;  %v3235_v27 = vrot.slane %v3227_v30, 1  ;;  %v3577_v40 = vpack.c.b16 %v3473_v21, %v3569_v11  ;;  %v4700_v11 = vld [vmem:[%s5937_s11 + $0x38] sm:$0xff] }
 0x3e6   : > { %v3168_v26 = vrot.slane %v3166_v17, 1  ;;  %v3506_v49 = vrot.slane %v3504_v60, 1  ;;  %3923 = vmatpush.bf16.msra.mxu1 %v4700_v11 }
 0x3e7   : > { %v2876_v62 = vmul.f32 0.1, %v2863_v4  ;;  %v3585_v22 = vrot.slane %v3577_v40, 1 }
 0x3e8   : > { %3451 = vrot.lane.b32.xlu1 %v3441_v61, %s4757_s27  ;;  %v3169_v55 = vor.u32 %v3168_v26, %v3164_v8  ;;  %v3507_v20 = vor.u32 %v3506_v49, %v3502_v37 }
 0x3e9   : > { %v2884_v18 = vmax.f32 %v2863_v4, %v2876_v62  ;;  %3245 = vrot.lane.b32.xlu2 %v3234_v43, %s4757_s27 }
 0x3eb   : > { %3413 = vrot.lane.b32.xlu0 %v3402_v5, %s4754_s24  ;;  %v2892_v47 = vpack.c.bf16 %v2884_v18, %v2884_v18 }
 0x3ec   : > { %v2864_v63 = vpop.f32.mrf.mxu0 }
 0x3ed   : > { %v2929_v3 = vshrl.u32 %v2892_v47, 16  ;;  %v2865_v54 = vadd.f32 %v5589_v46, %v2864_v63  ;;  %v2932_v58 = vshll.u32 %v2892_v47, 16 }
 0x3ef   : > { %v2931_v48 = vrot.slane %v2929_v3, 7  ;;  %v2877_v42 = vmul.f32 0.1, %v2865_v54 }
 0x3f0   : > { %3285 = vrot.lane.b32.xlu1 %v3274_v15, %s4759_s29 }
 0x3f1   : > { %v2934_v9 = vor.u32 %v2932_v58, %v2931_v48  ;;  %v2935_v13 = vrot.slane %v2931_v48, 4  ;;  %v2885_v33 = vmax.f32 %v2865_v54, %v2877_v42  ;;  %3199 = vrot.lane.b32.xlu2 %v3169_v55, %s4754_s24 }
 0x3f3   : > { %3547 = vrot.lane.b32.xlu0 %v3507_v20, %s4759_s29  ;;  %v3000_v32 = vsel %vm5253_vm11, %v2934_v9, %v2999_v1  ;;  %v3003_v19 = vsel %vm5258_vm12, %v2935_v13, %v3002_v29  ;;  %v2893_v28 = vpack.c.bf16 %v2885_v33, %v2885_v33  ;;  %v3727_v29 = vunpack.c.l.b16 %v3585_v22 }
 0x3f4   : > { %3001 = vst [vmem:[#allocation2 + $0x28] sm:$0xf] %v3000_v32 }
 0x3f5   : > { %3004 = vst [vmem:[#allocation2 + $0x2c] sm:$0x1] %v3003_v19  ;;  %v2937_v23 = vshrl.u32 %v2893_v28, 16  ;;  %v2940_v53 = vshll.u32 %v2893_v28, 16 }
 0x3f7   : > { %v2939_v0 = vrot.slane %v2937_v23, 7 }
 0x3f8   : > { %3247 = vrot.lane.b32.xlu1 %v3235_v27, %s4757_s27 }
 0x3f9   : > { %v2942_v24 = vor.u32 %v2940_v53, %v2939_v0  ;;  %v2943_v31 = vrot.slane %v2939_v0, 4  ;;  %v2867_v56 = vpop.f32.mrf.mxu0 }
 0x3fa   : > { %v2868_v16 = vadd.f32 %v5589_v46, %v2867_v56 }
 0x3fb   : > { %v3006_v36 = vsel %vm5253_vm11, %v2942_v24, %v3005_v41  ;;  %v3009_v39 = vsel %vm5258_vm12, %v2943_v31, %v3008_v51  ;;  %v3074_v57 = vld [vmem:[#allocation2 + $0x28] sm:$0xf] }
 0x3fc   : > { %v3051_v21 = vld [vmem:[#allocation2 + $0x28] sm:$0xf]  ;;  %3007 = vst [vmem:[#allocation2 + $0x30] sm:$0xf] %v3006_v36  ;;  %v2878_v61 = vmul.f32 0.1, %v2868_v16  ;;  %v3434_v62 = vunpack.c.l.b16 %v3074_v57 }
 0x3fd   : > { %v3090_v4 = vld [vmem:[#allocation2 + $0x28] sm:$0xe]  ;;  %v3267_v43 = vunpack.c.l.b16 %v3051_v21  ;;  %v3082_v17 = vld [vmem:[#allocation2 + $0x2c] sm:$0x1]  ;;  %3010 = vst [vmem:[#allocation2 + $0x34] sm:$0x1] %v3009_v39 }
 0x3fe   : > { %v3570_v5 = vunpack.c.l.b16 %v3090_v4  ;;  %v3474_v60 = vunpack.c.l.b16 %v3082_v17  ;;  %v3059_v18 = vld [vmem:[#allocation2 + $0x2c] sm:$0x1]  ;;  %v3067_v47 = vld [vmem:[#allocation2 + $0x28] sm:$0xe]  ;;  %v2886_v26 = vmax.f32 %v2868_v16, %v2878_v61  ;;  %v3442_v44 = vpack.c.b16 %v3434_v62, %v3434_v62  ;;  %v3011_v61 = vld [vmem:[#allocation2 + $0x38] sm:$0xf] }
 0x3ff   : > { %v3275_v63 = vpack.c.b16 %v3267_v43, %v3267_v43  ;;  %v3307_v49 = vunpack.c.l.b16 %v3059_v18  ;;  %v5672_v3 = vld [vmem:[#allocation2 + $0x28] sm:$0xf]  ;;  %v3036_v54 = vld [vmem:[#allocation2 + $0x2c] sm:$0x1]  ;;  %v3387_v37 = vunpack.c.l.b16 %v3067_v47  ;;  %v4699_v18 = vld [vmem:[%s5937_s11 + $0x30] sm:$0xff] }
 0x400   : > { %v3578_v8 = vpack.c.b16 %v3474_v60, %v3570_v5  ;;  %v3482_v15 = vpack.c.b16 %v3474_v60, %v3434_v62  ;;  %v3121_v52 = vunpack.c.l.b16 %v5672_v3  ;;  %v2894_v48 = vpack.c.bf16 %v2886_v26, %v2886_v26  ;;  %3453 = vrot.lane.b32.xlu2 %v3442_v44, %s4757_s27  ;;  %v3044_v13 = vld [vmem:[#allocation2 + $0x28] sm:$0xe]  ;;  %v3014_v62 = vld [vmem:[#allocation2 + $0x3c] sm:$0x1]  ;;  %3924 = vmatpush.bf16.msra.mxu1 %v4699_v18 }
 0x401   : > { %3287 = vrot.lane.b32.xlu0 %v3275_v63, %s4759_s29  ;;  %v5677_v58 = vpack.c.b16 %v3307_v49, %v3267_v43  ;;  %v3122_v42 = vunpack.c.l.b16 %v3036_v54  ;;  %v2869_v55 = vpop.f32.mrf.mxu0  ;;  %v3395_v9 = vpack.c.b16 %v3307_v49, %v3387_v37  ;;  %v3220_v24 = vunpack.c.l.b16 %v3044_v13 }
 0x402   : > { %v3586_v7 = vrot.slane %v3578_v8, 1  ;;  %v3511_v20 = vshll.u32 %v3482_v15, 16  ;;  %v2945_v33 = vshrl.u32 %v2894_v48, 16  ;;  %v2870_v1 = vadd.f32 %v5589_v46, %v2869_v55 }
 0x403   : > { %v3132_v30 = vpack.c.b16 %v3122_v42, %v3121_v52  ;;  %v2948_v32 = vshll.u32 %v2894_v48, 16  ;;  %v3509_v28 = vshrl.u32 %v3482_v15, 16  ;;  %v3075_v27 = vld [vmem:[#allocation2 + $0x30] sm:$0xf]  ;;  %v3403_v46 = vrot.slane %v3395_v9, 1  ;;  %v4698_v52 = vld [vmem:[%s5937_s11 + $0x28] sm:$0xff] }
 0x404   : > { %v3730_v19 = vunpack.c.l.b16 %v3586_v7  ;;  %v3513_v23 = vrot.slane %v3511_v20, 1  ;;  %v2947_v40 = vrot.slane %v2945_v33, 7  ;;  %v2879_v0 = vmul.f32 0.1, %v2870_v1  ;;  %v3068_v31 = vld [vmem:[#allocation2 + $0x30] sm:$0xe]  ;;  %3925 = vmatpush.bf16.msra.mxu1 %v4698_v52 }
 0x405   : > { %v3173_v53 = vshll.u32 %v3132_v30, 16  ;;  %v3171_v51 = vshrl.u32 %v3132_v30, 16  ;;  %v3060_v16 = vld [vmem:[#allocation2 + $0x34] sm:$0x1]  ;;  %v3052_v22 = vld [vmem:[#allocation2 + $0x30] sm:$0xf]  ;;  %v3435_v43 = vunpack.c.l.b16 %v3075_v27  ;;  %v3388_v5 = vunpack.c.l.b16 %v3068_v31 }
 0x406   : > { %v3788_v56 = vpack.c.b16 %v3730_v19, %v3727_v29  ;;  %v3514_v41 = vor.u32 %v3513_v23, %v3509_v28  ;;  %v2950_v36 = vor.u32 %v2948_v32, %v2947_v40  ;;  %v2951_v39 = vrot.slane %v2947_v40, 4  ;;  %v3083_v4 = vld [vmem:[#allocation2 + $0x34] sm:$0x1]  ;;  %v3091_v49 = vld [vmem:[#allocation2 + $0x30] sm:$0xe]  ;;  %v4697_v29 = vld [vmem:[%s5937_s11 + $0x20] sm:$0xff] }
 0x407   : > { %v2887_v57 = vmax.f32 %v2870_v1, %v2879_v0  ;;  %v3175_v21 = vrot.slane %v3173_v53, 1  ;;  %v3308_v17 = vunpack.c.l.b16 %v3060_v16  ;;  %v5685_v60 = vunpack.c.l.b16 %v3052_v22  ;;  %v5702_v20 = vld [vmem:[#allocation2 + $0x30] sm:$0xf]  ;;  %v5704_v9 = vld [vmem:[#allocation2 + $0x34] sm:$0x1] }
 0x408   : > { %4609 = vmatmul.msk.bf16.gmra.mxu3 %vm1148_vm1, %v3788_v56  ;;  %3549 = vrot.lane.b32.xlu1 %v3514_v41, %s4759_s29  ;;  %v3012_v47 = vsel %vm5253_vm11, %v2950_v36, %v3011_v61  ;;  %v3015_v26 = vsel %vm5258_vm12, %v2951_v39, %v3014_v62  ;;  %v3228_v54 = vpack.c.b16 %v3122_v42, %v3220_v24  ;;  %v3475_v15 = vunpack.c.l.b16 %v3083_v4  ;;  %v3017_v28 = vld [vmem:[#allocation2 + $0x40] sm:$0xf]  ;;  %v3020_v23 = vld [vmem:[#allocation2 + $0x44] sm:$0x1]  ;;  %v3094_v52 = vld [vmem:[#allocation2 + $0x48] sm:$0xe] }
 0x409   : > { %v2895_v44 = vpack.c.bf16 %v2887_v57, %v2887_v57  ;;  %3415 = vrot.lane.b32.xlu2 %v3403_v46, %s4754_s24  ;;  %v3176_v63 = vor.u32 %v3175_v21, %v3171_v51  ;;  %3013 = vst [vmem:[#allocation2 + $0x38] sm:$0xf] %v3012_v47  ;;  %v5696_v8 = vpack.c.b16 %v3308_v17, %v5685_v60  ;;  %v3571_v7 = vunpack.c.l.b16 %v3091_v49 }
 0x40a   : > { %3016 = vst [vmem:[#allocation2 + $0x3c] sm:$0x1] %v3015_v26  ;;  %v3396_v48 = vpack.c.b16 %v3308_v17, %v3388_v5  ;;  %v3483_v55 = vpack.c.b16 %v3475_v15, %v3435_v43  ;;  %v3443_v33 = vpack.c.b16 %v3435_v43, %v3435_v43  ;;  %v3236_v1 = vrot.slane %v3228_v54, 1  ;;  %3926 = vmatpush.bf16.msra.mxu1 %v4697_v29  ;;  %v4696_v5 = vld [vmem:[%s5937_s11 + $0x18] sm:$0xff] }
 0x40b   : > { %v2953_v37 = vshrl.u32 %v2895_v44, 16  ;;  %3201 = vrot.lane.b32.xlu0 %v3176_v63, %s4754_s24  ;;  %v2956_v13 = vshll.u32 %v2895_v44, 16  ;;  %v3123_v32 = vunpack.c.l.b16 %v5702_v20  ;;  %v3124_v19 = vunpack.c.l.b16 %v5704_v9  ;;  %v5738_v63 = vpop.permute.xlu2 %3191 }
 0x40c   : > { %v3404_v27 = vrot.slane %v3396_v48, 1  ;;  %v3518_v40 = vshll.u32 %v3483_v55, 16  ;;  %v3579_v0 = vpack.c.b16 %v3475_v15, %v3571_v7  ;;  %v3276_v18 = vpack.c.b16 %v5685_v60, %v5685_v60  ;;  %v4695_v48 = vld [vmem:[%s5937_s11 + $0x10] sm:$0xff] }
 0x40d   : > { %v2955_v42 = vrot.slane %v2953_v37, 7  ;;  %v3133_v2 = vpack.c.b16 %v3124_v19, %v3123_v32  ;;  %v3516_v47 = vshrl.u32 %v3483_v55, 16  ;;  %v4708_v55 = vld [vmem:[%s5937_s11 + $0x78] sm:$0xff] }
 0x40e   : > { %v3587_v39 = vrot.slane %v3579_v0, 1  ;;  %v3520_v61 = vrot.slane %v3518_v40, 1  ;;  %3927 = vmatpush.bf16.msra.mxu1 %v4696_v5  ;;  %3952 = vmatpush.bf16.msra.mxu2 %v4708_v55  ;;  %v3045_v40 = vld [vmem:[#allocation2 + $0x30] sm:$0xe] }
 0x40f   : > { %v2958_v30 = vor.u32 %v2956_v13, %v2955_v42  ;;  %v2959_v11 = vrot.slane %v2955_v42, 4  ;;  %v3180_v37 = vshll.u32 %v3133_v2, 16 }
 0x410   : > { %3455 = vrot.lane.b32.xlu1 %v3443_v33, %s4757_s27  ;;  %v3076_v31 = vld [vmem:[#allocation2 + $0x38] sm:$0xf]  ;;  %v3521_v7 = vor.u32 %v3520_v61, %v3516_v47  ;;  %v3733_v42 = vunpack.c.l.b16 %v3587_v39 }
 0x411   : > { %v3018_v53 = vsel %vm5253_vm11, %v2958_v30, %v3017_v28  ;;  %v3021_v24 = vsel %vm5258_vm12, %v2959_v11, %v3020_v23  ;;  %3249 = vrot.lane.b32.xlu2 %v3236_v1, %s4757_s27  ;;  %v3092_v56 = vld [vmem:[#allocation2 + $0x38] sm:$0xe]  ;;  %v3436_v46 = vunpack.c.l.b16 %v3076_v31  ;;  %v3084_v51 = vld [vmem:[#allocation2 + $0x3c] sm:$0x1]  ;;  %v3574_v28 = vunpack.c.l.b16 %v3094_v52  ;;  %v4694_v31 = vld [vmem:[%s5937_s11 + $0x8] sm:$0xff] }
 0x412   : > { %v5717_v41 = vld [vmem:[#allocation2 + $0x38] sm:$0xf]  ;;  %3019 = vst [vmem:[#allocation2 + $0x40] sm:$0xf] %v3018_v53  ;;  %v3572_v16 = vunpack.c.l.b16 %v3092_v56  ;;  %v3476_v22 = vunpack.c.l.b16 %v3084_v51  ;;  %v5722_v6 = vld [vmem:[#allocation2 + $0x3c] sm:$0x1]  ;;  %3928 = vmatpush.bf16.msra.mxu1 %v4695_v48 }
 0x413   : > { %3022 = vst [vmem:[#allocation2 + $0x44] sm:$0x1] %v3021_v24  ;;  %3417 = vrot.lane.b32.xlu0 %v3404_v27, %s4754_s24  ;;  %v3125_v36 = vunpack.c.l.b16 %v5717_v41  ;;  %v3126_v57 = vunpack.c.l.b16 %v5722_v6  ;;  %v5726_v21 = vld [vmem:[#allocation2 + $0x3c] sm:$0x1]  ;;  %v3053_v4 = vld [vmem:[#allocation2 + $0x38] sm:$0xf]  ;;  %v3444_v49 = vpack.c.b16 %v3436_v46, %v3436_v46  ;;  %v5774_v59 = vpop.permute.xlu2 %3461 }
 0x414   : > { %v3580_v62 = vpack.c.b16 %v3476_v22, %v3572_v16  ;;  %v3484_v43 = vpack.c.b16 %v3476_v22, %v3436_v46  ;;  %v3309_v17 = vunpack.c.l.b16 %v5726_v21  ;;  %v5736_v44 = vunpack.c.l.b16 %v3053_v4  ;;  %v3069_v46 = vld [vmem:[#allocation2 + $0x38] sm:$0xe]  ;;  %v4706_v52 = vld [vmem:[%s5937_s11 + $0x68] sm:$0xff] }
 0x415   : > { %v3134_v26 = vpack.c.b16 %v3126_v57, %v3125_v36  ;;  %v3182_v27 = vrot.slane %v3180_v37, 1  ;;  %v3178_v16 = vshrl.u32 %v3133_v2, 16  ;;  %v3221_v4 = vunpack.c.l.b16 %v3045_v40  ;;  %v4707_v2 = vld [vmem:[%s5937_s11 + $0x70] sm:$0xff]  ;;  %v4702_v6 = vld [vmem:[%s5937_s11 + $0x48] sm:$0xff] }
 0x416   : > { %v3588_v54 = vrot.slane %v3580_v62, 1  ;;  %v3525_v15 = vshll.u32 %v3484_v43, 16  ;;  %v5747_v60 = vpack.c.b16 %v3309_v17, %v5736_v44  ;;  %v3523_v56 = vshrl.u32 %v3484_v43, 16  ;;  %3929 = vmatpush.bf16.msra.mxu1 %v4694_v31  ;;  %3953 = vmatpush.bf16.msra.mxu2 %v4707_v2 }
 0x417   : > { %v3187_v33 = vshll.u32 %v3134_v26, 16  ;;  %v3582_v62 = vpack.c.b16 %v3478_v14, %v3574_v28  ;;  %v3185_v47 = vshrl.u32 %v3134_v26, 16  ;;  %v3389_v43 = vunpack.c.l.b16 %v3069_v46  ;;  %v4703_v46 = vld [vmem:[%s5937_s11 + $0x50] sm:$0xff] }
 0x418   : > { %3289 = vrot.lane.b32.xlu1 %v3276_v18, %s4759_s29  ;;  %v3736_v13 = vunpack.c.l.b16 %v3588_v54  ;;  %v3527_v29 = vrot.slane %v3525_v15, 1  ;;  %v3183_v18 = vor.u32 %v3182_v27, %v3178_v16  ;;  %v4693_v15 = vld [vmem:[%s5937_s11] sm:$0xff]  ;;  %v3229_v48 = vpack.c.b16 %v3124_v19, %v3221_v4  ;;  %v4704_v27 = vld [vmem:[%s5937_s11 + $0x58] sm:$0xff] }
 0x419   : > { %3457 = vrot.lane.b32.xlu2 %v3444_v49, %s4757_s27  ;;  %v3054_v1 = vld [vmem:[#allocation2 + $0x40] sm:$0xf]  ;;  %v3189_v22 = vrot.slane %v3187_v33, 1  ;;  %v5765_v49 = vpop.permute.xlu1 %3239  ;;  %v3397_v55 = vpack.c.b16 %v3309_v17, %v3389_v43 }
 0x41a   : > { %v3062_v30 = vld [vmem:[#allocation2 + $0x44] sm:$0x1]  ;;  %v5753_v11 = vunpack.c.l.b16 %v3054_v1  ;;  %v3791_v23 = vpack.c.b16 %v3736_v13, %v3733_v42  ;;  %v3093_v53 = vld [vmem:[#allocation2 + $0x40] sm:$0xe]  ;;  %v3528_v39 = vor.u32 %v3527_v29, %v3523_v56  ;;  %v3590_v42 = vrot.slane %v3582_v62, 1  ;;  %3930 = vmatpush.bf16.msra.mxu1 %v4693_v15  ;;  %3954 = vmatpush.bf16.msra.mxu2 %v4706_v52 }
 0x41b   : > { %v3085_v32 = vld [vmem:[#allocation2 + $0x44] sm:$0x1]  ;;  %3551 = vrot.lane.b32.xlu0 %v3521_v7, %s4759_s29  ;;  %v3310_v0 = vunpack.c.l.b16 %v3062_v30  ;;  %v3573_v51 = vunpack.c.l.b16 %v3093_v53  ;;  %v3070_v61 = vld [vmem:[#allocation2 + $0x40] sm:$0xe]  ;;  %v3190_v14 = vor.u32 %v3189_v22, %v3185_v47  ;;  %v3046_v13 = vld [vmem:[#allocation2 + $0x38] sm:$0xe]  ;;  %v3408_v40 = vpop.permute.xlu2 %3407 }
 0x41c   : > { %v3477_v24 = vunpack.c.l.b16 %v3085_v32  ;;  %4610 = vmatmul.msk.bf16.gmra.mxu3 %vm1148_vm1, %v3791_v23  ;;  %v3077_v5 = vld [vmem:[#allocation2 + $0x40] sm:$0xf]  ;;  %v3390_v26 = vunpack.c.l.b16 %v3070_v61  ;;  %v3237_v30 = vrot.slane %v3229_v48, 1  ;;  %v3405_v32 = vrot.slane %v3397_v55, 1 }
 0x41d   : > { %v5761_v36 = vpack.c.b16 %v3310_v0, %v5753_v11  ;;  %v3437_v37 = vunpack.c.l.b16 %v3077_v5  ;;  %v4705_v29 = vld [vmem:[%s5937_s11 + $0x60] sm:$0xff]  ;;  %v3742_v19 = vunpack.c.l.b16 %v3590_v42  ;;  %v3222_v28 = vunpack.c.l.b16 %v3046_v13 }
 0x41e   : > { %v3581_v54 = vpack.c.b16 %v3477_v24, %v3573_v51  ;;  %v3398_v33 = vpack.c.b16 %v3310_v0, %v3390_v26  ;;  %3955 = vmatpush.bf16.msra.mxu2 %v4705_v29  ;;  %v4745_v4 = vld [vmem:[#allocation2] sm:$0xf]  ;;  %v3278_v5 = vpack.c.b16 %v5753_v11, %v5753_v11  ;;  %v3322_v48 = vshll.u32 %v5608_v25, 16 }
 0x41f   : > { %v3485_v1 = vpack.c.b16 %v3477_v24, %v3437_v37  ;;  %v3230_v24 = vpack.c.b16 %v3126_v57, %v3222_v28  ;;  %v3445_v56 = vpack.c.b16 %v3437_v37, %v3437_v37  ;;  %v3593_v61 = vsel %vm1148_vm1, %v4745_v4, %v5738_v63  ;;  %v4701_v47 = vld [vmem:[%s5937_s11 + $0x40] sm:$0xff] }
 0x420   : > { %3553 = vrot.lane.b32.xlu1 %v3528_v39, %s4759_s29  ;;  %v3589_v7 = vrot.slane %v3581_v54, 1  ;;  %v3406_v21 = vrot.slane %v3398_v33, 1  ;;  %v3277_v63 = vpack.c.b16 %v5736_v44, %v5736_v44  ;;  %v3329_v44 = vshll.u32 %v5619_v10, 16 }
 0x421   : > { %3203 = vrot.lane.b32.xlu2 %v3183_v18, %s4754_s24  ;;  %v5790_v17 = vpop.permute.xlu1 %3557  ;;  %v3532_v23 = vshll.u32 %v3485_v1, 16  ;;  %v3238_v51 = vrot.slane %v3230_v24, 1  ;;  %v3530_v16 = vshrl.u32 %v3485_v1, 16  ;;  %v3616_v18 = vsel %vm1182_vm3, %v3593_v61, %v5765_v49 }
 0x422   : > { %v3739_v9 = vunpack.c.l.b16 %v3589_v7  ;;  %3956 = vmatpush.bf16.msra.mxu2 %v4704_v27  ;;  %v3324_v7 = vrot.slane %v3322_v48, 1  ;;  %v3331_v42 = vrot.slane %v3329_v44, 1  ;;  %v3320_v33 = vshrl.u32 %v5608_v25, 16 }
 0x423   : > { %3205 = vrot.lane.b32.xlu0 %v3190_v14, %s4754_s24  ;;  %v3534_v31 = vrot.slane %v3532_v23, 1  ;;  %v3242_v62 = vpop.permute.xlu2 %3241  ;;  %v3327_v1 = vshrl.u32 %v5619_v10, 16 }
 0x424   : > { %v3794_v0 = vpack.c.b16 %v3742_v19, %v3739_v9 }
 0x425   : > { %v3535_v22 = vor.u32 %v3534_v31, %v3530_v16 }
 0x426   : > { %3957 = vmatpush.bf16.msra.mxu2 %v4703_v46 }
 0x428   : > { %3251 = vrot.lane.b32.xlu1 %v3237_v30, %s4757_s27  ;;  %v3325_v30 = vor.u32 %v3324_v7, %v3320_v33 }
 0x429   : > { %3419 = vrot.lane.b32.xlu2 %v3405_v32, %s4754_s24  ;;  %v3332_v32 = vor.u32 %v3331_v42, %v3327_v1 }
 0x42a   : > { %v3280_v53 = vpop.permute.xlu0 %3279  ;;  %3958 = vmatpush.bf16.msra.mxu2 %v4702_v6  ;;  %v3649_v9 = vsel %vm1148_vm1, %v3325_v30, %v3408_v40  ;;  %v3350_v30 = vshll.u32 %v5677_v58, 16 }
 0x42b   : > { %3421 = vrot.lane.b32.xlu0 %v3406_v21, %s4754_s24  ;;  %v3632_v54 = vsel %vm1216_vm5, %v3616_v18, %v3280_v53  ;;  %v3196_v37 = vpop.permute.xlu2 %3195 }
 0x42c   : > { %4611 = vmatmul.msk.bf16.gmra.mxu3 %vm1148_vm1, %v3794_v0  ;;  %v3719_v14 = vunpack.c.l.b16 %v3632_v54  ;;  %v3599_v40 = vsel %vm1148_vm1, %v5615_v45, %v3196_v37  ;;  %v3336_v45 = vshll.u32 %v5641_v34, 16 }
 0x42e   : > { %3959 = vmatpush.bf16.msra.mxu2 %v4701_v47 }
 0x430   : > { %3459 = vrot.lane.b32.xlu1 %v3445_v56, %s4757_s27 }
 0x431   : > { %3253 = vrot.lane.b32.xlu2 %v3238_v51, %s4757_s27 }
 0x432   : > { %v3448_v57 = vpop.permute.xlu1 %3447  ;;  %v3194_v39 = vpop.permute.xlu0 %3193 }
 0x433   : > { %3555 = vrot.lane.b32.xlu0 %v3535_v22, %s4759_s29  ;;  %v3596_v43 = vsel %vm1148_vm1, %v5602_v35, %v3194_v39  ;;  %v3450_v55 = vpop.permute.xlu2 %3449  ;;  %v3672_v28 = vsel %vm1182_vm3, %v3649_v9, %v3448_v57 }
 0x434   : > { %v3618_v49 = vsel %vm1182_vm3, %v3596_v43, %v3242_v62 }
 0x438   : > { %3293 = vrot.lane.b32.xlu1 %v3278_v5, %s4759_s29 }
 0x43a   : > { %v3282_v11 = vpop.permute.xlu1 %3281  ;;  %v3410_v2 = vpop.permute.xlu0 %3409 }
 0x43b   : > { %3291 = vrot.lane.b32.xlu0 %v3277_v63, %s4759_s29  ;;  %v3634_v15 = vsel %vm1216_vm5, %v3618_v49, %v3282_v11  ;;  %v3652_v19 = vsel %vm1148_vm1, %v3332_v32, %v3410_v2  ;;  %v3412_v21 = vpop.permute.xlu2 %3411  ;;  %v3338_v63 = vrot.slane %v3336_v45, 1  ;;  %v3334_v49 = vshrl.u32 %v5641_v34, 16 }
 0x43c   : > { %v3722_v26 = vunpack.c.l.b16 %v3634_v15  ;;  %v3674_v0 = vsel %vm1182_vm3, %v3652_v19, %v3450_v55  ;;  %v3341_v2 = vshrl.u32 %v5651_v50, 16  ;;  %v3357_v32 = vshll.u32 %v5696_v8, 16 }
 0x43e   : > { %v3783_v35 = vpack.c.b16 %v3722_v26, %v3719_v14  ;;  %v3339_v14 = vor.u32 %v3338_v63, %v3334_v49 }
 0x440   : > { %3931 = vmatmul.bf16.vlgmr.msra.gmra.mxu1 %v3783_v35  ;;  %v3655_v37 = vsel %vm1148_vm1, %v3339_v14, %v3412_v21 }
 0x442   : > { %v3544_v52 = vpop.permute.xlu0 %3543  ;;  %v3244_v13 = vpop.permute.xlu1 %3243 }
 0x443   : > { %v3688_v23 = vsel %vm1216_vm5, %v3672_v28, %v3544_v52  ;;  %v3246_v56 = vpop.permute.xlu2 %3245  ;;  %v3620_v16 = vsel %vm1182_vm3, %v3599_v40, %v3244_v13 }
 0x444   : > { %v3720_v25 = vunpack.c.l.b16 %v3688_v23  ;;  %v3352_v23 = vrot.slane %v3350_v30, 1 }
 0x44b   : > { %v3200_v61 = vpop.permute.xlu2 %3199 }
 0x44c   : > { %v3284_v29 = vpop.permute.xlu0 %3283  ;;  %v3605_v19 = vsel %vm1148_vm1, %v5645_v38, %v3200_v61 }
 0x44d   : > { %v3636_v6 = vsel %vm1216_vm5, %v3620_v16, %v3284_v29 }
 0x44e   : > { %v3725_v62 = vunpack.c.l.b16 %v3636_v6 }
 0x452   : > { %v3546_v27 = vpop.permute.xlu1 %3545 }
 0x453   : > { %v3690_v53 = vsel %vm1216_vm5, %v3674_v0, %v3546_v27  ;;  %v3359_v0 = vrot.slane %v3357_v32, 1 }
 0x454   : > { %v3723_v24 = vunpack.c.l.b16 %v3690_v53 }
 0x455   : > { %v3198_v31 = vpop.permute.xlu0 %3197 }
 0x456   : > { %v3784_v10 = vpack.c.b16 %v3723_v24, %v3720_v25  ;;  %v3602_v51 = vsel %vm1148_vm1, %v5638_v12, %v3198_v31  ;;  %v3343_v12 = vshll.u32 %v5651_v50, 16  ;;  %v3348_v24 = vshrl.u32 %v5677_v58, 16 }
 0x457   : > { %v3622_v39 = vsel %vm1182_vm3, %v3602_v51, %v3246_v56  ;;  %v3355_v31 = vshrl.u32 %v5696_v8, 16 }
 0x458   : > { %3960 = vmatmul.bf16.vlgmr.msra.gmra.mxu2 %v3784_v10  ;;  %v3345_v54 = vrot.slane %v3343_v12, 1  ;;  %v3353_v40 = vor.u32 %v3352_v23, %v3348_v24  ;;  %v4711_v23 = vld [vmem:[%s5939_s13] sm:$0xff] }
 0x45a   : > { %v3452_v46 = vpop.permute.xlu1 %3451  ;;  %v3454_v43 = vpop.permute.xlu2 %3453  ;;  %v3346_v26 = vor.u32 %v3345_v54, %v3341_v2  ;;  %v3369_v54 = vshrl.u32 %v5761_v36, 16 }
 0x45b   : > { %v3676_v48 = vsel %vm1182_vm3, %v3655_v37, %v3452_v46 }
 0x45d   : > { %v3414_v22 = vpop.permute.xlu0 %3413 }
 0x45e   : > { %v3658_v35 = vsel %vm1148_vm1, %v3346_v26, %v3414_v22 }
 0x45f   : > { %v3678_v7 = vsel %vm1182_vm3, %v3658_v35, %v3454_v43  ;;  %v3364_v43 = vshll.u32 %v5747_v60, 16 }
 0x462   : > { %v3286_v57 = vpop.permute.xlu1 %3285 }
 0x463   : > { %v3638_v4 = vsel %vm1216_vm5, %v3622_v39, %v3286_v57  ;;  %v3416_v52 = vpop.permute.xlu2 %3415 }
 0x464   : > { %v3728_v5 = vunpack.c.l.b16 %v3638_v4  ;;  %v3661_v22 = vsel %vm1148_vm1, %v3353_v40, %v3416_v52 }
 0x465   : > { %v3548_v47 = vpop.permute.xlu0 %3547 }
 0x466   : > { %v3786_v18 = vpack.c.b16 %v3728_v5, %v3725_v62  ;;  %v3692_v44 = vsel %vm1216_vm5, %v3676_v48, %v3548_v47  ;;  %v3371_v5 = vshll.u32 %v5761_v36, 16 }
 0x467   : > { %v3726_v34 = vunpack.c.l.b16 %v3692_v44 }
 0x468   : > { %3936 = vmatmul.bf16.gmra.mxu1 %v3786_v18  ;;  %v3373_v12 = vrot.slane %v3371_v5, 1 }
 0x46a   : > { %v3248_v11 = vpop.permute.xlu1 %3247  ;;  %v3374_v49 = vor.u32 %v3373_v12, %v3369_v54 }
 0x46b   : > { %v3250_v1 = vpop.permute.xlu2 %3249  ;;  %v3624_v21 = vsel %vm1182_vm3, %v3605_v19, %v3248_v11  ;;  %v3366_v11 = vrot.slane %v3364_v43, 1 }
 0x473   : > { %v3288_v15 = vpop.permute.xlu0 %3287  ;;  %v3458_v10 = vpop.permute.xlu2 %3457 }
 0x474   : > { %v3640_v27 = vsel %vm1216_vm5, %v3624_v21, %v3288_v15  ;;  %v3362_v15 = vshrl.u32 %v5747_v60, 16  ;;  %v4713_v21 = vld [vmem:[%s5939_s13 + $0x10] sm:$0xff] }
 0x475   : > { %v3731_v38 = vunpack.c.l.b16 %v3640_v27 }
 0x476   : > { %v3367_v37 = vor.u32 %v3366_v11, %v3362_v15 }
 0x47a   : > { %v3550_v55 = vpop.permute.xlu1 %3549 }
 0x47b   : > { %v3694_v42 = vsel %vm1216_vm5, %v3678_v7, %v3550_v55  ;;  %v3204_v18 = vpop.permute.xlu2 %3203 }
 0x47c   : > { %v3729_v13 = vunpack.c.l.b16 %v3694_v42 }
 0x47d   : > { %v3202_v50 = vpop.permute.xlu0 %3201 }
 0x47e   : > { %v3787_v33 = vpack.c.b16 %v3729_v13, %v3726_v34  ;;  %v3608_v28 = vsel %vm1148_vm1, %v5672_v3, %v3202_v50  ;;  %v3360_v3 = vor.u32 %v3359_v0, %v3355_v31  ;;  %v4714_v34 = vld [vmem:[%s5939_s13 + $0x18] sm:$0xff]  ;;  %v4741_v0 = vld [vmem:[%s5938_s12] ss:$0 sm:$0xff] }
 0x47f   : > { %v3626_v25 = vsel %vm1182_vm3, %v3608_v28, %v3250_v1  ;;  %4082 = vmatpush.bf16.msra.mxu0 %v4714_v34  ;;  %4715 = vmatpush.bf16.msrb.mxu1 %v4714_v34 }
 0x480   : > { %3965 = vmatmul.bf16.gmra.mxu2 %v3787_v33 }
 0x482   : > { %v3456_v29 = vpop.permute.xlu1 %3455 }
 0x483   : > { %v3680_v57 = vsel %vm1182_vm3, %v3661_v22, %v3456_v29  ;;  %v3420_v26 = vpop.permute.xlu2 %3419  ;;  %4083 = vmatpush.bf16.msra.mxu0 %v4713_v21  ;;  %4716 = vmatpush.bf16.msrb.mxu1 %v4713_v21 }
 0x484   : > { %v3667_v52 = vsel %vm1148_vm1, %v3367_v37, %v3420_v26 }
 0x485   : > { %v3418_v9 = vpop.permute.xlu0 %3417 }
 0x486   : > { %v3664_v6 = vsel %vm1148_vm1, %v3360_v3, %v3418_v9 }
 0x487   : > { %v3682_v8 = vsel %vm1182_vm3, %v3664_v6, %v3458_v10 }
 0x48a   : > { %v3290_v53 = vpop.permute.xlu1 %3289 }
 0x48b   : > { %v3642_v56 = vsel %vm1216_vm5, %v3626_v25, %v3290_v53  ;;  %v3254_v50 = vpop.permute.xlu2 %3253  ;;  %v3990_v53 = vpop.f32.mrf.mxu3 }
 0x48c   : > { %v3734_v46 = vunpack.c.l.b16 %v3642_v56 }
 0x48d   : > { %v3552_v51 = vpop.permute.xlu0 %3551 }
 0x48e   : > { %v3789_v16 = vpack.c.b16 %v3734_v46, %v3731_v38  ;;  %v3696_v58 = vsel %vm1216_vm5, %v3680_v57, %v3552_v51 }
 0x48f   : > { %v3732_v61 = vunpack.c.l.b16 %v3696_v58 }
 0x490   : > { %3941 = vmatmul.bf16.gmra.mxu1 %v3789_v16 }
 0x492   : > { %v3554_v39 = vpop.permute.xlu1 %3553 }
 0x493   : > { %v3698_v4 = vsel %vm1216_vm5, %v3682_v8, %v3554_v39  ;;  %v3992_v3 = vpop.f32.mrf.mxu3 }
 0x494   : > { %v3735_v62 = vunpack.c.l.b16 %v3698_v4 }
 0x495   : > { %v3206_v47 = vpop.permute.xlu0 %3205 }
 0x496   : > { %v3790_v45 = vpack.c.b16 %v3735_v62, %v3732_v61 }
 0x498   : > { %3970 = vmatmul.bf16.gmra.mxu2 %v3790_v45 }
 0x49a   : > { %v3252_v63 = vpop.permute.xlu1 %3251 }
 0x49b   : > { %v3995_v8 = vpop.f32.mrf.mxu3 }
 0x49d   : > { %v3422_v2 = vpop.permute.xlu0 %3421 }
 0x49e   : > { %v3670_v14 = vsel %vm1148_vm1, %v3374_v49, %v3422_v2 }
 0x49f   : > { %v3686_v35 = vsel %vm1182_vm3, %v3670_v14, %v5774_v59  ;;  %v3614_v59 = vsel %vm1148_vm1, %v5717_v41, %v3206_v47 }
 0x4a0   : > { %v3702_v36 = vsel %vm1216_vm5, %v3686_v35, %v5790_v17  ;;  %v3630_v1 = vsel %vm1182_vm3, %v3614_v59, %v3254_v50  ;;  %v3611_v17 = vsel %vm1148_vm1, %v5702_v20, %v3204_v18  ;;  %v4712_v20 = vld [vmem:[%s5939_s13 + $0x8] sm:$0xff] }
 0x4a1   : > { %v3741_v60 = vunpack.c.l.b16 %v3702_v36  ;;  %v3628_v30 = vsel %vm1182_vm3, %v3611_v17, %v3252_v63  ;;  %4084 = vmatpush.bf16.msra.mxu0 %v4712_v20  ;;  %4717 = vmatpush.bf16.msrb.mxu1 %v4712_v20 }
 0x4a2   : > { %v3460_v48 = vpop.permute.xlu1 %3459 }
 0x4a3   : > { %v3684_v44 = vsel %vm1182_vm3, %v3667_v52, %v3460_v48  ;;  %v3997_v12 = vpop.f32.mrf.mxu3 }
 0x4a5   : > { %v3556_v55 = vpop.permute.xlu0 %3555  ;;  %4085 = vmatpush.bf16.msra.mxu0 %v4711_v23  ;;  %4718 = vmatpush.bf16.msrb.mxu1 %v4711_v23 }
 0x4a6   : > { %v3700_v7 = vsel %vm1216_vm5, %v3684_v44, %v3556_v55 }
 0x4a7   : > { %v3738_v42 = vunpack.c.l.b16 %v3700_v7 }
 0x4a9   : > { %v3793_v13 = vpack.c.b16 %v3741_v60, %v3738_v42 }
 0x4aa   : > { %v3294_v33 = vpop.permute.xlu1 %3293 }
 0x4ab   : > { %3975 = vmatmul.bf16.gmra.mxu2 %v3793_v13  ;;  %v3646_v29 = vsel %vm1216_vm5, %v3630_v1, %v3294_v33  ;;  %v4000_v26 = vpop.f32.mrf.mxu3 }
 0x4ac   : > { %v3740_v19 = vunpack.c.l.b16 %v3646_v29 }
 0x4ad   : > { %v3292_v32 = vpop.permute.xlu0 %3291 }
 0x4ae   : > { %v3644_v9 = vsel %vm1216_vm5, %v3628_v30, %v3292_v32 }
 0x4af   : > { %v3737_v41 = vunpack.c.l.b16 %v3644_v9 }
 0x4b1   : > { %v3792_v28 = vpack.c.b16 %v3740_v19, %v3737_v41 }
 0x4b3   : > { %3946 = vmatmul.bf16.gmra.mxu1 %v3792_v28  ;;  %v4002_v42 = vpop.f32.mrf.mxu3 }
 0x4bb   : > { %v4005_v30 = vpop.f32.mrf.mxu3 }
 0x4bd   : > { %v3932_v27 = vpop.f32.mrf.mxu1 }
 0x4be   : > { %v3933_v24 = vadd.f32 %v4741_v0, %v3932_v27 }
 0x4c3   : > { %v4007_v20 = vpop.f32.mrf.mxu3 }
 0x4c5   : > { %v3934_v31 = vpop.f32.mrf.mxu1 }
 0x4c6   : > { %v3935_v56 = vadd.f32 %v4741_v0, %v3934_v31  ;;  %v4742_v31 = vld [vmem:[%s5940_s14] ss:$0 sm:$0xff] }
 0x4db   : > { %v3961_v25 = vpop.f32.mrf.mxu2 }
 0x4dc   : > { %v3962_v10 = vadd.f32 %v3961_v25, %v3933_v24 }
 0x4de   : > { %v3991_v38 = vadd.f32 %v3990_v53, %v3962_v10 }
 0x4e0   : > { %v4010_v51 = vmul.f32 0.1, %v3991_v38 }
 0x4e2   : > { %v4018_v6 = vmax.f32 %v3991_v38, %v4010_v51 }
 0x4e3   : > { %v3963_v46 = vpop.f32.mrf.mxu2 }
 0x4e4   : > { %v3964_v40 = vadd.f32 %v3963_v46, %v3935_v56 }
 0x4e5   : > { %v3937_v39 = vpop.f32.mrf.mxu1 }
 0x4e6   : > { %v3993_v16 = vadd.f32 %v3992_v3, %v3964_v40  ;;  %v3938_v61 = vadd.f32 %v4741_v0, %v3937_v39 }
 0x4e8   : > { %v4011_v22 = vmul.f32 0.1, %v3993_v16 }
 0x4ea   : > { %v4019_v57 = vmax.f32 %v3993_v16, %v4011_v22 }
 0x4ec   : > { %v4026_v58 = vpack.c.bf16 %v4019_v57, %v4018_v6 }
 0x4ed   : > { %v3939_v5 = vpop.f32.mrf.mxu1 }
 0x4ee   : > { %4628 = vmatmul.msk.bf16.vlgmr.msra.gmra.mxu0 %vm1182_vm3, %v4026_v58  ;;  %v3940_v18 = vadd.f32 %v4741_v0, %v3939_v5 }
 0x503   : > { %v3966_v4 = vpop.f32.mrf.mxu2 }
 0x504   : > { %v3967_v62 = vadd.f32 %v3966_v4, %v3938_v61 }
 0x506   : > { %v3996_v47 = vadd.f32 %v3995_v8, %v3967_v62 }
 0x508   : > { %v4012_v63 = vmul.f32 0.1, %v3996_v47 }
 0x50a   : > { %v4020_v49 = vmax.f32 %v3996_v47, %v4012_v63 }
 0x50b   : > { %v3968_v45 = vpop.f32.mrf.mxu2 }
 0x50c   : > { %v3969_v43 = vadd.f32 %v3968_v45, %v3940_v18 }
 0x50d   : > { %v3942_v14 = vpop.f32.mrf.mxu1 }
 0x50e   : > { %v3998_v54 = vadd.f32 %v3997_v12, %v3969_v43  ;;  %v3943_v35 = vadd.f32 %v4741_v0, %v3942_v14 }
 0x510   : > { %v4013_v11 = vmul.f32 0.1, %v3998_v54 }
 0x512   : > { %v4021_v2 = vmax.f32 %v3998_v54, %v4013_v11 }
 0x514   : > { %v4027_v15 = vpack.c.bf16 %v4021_v2, %v4020_v49 }
 0x515   : > { %v3944_v48 = vpop.f32.mrf.mxu1 }
 0x516   : > { %4629 = vmatmul.msk.bf16.gmra.mxu0 %vm1182_vm3, %v4027_v15  ;;  %v3945_v44 = vadd.f32 %v4741_v0, %v3944_v48 }
 0x51b   : > { %v3971_v37 = vpop.f32.mrf.mxu2 }
 0x51c   : > { %v3972_v52 = vadd.f32 %v3971_v37, %v3943_v35 }
 0x51e   : > { %v4001_v36 = vadd.f32 %v4000_v26, %v3972_v52 }
 0x520   : > { %v4014_v60 = vmul.f32 0.1, %v4001_v36 }
 0x522   : > { %v4022_v13 = vmax.f32 %v4001_v36, %v4014_v60 }
 0x523   : > { %v3973_v55 = vpop.f32.mrf.mxu2 }
 0x524   : > { %v3974_v7 = vadd.f32 %v3973_v55, %v3945_v44 }
 0x526   : > { %v4003_v34 = vadd.f32 %v4002_v42, %v3974_v7 }
 0x528   : > { %v4015_v59 = vmul.f32 0.1, %v4003_v34 }
 0x52a   : > { %v4023_v50 = vmax.f32 %v4003_v34, %v4015_v59 }
 0x52c   : > { %v4028_v33 = vpack.c.bf16 %v4023_v50, %v4022_v13 }
 0x52e   : > { %4630 = vmatmul.msk.bf16.gmra.mxu0 %vm1182_vm3, %v4028_v33  ;;  %v3976_v1 = vpop.f32.mrf.mxu2 }
 0x530   : > { %v3947_v17 = vpop.f32.mrf.mxu1 }
 0x531   : > { %v3948_v29 = vadd.f32 %v4741_v0, %v3947_v17 }
 0x533   : > { %v3977_v32 = vadd.f32 %v3976_v1, %v3948_v29 }
 0x535   : > { %v4006_v19 = vadd.f32 %v4005_v30, %v3977_v32 }
 0x536   : > { %v3978_v28 = vpop.f32.mrf.mxu2 }
 0x537   : > { %v4016_v23 = vmul.f32 0.1, %v4006_v19 }
 0x538   : > { %v3949_v9 = vpop.f32.mrf.mxu1 }
 0x539   : > { %v3950_v41 = vadd.f32 %v4741_v0, %v3949_v9  ;;  %v4024_v25 = vmax.f32 %v4006_v19, %v4016_v23 }
 0x53b   : > { %v3979_v21 = vadd.f32 %v3978_v28, %v3950_v41 }
 0x53d   : > { %v4008_v27 = vadd.f32 %v4007_v20, %v3979_v21 }
 0x53f   : > { %v4017_v53 = vmul.f32 0.1, %v4008_v27 }
 0x541   : > { %v4025_v24 = vmax.f32 %v4008_v27, %v4017_v53 }
 0x543   : > { %v4029_v10 = vpack.c.bf16 %v4025_v24, %v4024_v25 }
 0x545   : > { %4631 = vmatmul.msk.bf16.vlgmr.msrb.gmra.mxu1 %vm1182_vm3, %v4029_v10 }
 0x56b   : > { %v4087_v56 = vpop.f32.mrf.mxu0 }
 0x56c   : > { %v4088_v38 = vadd.f32 %v4742_v31, %v4087_v56 }
 0x56e   : > { %v4107_v46 = vmul.f32 0.1, %v4088_v38 }
 0x570   : > { %v4115_v40 = vmax.f32 %v4088_v38, %v4107_v46 }
 0x572   : > { %4123 = vxpose.xlu2.b32.start [1/8] (short) (narrow) %v4115_v40, 32 }
 0x573   : > { %v4089_v0 = vpop.f32.mrf.mxu0 }
 0x574   : > { %v4090_v3 = vadd.f32 %v4742_v31, %v4089_v0 }
 0x576   : > { %v4108_v51 = vmul.f32 0.1, %v4090_v3 }
 0x578   : > { %v4116_v16 = vmax.f32 %v4090_v3, %v4108_v51 }
 0x57a   : > { %4124 = vxpose.xlu2.b32.cont [2/8] (short) (narrow) %v4116_v16, 32 }
 0x593   : > { %v4092_v22 = vpop.f32.mrf.mxu0 }
 0x594   : > { %v4093_v6 = vadd.f32 %v4742_v31, %v4092_v22 }
 0x596   : > { %v4109_v57 = vmul.f32 0.1, %v4093_v6 }
 0x598   : > { %v4117_v58 = vmax.f32 %v4093_v6, %v4109_v57 }
 0x59a   : > { %4125 = vxpose.xlu2.b32.cont [3/8] (short) (narrow) %v4117_v58, 32 }
 0x59b   : > { %v4094_v39 = vpop.f32.mrf.mxu0 }
 0x59c   : > { %v4095_v8 = vadd.f32 %v4742_v31, %v4094_v39 }
 0x59e   : > { %v4110_v4 = vmul.f32 0.1, %v4095_v8 }
 0x5a0   : > { %v4118_v61 = vmax.f32 %v4095_v8, %v4110_v4 }
 0x5a2   : > { %4126 = vxpose.xlu2.b32.cont [4/8] (short) (narrow) %v4118_v61, 32 }
 0x5ab   : > { %v4097_v62 = vpop.f32.mrf.mxu0 }
 0x5ac   : > { %v4098_v5 = vadd.f32 %v4742_v31, %v4097_v62 }
 0x5ae   : > { %v4111_v18 = vmul.f32 0.1, %v4098_v5 }
 0x5b0   : > { %v4119_v47 = vmax.f32 %v4098_v5, %v4111_v18 }
 0x5b2   : > { %4127 = vxpose.xlu2.b32.cont [5/8] (short) (narrow) %v4119_v47, 32 }
 0x5b3   : > { %v4099_v45 = vpop.f32.mrf.mxu0 }
 0x5b4   : > { %v4100_v43 = vadd.f32 %v4742_v31, %v4099_v45 }
 0x5b6   : > { %v4112_v12 = vmul.f32 0.1, %v4100_v43 }
 0x5b8   : > { %v4120_v63 = vmax.f32 %v4100_v43, %v4112_v12 }
 0x5ba   : > { %4128 = vxpose.xlu2.b32.cont [6/8] (short) (narrow) %v4120_v63, 32 }
 0x5c2   : > { %v4102_v54 = vpop.f32.mrf.mxu1 }
 0x5c3   : > { %v4103_v11 = vadd.f32 %v4742_v31, %v4102_v54 }
 0x5c5   : > { %v4113_v49 = vmul.f32 0.1, %v4103_v11 }
 0x5c7   : > { %v4121_v2 = vmax.f32 %v4103_v11, %v4113_v49 }
 0x5c9   : > { %4129 = vxpose.xlu2.b32.cont [7/8] (short) (narrow) %v4121_v2, 32 }
 0x5ca   : > { %v4104_v15 = vpop.f32.mrf.mxu1 }
 0x5cb   : > { %v4105_v14 = vadd.f32 %v4742_v31, %v4104_v15 }
 0x5cd   : > { %v4114_v26 = vmul.f32 0.1, %v4105_v14 }
 0x5cf   : > { %v4122_v37 = vmax.f32 %v4105_v14, %v4114_v26 }
 0x5d1   : > { %4130 = vxpose.xlu2.b32.end [8/8] (short) (narrow) %v4122_v37, 32 }
 0x632   : > { %v4139_v35 = vpop.trf.xlu2 }
 0x633   : > { %4155 = vst.msk [vmem:[%s514_s17] sm:$0xff] %vm1182_vm3, %v4139_v35 }
 0x63a   : > { %v4140_v52 = vpop.trf.xlu2 }
 0x63b   : > { %4156 = vst.msk [vmem:[%s514_s17 + $0x8] sm:$0xff] %vm1182_vm3, %v4140_v52 }
 0x642   : > { %v4141_v48 = vpop.trf.xlu2 }
 0x643   : > { %4157 = vst.msk [vmem:[%s514_s17 + $0x10] sm:$0xff] %vm1182_vm3, %v4141_v48 }
 0x64a   : > { %v4142_v44 = vpop.trf.xlu2 }
 0x64b   : > { %4158 = vst.msk [vmem:[%s514_s17 + $0x18] sm:$0xff] %vm1182_vm3, %v4142_v44 }
 0x64c PF: > { %s25_s18 = sadd.s32 1, %s4752_s18  }
 0x64d   : > { %p22_p4 = scmp.ge.s32.totalorder %s25_s18, 4  }
 0x64f   :  { %24 = sbr.rel (!%p22_p4) target bundleno = 1 (0x1), region = 118 }

</bundles_post_ra>
